<compile_context>
chip_gen: v7x
topology: tpu7x:2x2x1
jax: 0.10.0
libtpu: 0.0.40
codegen_flags: <defaults>
</compile_context>

<pallas_src>
import jax
import jax.numpy as jnp
import numpy as np
from jax.experimental import pallas as pl
from jax.experimental.pallas import tpu as pltpu

EPS = 1e-5
_BF16_MIN_C = 64   # use bf16 MXU operands only at real channel counts


def _resnet_block_kernel(x_ref, w1_ref, b1_ref, w2_ref, b2_ref, o_ref, pad_ref):
    # x_ref/o_ref: (Bt, H, W, C) NHWC block (f32)
    # w*_ref: (9, C, C)   tap-major weights, tap = kh*3 + kw; rows = Cin, cols = Cout
    # b*_ref: (1, C) f32
    # pad_ref: (Bt, H+2, W+2, C) f32 VMEM scratch; interior = current activation,
    #          1-pixel border = zeros (the conv "same" padding).
    Bt, H, W, C = x_ref.shape
    HW = H * W

    def norm_relu(v):
        # InstanceNorm2d (no affine): per-(image, channel) stats over HxW,
        # biased variance, eps inside rsqrt. Fused one-pass E[x], E[x^2].
        inv_n = 1.0 / float(HW)
        mean = jnp.sum(v, axis=(1, 2), keepdims=True) * inv_n
        ex2 = jnp.sum(v * v, axis=(1, 2), keepdims=True) * inv_n
        var = jnp.maximum(ex2 - mean * mean, 0.0)
        return jnp.maximum((v - mean) * jax.lax.rsqrt(var + EPS), 0.0)

    def conv3x3(w_ref, b_ref):
        # 9 accumulated MXU matmuls (K = C each) over shifted views of the
        # padded slab -- no materialized im2col patch matrix.
        # TODO(synk): dx in {1,2} slices are sublane-misaligned; an XLU
        # pltpu.roll-based tap generation would move that shuffle off vld/vst.
        acc = jnp.zeros((Bt * HW, C), jnp.float32)
        for tap in range(9):
            dy, dx = tap // 3, tap % 3
            patch = pad_ref[:, dy:dy + H, dx:dx + W, :].reshape(Bt * HW, C)
            acc = acc + jnp.dot(patch.astype(w_ref.dtype), w_ref[tap],
                                preferred_element_type=jnp.float32)
        return (acc + b_ref[...]).reshape(Bt, H, W, C)

    # Refresh only the zero border; the interior is fully overwritten below.
    # (Per-step thin stores instead of a full-slab zero; see header note on
    #  why a program_id==0-only zero is unsafe under megacore sharding.)
    zrow = jnp.zeros((Bt, 1, W + 2, C), jnp.float32)
    zcol = jnp.zeros((Bt, H + 2, 1, C), jnp.float32)
    pad_ref[:, 0:1, :, :] = zrow
    pad_ref[:, H + 1:H + 2, :, :] = zrow
    pad_ref[:, :, 0:1, :] = zcol
    pad_ref[:, :, W + 1:W + 2, :] = zcol

    x = x_ref[...]

    # ---- h = conv1(relu(norm1(x))) ----
    pad_ref[:, 1:H + 1, 1:W + 1, :] = norm_relu(x)
    h = conv3x3(w1_ref, b1_ref)

    # ---- y = conv2(relu(norm2(h))) ----
    pad_ref[:, 1:H + 1, 1:W + 1, :] = norm_relu(h)
    y = conv3x3(w2_ref, b2_ref)

    # residual uses the original (pre-norm) input
    o_ref[...] = (y + x).astype(o_ref.dtype)


def _vmem_capacity_bytes():
    try:
        info = pltpu.get_tpu_info()
        cap = int(getattr(info, "vmem_capacity_bytes", 0))
        if cap > 0:
            return cap
    except Exception:
        pass
    return 64 * 1024 * 1024          # conservative fallback (v7x per-TC VMEM)


def _pick_batch_tile(B, H, W, C, vmem_budget_bytes):
    """Fold batch into the block (matmul M dim) under a VMEM working-set budget,
    while keeping enough grid depth for DMA/compute pipelining."""
    pad_ratio = float((H + 2) * (W + 2)) / float(H * W)
    # live f32 image-sized copies per step: dbl-buffered in/out (4), padded
    # scratch (~pad_ratio), conv acc + tap copies + norm temps + headroom (~5)
    per_image_bytes = int((9.0 + pad_ratio) * H * W * C * 4)
    max_bt = max(1, vmem_budget_bytes // per_image_bytes)
    # keep >= min(B, 4) grid steps: >= 2 steps per TensorCore on v7x's 2 TCs,
    # and enough depth to hide input DMAs behind compute on single-TC chips.
    min_steps = min(B, 4)
    max_bt = min(max_bt, max(1, B // min_steps))
    bt = 1
    for d in range(1, B + 1):         # largest divisor of B within the cap
        if B % d == 0 and d <= max_bt:
            bt = d
    return bt


@jax.jit
def resnet_block(x_nchw, w1_oihw, b1, w2_oihw, b2):
    """x_nchw: (B, C, H, W); conv weights in PyTorch OIHW layout; biases (C,)."""
    B, C, H, W = x_nchw.shape
    x = jnp.transpose(x_nchw, (0, 2, 3, 1)).astype(jnp.float32)      # NHWC

    # bf16 MXU operands at real channel counts (f32 accumulation kept via
    # preferred_element_type); tiny C stays f32 -- that regime is layout/store
    # bound, not MXU bound, and keeps the 1e-3 f32 reference check valid.
    mxu_dtype = jnp.bfloat16 if C >= _BF16_MIN_C else jnp.float32

    # OIHW -> (kh, kw, Cin, Cout) -> (9, Cin, Cout): tap-major weight layout,
    # tap = kh*3 + kw, matching the tap ordering inside the kernel.
    w1 = jnp.transpose(w1_oihw, (2, 3, 1, 0)).reshape(9, C, C).astype(mxu_dtype)
    w2 = jnp.transpose(w2_oihw, (2, 3, 1, 0)).reshape(9, C, C).astype(mxu_dtype)
    b1r = b1.reshape(1, C).astype(jnp.float32)
    b2r = b2.reshape(1, C).astype(jnp.float32)

    vmem_cap = _vmem_capacity_bytes()
    # ~48 MiB limit on v7x (64 MiB physical), ~96 MiB on v5e/v6e (128 MiB).
    vmem_limit = min(int(vmem_cap * 3 // 4), 96 * 1024 * 1024)
    weight_bytes = 2 * (9 * C * C + C) * jnp.dtype(mxu_dtype).itemsize
    budget = max(vmem_cap // 3 - weight_bytes, 2 * 1024 * 1024)
    Bt = _pick_batch_tile(B, H, W, C, budget)

    out_nhwc = pl.pallas_call(
        _resnet_block_kernel,
        out_shape=jax.ShapeDtypeStruct((B, H, W, C), jnp.float32),
        grid_spec=pltpu.PrefetchScalarGridSpec(
            num_scalar_prefetch=0,
            grid=(B // Bt,),
            in_specs=[
                pl.BlockSpec((Bt, H, W, C), lambda b: (b, 0, 0, 0)),
                pl.BlockSpec((9, C, C), lambda b: (0, 0, 0)),
                pl.BlockSpec((1, C), lambda b: (0, 0)),
                pl.BlockSpec((9, C, C), lambda b: (0, 0, 0)),
                pl.BlockSpec((1, C), lambda b: (0, 0)),
            ],
            out_specs=pl.BlockSpec((Bt, H, W, C), lambda b: (b, 0, 0, 0)),
            scratch_shapes=[
                pltpu.VMEM((Bt, H + 2, W + 2, C), jnp.float32),   # padded activation
            ],
        ),
        compiler_params=pltpu.CompilerParams(
            dimension_semantics=("parallel",),
            vmem_limit_bytes=vmem_limit,
        ),
    )(x, w1, b1r, w2, b2r)

    return jnp.transpose(out_nhwc, (0, 3, 1, 2))                # back to NCHW


# ---------------- pure-JAX reference (for correctness check) ----------------
def _conv2d_ref(x_nchw, w_oihw, b):
    y = jax.lax.conv_general_dilated(
        x_nchw, w_oihw, window_strides=(1, 1), padding="SAME",
        dimension_numbers=("NCHW", "OIHW", "NCHW"))
    return y + b[None, :, None, None]


def _resnet_block_ref(x, w1, b1, w2, b2):
    def inorm_relu(v):
        m = v.mean(axis=(2, 3), keepdims=True)
        var = ((v - m) ** 2).mean(axis=(2, 3), keepdims=True)
        return jax.nn.relu((v - m) / jnp.sqrt(var + EPS))

    h = _conv2d_ref(inorm_relu(x), w1, b1)
    h = _conv2d_ref(inorm_relu(h), w2, b2)
    return h + x


if __name__ == "__main__":
    def run_case(key, B, C, H, W):
        kx, kw1, kb1, kw2, kb2 = jax.random.split(key, 5)
        x = jax.random.normal(kx, (B, C, H, W), jnp.float32)
        w1 = 0.1 * jax.random.normal(kw1, (C, C, 3, 3), jnp.float32)
        b1 = 0.1 * jax.random.normal(kb1, (C,), jnp.float32)
        w2 = 0.1 * jax.random.normal(kw2, (C, C, 3, 3), jnp.float32)
        b2 = 0.1 * jax.random.normal(kb2, (C,), jnp.float32)

        out = jax.block_until_ready(resnet_block(x, w1, b1, w2, b2))
        ref = _resnet_block_ref(x, w1, b1, w2, b2)
        np.testing.assert_allclose(np.asarray(out), np.asarray(ref),
                                   rtol=1e-3, atol=1e-3)

    key = jax.random.PRNGKey(0)
    k1, k2 = jax.random.split(key)
    run_case(k1, B=2, C=4, H=16, W=16)   # Bt=1, grid=(2,)
    run_case(k2, B=4, C=8, H=8, W=8)     # Bt=1, grid=(4,) — deeper pipeline

    print("KERNEL_OK")
</pallas_src>

<mosaic_0001>
module attributes {stable_mosaic.version = 11 : i64} {
  func.func @_resnet_block_kernel(%arg0: i32, %arg1: memref<1x16x16x4xf32, #tpu.memory_space<vmem>>, %arg2: memref<9x4x4xf32, #tpu.memory_space<vmem>>, %arg3: memref<1x4xf32, #tpu.memory_space<vmem>>, %arg4: memref<9x4x4xf32, #tpu.memory_space<vmem>>, %arg5: memref<1x4xf32, #tpu.memory_space<vmem>>, %arg6: memref<1x16x16x4xf32, #tpu.memory_space<vmem>>, %arg7: memref<1x18x18x4xf32, #tpu.memory_space<vmem>>) attributes {dimension_semantics = [#tpu.dimension_semantics<parallel>], iteration_bounds = array<i64: 2>, scalar_prefetch = 0 : i64, scratch_operands = 1 : i64, tpu.core_type = #tpu.core_type<tc>, window_params = [{transform_indices = @transform_0, window_bounds = array<i64: 1, 16, 16, 4>}, {pipeline_mode = #tpu.pipeline_mode<synchronous>, transform_indices = @transform_1, window_bounds = array<i64: 9, 4, 4>}, {pipeline_mode = #tpu.pipeline_mode<synchronous>, transform_indices = @transform_2, window_bounds = array<i64: 1, 4>}, {pipeline_mode = #tpu.pipeline_mode<synchronous>, transform_indices = @transform_3, window_bounds = array<i64: 9, 4, 4>}, {pipeline_mode = #tpu.pipeline_mode<synchronous>, transform_indices = @transform_4, window_bounds = array<i64: 1, 4>}, {transform_indices = @transform_5, window_bounds = array<i64: 1, 16, 16, 4>}]} {
    %cst = arith.constant 0.000000e+00 : f32
    %0 = vector.broadcast %cst : f32 to vector<1x1x18x4xf32>
    %cst_0 = arith.constant 0.000000e+00 : f32
    %1 = vector.broadcast %cst_0 : f32 to vector<1x18x1x4xf32>
    %c0 = arith.constant 0 : index
    %c0_1 = arith.constant 0 : index
    %c0_2 = arith.constant 0 : index
    %c0_3 = arith.constant 0 : index
    %2 = vector.load %arg7[%c0, %c0_1, %c0_2, %c0_3] : memref<1x18x18x4xf32, #tpu.memory_space<vmem>>, vector<1x1x18x4xf32>
    tpu.vector_store %arg7[%c0, %c0_1, %c0_2, %c0_3], %0 {strides = array<i32>} : memref<1x18x18x4xf32, #tpu.memory_space<vmem>>, vector<1x1x18x4xf32>,
    %c0_4 = arith.constant 0 : index
    %c17 = arith.constant 17 : index
    %c0_5 = arith.constant 0 : index
    %c0_6 = arith.constant 0 : index
    %3 = vector.load %arg7[%c0_4, %c17, %c0_5, %c0_6] : memref<1x18x18x4xf32, #tpu.memory_space<vmem>>, vector<1x1x18x4xf32>
    tpu.vector_store %arg7[%c0_4, %c17, %c0_5, %c0_6], %0 {strides = array<i32>} : memref<1x18x18x4xf32, #tpu.memory_space<vmem>>, vector<1x1x18x4xf32>,
    %c0_7 = arith.constant 0 : index
    %c0_8 = arith.constant 0 : index
    %c0_9 = arith.constant 0 : index
    %c0_10 = arith.constant 0 : index
    %4 = vector.load %arg7[%c0_7, %c0_8, %c0_9, %c0_10] : memref<1x18x18x4xf32, #tpu.memory_space<vmem>>, vector<1x18x1x4xf32>
    tpu.vector_store %arg7[%c0_7, %c0_8, %c0_9, %c0_10], %1 {strides = array<i32>} : memref<1x18x18x4xf32, #tpu.memory_space<vmem>>, vector<1x18x1x4xf32>,
    %c0_11 = arith.constant 0 : index
    %c0_12 = arith.constant 0 : index
    %c17_13 = arith.constant 17 : index
    %c0_14 = arith.constant 0 : index
    %5 = vector.load %arg7[%c0_11, %c0_12, %c17_13, %c0_14] : memref<1x18x18x4xf32, #tpu.memory_space<vmem>>, vector<1x18x1x4xf32>
    tpu.vector_store %arg7[%c0_11, %c0_12, %c17_13, %c0_14], %1 {strides = array<i32>} : memref<1x18x18x4xf32, #tpu.memory_space<vmem>>, vector<1x18x1x4xf32>,
    %c0_15 = arith.constant 0 : index
    %c0_16 = arith.constant 0 : index
    %c0_17 = arith.constant 0 : index
    %c0_18 = arith.constant 0 : index
    %6 = vector.load %arg1[%c0_15, %c0_16, %c0_17, %c0_18] : memref<1x16x16x4xf32, #tpu.memory_space<vmem>>, vector<1x16x16x4xf32>
    %cst_19 = arith.constant dense<0.000000e+00> : vector<1x4xf32>
    %7 = vector.multi_reduction <add>, %6, %cst_19 [1, 2] : vector<1x16x16x4xf32> to vector<1x4xf32>
    %8 = vector.shape_cast %7 : vector<1x4xf32> to vector<1x1x1x4xf32>
    %cst_20 = arith.constant 3.906250e-03 : f32
    %9 = vector.broadcast %cst_20 : f32 to vector<1x1x1x4xf32>
    %10 = arith.mulf %8, %9 : vector<1x1x1x4xf32>
    %11 = arith.mulf %6, %6 : vector<1x16x16x4xf32>
    %cst_21 = arith.constant dense<0.000000e+00> : vector<1x4xf32>
    %12 = vector.multi_reduction <add>, %11, %cst_21 [1, 2] : vector<1x16x16x4xf32> to vector<1x4xf32>
    %13 = vector.shape_cast %12 : vector<1x4xf32> to vector<1x1x1x4xf32>
    %cst_22 = arith.constant 3.906250e-03 : f32
    %14 = vector.broadcast %cst_22 : f32 to vector<1x1x1x4xf32>
    %15 = arith.mulf %13, %14 : vector<1x1x1x4xf32>
    %16 = arith.mulf %10, %10 : vector<1x1x1x4xf32>
    %17 = arith.subf %15, %16 : vector<1x1x1x4xf32>
    %cst_23 = arith.constant 0.000000e+00 : f32
    %18 = vector.broadcast %cst_23 : f32 to vector<1x1x1x4xf32>
    %19 = arith.maximumf %17, %18 : vector<1x1x1x4xf32>
    %20 = vector.broadcast %10 : vector<1x1x1x4xf32> to vector<1x16x16x4xf32>
    %21 = arith.subf %6, %20 : vector<1x16x16x4xf32>
    %cst_24 = arith.constant 9.99999974E-6 : f32
    %22 = vector.broadcast %cst_24 : f32 to vector<1x1x1x4xf32>
    %23 = arith.addf %19, %22 : vector<1x1x1x4xf32>
    %24 = math.rsqrt %23 : vector<1x1x1x4xf32>
    %25 = vector.broadcast %24 : vector<1x1x1x4xf32> to vector<1x16x16x4xf32>
    %26 = arith.mulf %21, %25 : vector<1x16x16x4xf32>
    %cst_25 = arith.constant 0.000000e+00 : f32
    %27 = vector.broadcast %cst_25 : f32 to vector<1x16x16x4xf32>
    %28 = arith.maximumf %26, %27 : vector<1x16x16x4xf32>
    %c0_26 = arith.constant 0 : index
    %c1 = arith.constant 1 : index
    %c1_27 = arith.constant 1 : index
    %c0_28 = arith.constant 0 : index
    %29 = vector.load %arg7[%c0_26, %c1, %c1_27, %c0_28] : memref<1x18x18x4xf32, #tpu.memory_space<vmem>>, vector<1x16x16x4xf32>
    tpu.vector_store %arg7[%c0_26, %c1, %c1_27, %c0_28], %28 {strides = array<i32>} : memref<1x18x18x4xf32, #tpu.memory_space<vmem>>, vector<1x16x16x4xf32>,
    %cst_29 = arith.constant 0.000000e+00 : f32
    %30 = vector.broadcast %cst_29 : f32 to vector<256x4xf32>
    %c0_30 = arith.constant 0 : index
    %c0_31 = arith.constant 0 : index
    %c0_32 = arith.constant 0 : index
    %c0_33 = arith.constant 0 : index
    %31 = vector.load %arg7[%c0_30, %c0_31, %c0_32, %c0_33] : memref<1x18x18x4xf32, #tpu.memory_space<vmem>>, vector<1x16x16x4xf32>
    %32 = vector.shape_cast %31 : vector<1x16x16x4xf32> to vector<256x4xf32>
    %c0_34 = arith.constant 0 : index
    %c0_35 = arith.constant 0 : index
    %c0_36 = arith.constant 0 : index
    %33 = vector.load %arg2[%c0_34, %c0_35, %c0_36] : memref<9x4x4xf32, #tpu.memory_space<vmem>>, vector<1x4x4xf32>
    %34 = vector.shape_cast %33 : vector<1x4x4xf32> to vector<4x4xf32>
    %cst_37 = arith.constant dense<0.000000e+00> : vector<256x4xf32>
    %35 = tpu.matmul %32, %34, %cst_37 {dimension_numbers = #tpu.dot_dimension_numbers<[1], [0], [0], [1], [0, 0, 1, 1], [], []>} : vector<256x4xf32>, vector<4x4xf32>, vector<256x4xf32> -> vector<256x4xf32>
    %36 = arith.addf %30, %35 : vector<256x4xf32>
    %c0_38 = arith.constant 0 : index
    %c0_39 = arith.constant 0 : index
    %c1_40 = arith.constant 1 : index
    %c0_41 = arith.constant 0 : index
    %37 = vector.load %arg7[%c0_38, %c0_39, %c1_40, %c0_41] : memref<1x18x18x4xf32, #tpu.memory_space<vmem>>, vector<1x16x16x4xf32>
    %38 = vector.shape_cast %37 : vector<1x16x16x4xf32> to vector<256x4xf32>
    %c1_42 = arith.constant 1 : index
    %c0_43 = arith.constant 0 : index
    %c0_44 = arith.constant 0 : index
    %39 = vector.load %arg2[%c1_42, %c0_43, %c0_44] : memref<9x4x4xf32, #tpu.memory_space<vmem>>, vector<1x4x4xf32>
    %40 = vector.shape_cast %39 : vector<1x4x4xf32> to vector<4x4xf32>
    %cst_45 = arith.constant dense<0.000000e+00> : vector<256x4xf32>
    %41 = tpu.matmul %38, %40, %cst_45 {dimension_numbers = #tpu.dot_dimension_numbers<[1], [0], [0], [1], [0, 0, 1, 1], [], []>} : vector<256x4xf32>, vector<4x4xf32>, vector<256x4xf32> -> vector<256x4xf32>
    %42 = arith.addf %36, %41 : vector<256x4xf32>
    %c0_46 = arith.constant 0 : index
    %c0_47 = arith.constant 0 : index
    %c2 = arith.constant 2 : index
    %c0_48 = arith.constant 0 : index
    %43 = vector.load %arg7[%c0_46, %c0_47, %c2, %c0_48] : memref<1x18x18x4xf32, #tpu.memory_space<vmem>>, vector<1x16x16x4xf32>
    %44 = vector.shape_cast %43 : vector<1x16x16x4xf32> to vector<256x4xf32>
    %c2_49 = arith.constant 2 : index
    %c0_50 = arith.constant 0 : index
    %c0_51 = arith.constant 0 : index
    %45 = vector.load %arg2[%c2_49, %c0_50, %c0_51] : memref<9x4x4xf32, #tpu.memory_space<vmem>>, vector<1x4x4xf32>
    %46 = vector.shape_cast %45 : vector<1x4x4xf32> to vector<4x4xf32>
    %cst_52 = arith.constant dense<0.000000e+00> : vector<256x4xf32>
    %47 = tpu.matmul %44, %46, %cst_52 {dimension_numbers = #tpu.dot_dimension_numbers<[1], [0], [0], [1], [0, 0, 1, 1], [], []>} : vector<256x4xf32>, vector<4x4xf32>, vector<256x4xf32> -> vector<256x4xf32>
    %48 = arith.addf %42, %47 : vector<256x4xf32>
    %c0_53 = arith.constant 0 : index
    %c1_54 = arith.constant 1 : index
    %c0_55 = arith.constant 0 : index
    %c0_56 = arith.constant 0 : index
    %49 = vector.load %arg7[%c0_53, %c1_54, %c0_55, %c0_56] : memref<1x18x18x4xf32, #tpu.memory_space<vmem>>, vector<1x16x16x4xf32>
    %50 = vector.shape_cast %49 : vector<1x16x16x4xf32> to vector<256x4xf32>
    %c3 = arith.constant 3 : index
    %c0_57 = arith.constant 0 : index
    %c0_58 = arith.constant 0 : index
    %51 = vector.load %arg2[%c3, %c0_57, %c0_58] : memref<9x4x4xf32, #tpu.memory_space<vmem>>, vector<1x4x4xf32>
    %52 = vector.shape_cast %51 : vector<1x4x4xf32> to vector<4x4xf32>
    %cst_59 = arith.constant dense<0.000000e+00> : vector<256x4xf32>
    %53 = tpu.matmul %50, %52, %cst_59 {dimension_numbers = #tpu.dot_dimension_numbers<[1], [0], [0], [1], [0, 0, 1, 1], [], []>} : vector<256x4xf32>, vector<4x4xf32>, vector<256x4xf32> -> vector<256x4xf32>
    %54 = arith.addf %48, %53 : vector<256x4xf32>
    %c0_60 = arith.constant 0 : index
    %c1_61 = arith.constant 1 : index
    %c1_62 = arith.constant 1 : index
    %c0_63 = arith.constant 0 : index
    %55 = vector.load %arg7[%c0_60, %c1_61, %c1_62, %c0_63] : memref<1x18x18x4xf32, #tpu.memory_space<vmem>>, vector<1x16x16x4xf32>
    %56 = vector.shape_cast %55 : vector<1x16x16x4xf32> to vector<256x4xf32>
    %c4 = arith.constant 4 : index
    %c0_64 = arith.constant 0 : index
    %c0_65 = arith.constant 0 : index
    %57 = vector.load %arg2[%c4, %c0_64, %c0_65] : memref<9x4x4xf32, #tpu.memory_space<vmem>>, vector<1x4x4xf32>
    %58 = vector.shape_cast %57 : vector<1x4x4xf32> to vector<4x4xf32>
    %cst_66 = arith.constant dense<0.000000e+00> : vector<256x4xf32>
    %59 = tpu.matmul %56, %58, %cst_66 {dimension_numbers = #tpu.dot_dimension_numbers<[1], [0], [0], [1], [0, 0, 1, 1], [], []>} : vector<256x4xf32>, vector<4x4xf32>, vector<256x4xf32> -> vector<256x4xf32>
    %60 = arith.addf %54, %59 : vector<256x4xf32>
    %c0_67 = arith.constant 0 : index
    %c1_68 = arith.constant 1 : index
    %c2_69 = arith.constant 2 : index
    %c0_70 = arith.constant 0 : index
    %61 = vector.load %arg7[%c0_67, %c1_68, %c2_69, %c0_70] : memref<1x18x18x4xf32, #tpu.memory_space<vmem>>, vector<1x16x16x4xf32>
    %62 = vector.shape_cast %61 : vector<1x16x16x4xf32> to vector<256x4xf32>
    %c5 = arith.constant 5 : index
    %c0_71 = arith.constant 0 : index
    %c0_72 = arith.constant 0 : index
    %63 = vector.load %arg2[%c5, %c0_71, %c0_72] : memref<9x4x4xf32, #tpu.memory_space<vmem>>, vector<1x4x4xf32>
    %64 = vector.shape_cast %63 : vector<1x4x4xf32> to vector<4x4xf32>
    %cst_73 = arith.constant dense<0.000000e+00> : vector<256x4xf32>
    %65 = tpu.matmul %62, %64, %cst_73 {dimension_numbers = #tpu.dot_dimension_numbers<[1], [0], [0], [1], [0, 0, 1, 1], [], []>} : vector<256x4xf32>, vector<4x4xf32>, vector<256x4xf32> -> vector<256x4xf32>
    %66 = arith.addf %60, %65 : vector<256x4xf32>
    %c0_74 = arith.constant 0 : index
    %c2_75 = arith.constant 2 : index
    %c0_76 = arith.constant 0 : index
    %c0_77 = arith.constant 0 : index
    %67 = vector.load %arg7[%c0_74, %c2_75, %c0_76, %c0_77] : memref<1x18x18x4xf32, #tpu.memory_space<vmem>>, vector<1x16x16x4xf32>
    %68 = vector.shape_cast %67 : vector<1x16x16x4xf32> to vector<256x4xf32>
    %c6 = arith.constant 6 : index
    %c0_78 = arith.constant 0 : index
    %c0_79 = arith.constant 0 : index
    %69 = vector.load %arg2[%c6, %c0_78, %c0_79] : memref<9x4x4xf32, #tpu.memory_space<vmem>>, vector<1x4x4xf32>
    %70 = vector.shape_cast %69 : vector<1x4x4xf32> to vector<4x4xf32>
    %cst_80 = arith.constant dense<0.000000e+00> : vector<256x4xf32>
    %71 = tpu.matmul %68, %70, %cst_80 {dimension_numbers = #tpu.dot_dimension_numbers<[1], [0], [0], [1], [0, 0, 1, 1], [], []>} : vector<256x4xf32>, vector<4x4xf32>, vector<256x4xf32> -> vector<256x4xf32>
    %72 = arith.addf %66, %71 : vector<256x4xf32>
    %c0_81 = arith.constant 0 : index
    %c2_82 = arith.constant 2 : index
    %c1_83 = arith.constant 1 : index
    %c0_84 = arith.constant 0 : index
    %73 = vector.load %arg7[%c0_81, %c2_82, %c1_83, %c0_84] : memref<1x18x18x4xf32, #tpu.memory_space<vmem>>, vector<1x16x16x4xf32>
    %74 = vector.shape_cast %73 : vector<1x16x16x4xf32> to vector<256x4xf32>
    %c7 = arith.constant 7 : index
    %c0_85 = arith.constant 0 : index
    %c0_86 = arith.constant 0 : index
    %75 = vector.load %arg2[%c7, %c0_85, %c0_86] : memref<9x4x4xf32, #tpu.memory_space<vmem>>, vector<1x4x4xf32>
    %76 = vector.shape_cast %75 : vector<1x4x4xf32> to vector<4x4xf32>
    %cst_87 = arith.constant dense<0.000000e+00> : vector<256x4xf32>
    %77 = tpu.matmul %74, %76, %cst_87 {dimension_numbers = #tpu.dot_dimension_numbers<[1], [0], [0], [1], [0, 0, 1, 1], [], []>} : vector<256x4xf32>, vector<4x4xf32>, vector<256x4xf32> -> vector<256x4xf32>
    %78 = arith.addf %72, %77 : vector<256x4xf32>
    %c0_88 = arith.constant 0 : index
    %c2_89 = arith.constant 2 : index
    %c2_90 = arith.constant 2 : index
    %c0_91 = arith.constant 0 : index
    %79 = vector.load %arg7[%c0_88, %c2_89, %c2_90, %c0_91] : memref<1x18x18x4xf32, #tpu.memory_space<vmem>>, vector<1x16x16x4xf32>
    %80 = vector.shape_cast %79 : vector<1x16x16x4xf32> to vector<256x4xf32>
    %c8 = arith.constant 8 : index
    %c0_92 = arith.constant 0 : index
    %c0_93 = arith.constant 0 : index
    %81 = vector.load %arg2[%c8, %c0_92, %c0_93] : memref<9x4x4xf32, #tpu.memory_space<vmem>>, vector<1x4x4xf32>
    %82 = vector.shape_cast %81 : vector<1x4x4xf32> to vector<4x4xf32>
    %cst_94 = arith.constant dense<0.000000e+00> : vector<256x4xf32>
    %83 = tpu.matmul %80, %82, %cst_94 {dimension_numbers = #tpu.dot_dimension_numbers<[1], [0], [0], [1], [0, 0, 1, 1], [], []>} : vector<256x4xf32>, vector<4x4xf32>, vector<256x4xf32> -> vector<256x4xf32>
    %84 = arith.addf %78, %83 : vector<256x4xf32>
    %c0_95 = arith.constant 0 : index
    %c0_96 = arith.constant 0 : index
    %85 = vector.load %arg3[%c0_95, %c0_96] : memref<1x4xf32, #tpu.memory_space<vmem>>, vector<1x4xf32>
    %86 = vector.broadcast %85 : vector<1x4xf32> to vector<256x4xf32>
    %87 = arith.addf %84, %86 : vector<256x4xf32>
    %88 = vector.shape_cast %87 : vector<256x4xf32> to vector<1x16x16x4xf32>
    %cst_97 = arith.constant dense<0.000000e+00> : vector<1x4xf32>
    %89 = vector.multi_reduction <add>, %88, %cst_97 [1, 2] : vector<1x16x16x4xf32> to vector<1x4xf32>
    %90 = vector.shape_cast %89 : vector<1x4xf32> to vector<1x1x1x4xf32>
    %cst_98 = arith.constant 3.906250e-03 : f32
    %91 = vector.broadcast %cst_98 : f32 to vector<1x1x1x4xf32>
    %92 = arith.mulf %90, %91 : vector<1x1x1x4xf32>
    %93 = arith.mulf %88, %88 : vector<1x16x16x4xf32>
    %cst_99 = arith.constant dense<0.000000e+00> : vector<1x4xf32>
    %94 = vector.multi_reduction <add>, %93, %cst_99 [1, 2] : vector<1x16x16x4xf32> to vector<1x4xf32>
    %95 = vector.shape_cast %94 : vector<1x4xf32> to vector<1x1x1x4xf32>
    %cst_100 = arith.constant 3.906250e-03 : f32
    %96 = vector.broadcast %cst_100 : f32 to vector<1x1x1x4xf32>
    %97 = arith.mulf %95, %96 : vector<1x1x1x4xf32>
    %98 = arith.mulf %92, %92 : vector<1x1x1x4xf32>
    %99 = arith.subf %97, %98 : vector<1x1x1x4xf32>
    %cst_101 = arith.constant 0.000000e+00 : f32
    %100 = vector.broadcast %cst_101 : f32 to vector<1x1x1x4xf32>
    %101 = arith.maximumf %99, %100 : vector<1x1x1x4xf32>
    %102 = vector.broadcast %92 : vector<1x1x1x4xf32> to vector<1x16x16x4xf32>
    %103 = arith.subf %88, %102 : vector<1x16x16x4xf32>
    %cst_102 = arith.constant 9.99999974E-6 : f32
    %104 = vector.broadcast %cst_102 : f32 to vector<1x1x1x4xf32>
    %105 = arith.addf %101, %104 : vector<1x1x1x4xf32>
    %106 = math.rsqrt %105 : vector<1x1x1x4xf32>
    %107 = vector.broadcast %106 : vector<1x1x1x4xf32> to vector<1x16x16x4xf32>
    %108 = arith.mulf %103, %107 : vector<1x16x16x4xf32>
    %cst_103 = arith.constant 0.000000e+00 : f32
    %109 = vector.broadcast %cst_103 : f32 to vector<1x16x16x4xf32>
    %110 = arith.maximumf %108, %109 : vector<1x16x16x4xf32>
    %c0_104 = arith.constant 0 : index
    %c1_105 = arith.constant 1 : index
    %c1_106 = arith.constant 1 : index
    %c0_107 = arith.constant 0 : index
    %111 = vector.load %arg7[%c0_104, %c1_105, %c1_106, %c0_107] : memref<1x18x18x4xf32, #tpu.memory_space<vmem>>, vector<1x16x16x4xf32>
    tpu.vector_store %arg7[%c0_104, %c1_105, %c1_106, %c0_107], %110 {strides = array<i32>} : memref<1x18x18x4xf32, #tpu.memory_space<vmem>>, vector<1x16x16x4xf32>,
    %cst_108 = arith.constant 0.000000e+00 : f32
    %112 = vector.broadcast %cst_108 : f32 to vector<256x4xf32>
    %c0_109 = arith.constant 0 : index
    %c0_110 = arith.constant 0 : index
    %c0_111 = arith.constant 0 : index
    %c0_112 = arith.constant 0 : index
    %113 = vector.load %arg7[%c0_109, %c0_110, %c0_111, %c0_112] : memref<1x18x18x4xf32, #tpu.memory_space<vmem>>, vector<1x16x16x4xf32>
    %114 = vector.shape_cast %113 : vector<1x16x16x4xf32> to vector<256x4xf32>
    %c0_113 = arith.constant 0 : index
    %c0_114 = arith.constant 0 : index
    %c0_115 = arith.constant 0 : index
    %115 = vector.load %arg4[%c0_113, %c0_114, %c0_115] : memref<9x4x4xf32, #tpu.memory_space<vmem>>, vector<1x4x4xf32>
    %116 = vector.shape_cast %115 : vector<1x4x4xf32> to vector<4x4xf32>
    %cst_116 = arith.constant dense<0.000000e+00> : vector<256x4xf32>
    %117 = tpu.matmul %114, %116, %cst_116 {dimension_numbers = #tpu.dot_dimension_numbers<[1], [0], [0], [1], [0, 0, 1, 1], [], []>} : vector<256x4xf32>, vector<4x4xf32>, vector<256x4xf32> -> vector<256x4xf32>
    %118 = arith.addf %112, %117 : vector<256x4xf32>
    %c0_117 = arith.constant 0 : index
    %c0_118 = arith.constant 0 : index
    %c1_119 = arith.constant 1 : index
    %c0_120 = arith.constant 0 : index
    %119 = vector.load %arg7[%c0_117, %c0_118, %c1_119, %c0_120] : memref<1x18x18x4xf32, #tpu.memory_space<vmem>>, vector<1x16x16x4xf32>
    %120 = vector.shape_cast %119 : vector<1x16x16x4xf32> to vector<256x4xf32>
    %c1_121 = arith.constant 1 : index
    %c0_122 = arith.constant 0 : index
    %c0_123 = arith.constant 0 : index
    %121 = vector.load %arg4[%c1_121, %c0_122, %c0_123] : memref<9x4x4xf32, #tpu.memory_space<vmem>>, vector<1x4x4xf32>
    %122 = vector.shape_cast %121 : vector<1x4x4xf32> to vector<4x4xf32>
    %cst_124 = arith.constant dense<0.000000e+00> : vector<256x4xf32>
    %123 = tpu.matmul %120, %122, %cst_124 {dimension_numbers = #tpu.dot_dimension_numbers<[1], [0], [0], [1], [0, 0, 1, 1], [], []>} : vector<256x4xf32>, vector<4x4xf32>, vector<256x4xf32> -> vector<256x4xf32>
    %124 = arith.addf %118, %123 : vector<256x4xf32>
    %c0_125 = arith.constant 0 : index
    %c0_126 = arith.constant 0 : index
    %c2_127 = arith.constant 2 : index
    %c0_128 = arith.constant 0 : index
    %125 = vector.load %arg7[%c0_125, %c0_126, %c2_127, %c0_128] : memref<1x18x18x4xf32, #tpu.memory_space<vmem>>, vector<1x16x16x4xf32>
    %126 = vector.shape_cast %125 : vector<1x16x16x4xf32> to vector<256x4xf32>
    %c2_129 = arith.constant 2 : index
    %c0_130 = arith.constant 0 : index
    %c0_131 = arith.constant 0 : index
    %127 = vector.load %arg4[%c2_129, %c0_130, %c0_131] : memref<9x4x4xf32, #tpu.memory_space<vmem>>, vector<1x4x4xf32>
    %128 = vector.shape_cast %127 : vector<1x4x4xf32> to vector<4x4xf32>
    %cst_132 = arith.constant dense<0.000000e+00> : vector<256x4xf32>
    %129 = tpu.matmul %126, %128, %cst_132 {dimension_numbers = #tpu.dot_dimension_numbers<[1], [0], [0], [1], [0, 0, 1, 1], [], []>} : vector<256x4xf32>, vector<4x4xf32>, vector<256x4xf32> -> vector<256x4xf32>
    %130 = arith.addf %124, %129 : vector<256x4xf32>
    %c0_133 = arith.constant 0 : index
    %c1_134 = arith.constant 1 : index
    %c0_135 = arith.constant 0 : index
    %c0_136 = arith.constant 0 : index
    %131 = vector.load %arg7[%c0_133, %c1_134, %c0_135, %c0_136] : memref<1x18x18x4xf32, #tpu.memory_space<vmem>>, vector<1x16x16x4xf32>
    %132 = vector.shape_cast %131 : vector<1x16x16x4xf32> to vector<256x4xf32>
    %c3_137 = arith.constant 3 : index
    %c0_138 = arith.constant 0 : index
    %c0_139 = arith.constant 0 : index
    %133 = vector.load %arg4[%c3_137, %c0_138, %c0_139] : memref<9x4x4xf32, #tpu.memory_space<vmem>>, vector<1x4x4xf32>
    %134 = vector.shape_cast %133 : vector<1x4x4xf32> to vector<4x4xf32>
    %cst_140 = arith.constant dense<0.000000e+00> : vector<256x4xf32>
    %135 = tpu.matmul %132, %134, %cst_140 {dimension_numbers = #tpu.dot_dimension_numbers<[1], [0], [0], [1], [0, 0, 1, 1], [], []>} : vector<256x4xf32>, vector<4x4xf32>, vector<256x4xf32> -> vector<256x4xf32>
    %136 = arith.addf %130, %135 : vector<256x4xf32>
    %c0_141 = arith.constant 0 : index
    %c1_142 = arith.constant 1 : index
    %c1_143 = arith.constant 1 : index
    %c0_144 = arith.constant 0 : index
    %137 = vector.load %arg7[%c0_141, %c1_142, %c1_143, %c0_144] : memref<1x18x18x4xf32, #tpu.memory_space<vmem>>, vector<1x16x16x4xf32>
    %138 = vector.shape_cast %137 : vector<1x16x16x4xf32> to vector<256x4xf32>
    %c4_145 = arith.constant 4 : index
    %c0_146 = arith.constant 0 : index
    %c0_147 = arith.constant 0 : index
    %139 = vector.load %arg4[%c4_145, %c0_146, %c0_147] : memref<9x4x4xf32, #tpu.memory_space<vmem>>, vector<1x4x4xf32>
    %140 = vector.shape_cast %139 : vector<1x4x4xf32> to vector<4x4xf32>
    %cst_148 = arith.constant dense<0.000000e+00> : vector<256x4xf32>
    %141 = tpu.matmul %138, %140, %cst_148 {dimension_numbers = #tpu.dot_dimension_numbers<[1], [0], [0], [1], [0, 0, 1, 1], [], []>} : vector<256x4xf32>, vector<4x4xf32>, vector<256x4xf32> -> vector<256x4xf32>
    %142 = arith.addf %136, %141 : vector<256x4xf32>
    %c0_149 = arith.constant 0 : index
    %c1_150 = arith.constant 1 : index
    %c2_151 = arith.constant 2 : index
    %c0_152 = arith.constant 0 : index
    %143 = vector.load %arg7[%c0_149, %c1_150, %c2_151, %c0_152] : memref<1x18x18x4xf32, #tpu.memory_space<vmem>>, vector<1x16x16x4xf32>
    %144 = vector.shape_cast %143 : vector<1x16x16x4xf32> to vector<256x4xf32>
    %c5_153 = arith.constant 5 : index
    %c0_154 = arith.constant 0 : index
    %c0_155 = arith.constant 0 : index
    %145 = vector.load %arg4[%c5_153, %c0_154, %c0_155] : memref<9x4x4xf32, #tpu.memory_space<vmem>>, vector<1x4x4xf32>
    %146 = vector.shape_cast %145 : vector<1x4x4xf32> to vector<4x4xf32>
    %cst_156 = arith.constant dense<0.000000e+00> : vector<256x4xf32>
    %147 = tpu.matmul %144, %146, %cst_156 {dimension_numbers = #tpu.dot_dimension_numbers<[1], [0], [0], [1], [0, 0, 1, 1], [], []>} : vector<256x4xf32>, vector<4x4xf32>, vector<256x4xf32> -> vector<256x4xf32>
    %148 = arith.addf %142, %147 : vector<256x4xf32>
    %c0_157 = arith.constant 0 : index
    %c2_158 = arith.constant 2 : index
    %c0_159 = arith.constant 0 : index
    %c0_160 = arith.constant 0 : index
    %149 = vector.load %arg7[%c0_157, %c2_158, %c0_159, %c0_160] : memref<1x18x18x4xf32, #tpu.memory_space<vmem>>, vector<1x16x16x4xf32>
    %150 = vector.shape_cast %149 : vector<1x16x16x4xf32> to vector<256x4xf32>
    %c6_161 = arith.constant 6 : index
    %c0_162 = arith.constant 0 : index
    %c0_163 = arith.constant 0 : index
    %151 = vector.load %arg4[%c6_161, %c0_162, %c0_163] : memref<9x4x4xf32, #tpu.memory_space<vmem>>, vector<1x4x4xf32>
    %152 = vector.shape_cast %151 : vector<1x4x4xf32> to vector<4x4xf32>
    %cst_164 = arith.constant dense<0.000000e+00> : vector<256x4xf32>
    %153 = tpu.matmul %150, %152, %cst_164 {dimension_numbers = #tpu.dot_dimension_numbers<[1], [0], [0], [1], [0, 0, 1, 1], [], []>} : vector<256x4xf32>, vector<4x4xf32>, vector<256x4xf32> -> vector<256x4xf32>
    %154 = arith.addf %148, %153 : vector<256x4xf32>
    %c0_165 = arith.constant 0 : index
    %c2_166 = arith.constant 2 : index
    %c1_167 = arith.constant 1 : index
    %c0_168 = arith.constant 0 : index
    %155 = vector.load %arg7[%c0_165, %c2_166, %c1_167, %c0_168] : memref<1x18x18x4xf32, #tpu.memory_space<vmem>>, vector<1x16x16x4xf32>
    %156 = vector.shape_cast %155 : vector<1x16x16x4xf32> to vector<256x4xf32>
    %c7_169 = arith.constant 7 : index
    %c0_170 = arith.constant 0 : index
    %c0_171 = arith.constant 0 : index
    %157 = vector.load %arg4[%c7_169, %c0_170, %c0_171] : memref<9x4x4xf32, #tpu.memory_space<vmem>>, vector<1x4x4xf32>
    %158 = vector.shape_cast %157 : vector<1x4x4xf32> to vector<4x4xf32>
    %cst_172 = arith.constant dense<0.000000e+00> : vector<256x4xf32>
    %159 = tpu.matmul %156, %158, %cst_172 {dimension_numbers = #tpu.dot_dimension_numbers<[1], [0], [0], [1], [0, 0, 1, 1], [], []>} : vector<256x4xf32>, vector<4x4xf32>, vector<256x4xf32> -> vector<256x4xf32>
    %160 = arith.addf %154, %159 : vector<256x4xf32>
    %c0_173 = arith.constant 0 : index
    %c2_174 = arith.constant 2 : index
    %c2_175 = arith.constant 2 : index
    %c0_176 = arith.constant 0 : index
    %161 = vector.load %arg7[%c0_173, %c2_174, %c2_175, %c0_176] : memref<1x18x18x4xf32, #tpu.memory_space<vmem>>, vector<1x16x16x4xf32>
    %162 = vector.shape_cast %161 : vector<1x16x16x4xf32> to vector<256x4xf32>
    %c8_177 = arith.constant 8 : index
    %c0_178 = arith.constant 0 : index
    %c0_179 = arith.constant 0 : index
    %163 = vector.load %arg4[%c8_177, %c0_178, %c0_179] : memref<9x4x4xf32, #tpu.memory_space<vmem>>, vector<1x4x4xf32>
    %164 = vector.shape_cast %163 : vector<1x4x4xf32> to vector<4x4xf32>
    %cst_180 = arith.constant dense<0.000000e+00> : vector<256x4xf32>
    %165 = tpu.matmul %162, %164, %cst_180 {dimension_numbers = #tpu.dot_dimension_numbers<[1], [0], [0], [1], [0, 0, 1, 1], [], []>} : vector<256x4xf32>, vector<4x4xf32>, vector<256x4xf32> -> vector<256x4xf32>
    %166 = arith.addf %160, %165 : vector<256x4xf32>
    %c0_181 = arith.constant 0 : index
    %c0_182 = arith.constant 0 : index
    %167 = vector.load %arg5[%c0_181, %c0_182] : memref<1x4xf32, #tpu.memory_space<vmem>>, vector<1x4xf32>
    %168 = vector.broadcast %167 : vector<1x4xf32> to vector<256x4xf32>
    %169 = arith.addf %166, %168 : vector<256x4xf32>
    %170 = vector.shape_cast %169 : vector<256x4xf32> to vector<1x16x16x4xf32>
    %171 = arith.addf %170, %6 : vector<1x16x16x4xf32>
    %c0_183 = arith.constant 0 : index
    %c0_184 = arith.constant 0 : index
    %c0_185 = arith.constant 0 : index
    %c0_186 = arith.constant 0 : index
    %172 = vector.load %arg6[%c0_183, %c0_184, %c0_185, %c0_186] : memref<1x16x16x4xf32, #tpu.memory_space<vmem>>, vector<1x16x16x4xf32>
    tpu.vector_store %arg6[%c0_183, %c0_184, %c0_185, %c0_186], %171 {strides = array<i32>} : memref<1x16x16x4xf32, #tpu.memory_space<vmem>>, vector<1x16x16x4xf32>,
    return
  }
  func.func @transform_0(%arg0: i32) -> (i32, i32, i32, i32) {
    %c0_i32 = arith.constant 0 : i32
    %c0_i32_0 = arith.constant 0 : i32
    %c0_i32_1 = arith.constant 0 : i32
    %c0_i32_2 = arith.constant 0 : i32
    return %arg0, %c0_i32, %c0_i32_0, %c0_i32_1 : i32, i32, i32, i32
  }
  func.func @transform_1(%arg0: i32) -> (i32, i32, i32) {
    %c0_i32 = arith.constant 0 : i32
    %c0_i32_0 = arith.constant 0 : i32
    %c0_i32_1 = arith.constant 0 : i32
    %c0_i32_2 = arith.constant 0 : i32
    return %c0_i32, %c0_i32_0, %c0_i32_1 : i32, i32, i32
  }
  func.func @transform_2(%arg0: i32) -> (i32, i32) {
    %c0_i32 = arith.constant 0 : i32
    %c0_i32_0 = arith.constant 0 : i32
    %c0_i32_1 = arith.constant 0 : i32
    return %c0_i32, %c0_i32_0 : i32, i32
  }
  func.func @transform_3(%arg0: i32) -> (i32, i32, i32) {
    %c0_i32 = arith.constant 0 : i32
    %c0_i32_0 = arith.constant 0 : i32
    %c0_i32_1 = arith.constant 0 : i32
    %c0_i32_2 = arith.constant 0 : i32
    return %c0_i32, %c0_i32_0, %c0_i32_1 : i32, i32, i32
  }
  func.func @transform_4(%arg0: i32) -> (i32, i32) {
    %c0_i32 = arith.constant 0 : i32
    %c0_i32_0 = arith.constant 0 : i32
    %c0_i32_1 = arith.constant 0 : i32
    return %c0_i32, %c0_i32_0 : i32, i32
  }
  func.func @transform_5(%arg0: i32) -> (i32, i32, i32, i32) {
    %c0_i32 = arith.constant 0 : i32
    %c0_i32_0 = arith.constant 0 : i32
    %c0_i32_1 = arith.constant 0 : i32
    %c0_i32_2 = arith.constant 0 : i32
    return %arg0, %c0_i32, %c0_i32_0, %c0_i32_1 : i32, i32, i32, i32
  }
}

</mosaic_0001>

<bundles_post_ra>
// kernel: resnet_block.1
= control target key start
LH: loop header
LB: loop body
LE: loop exit
PB: predicated region body
PF: predicated region fallthrough
CT: control target
= control target key end

     0   :  { %s10718_s18 = smov 0   ;;  %s13378_s0 = inlined_call_operand.vmem [shape: f32[2,16,16,4], index: 0, kind: input, shape index: {}]   ;;  %s13379_s1 = inlined_call_operand.vmem [shape: f32[9,4,4], index: 1, kind: input, shape index: {}]   ;;  %s13380_s2 = inlined_call_operand.vmem [shape: f32[1,4], index: 2, kind: input, shape index: {}]   ;;  %s13381_s3 = inlined_call_operand.vmem [shape: f32[9,4,4], index: 3, kind: input, shape index: {}]   ;;  %s13382_s4 = inlined_call_operand.vmem [shape: f32[1,4], index: 4, kind: input, shape index: {}]   ;;  %s13383_s5 = inlined_call_operand.vmem [shape: f32[2,16,16,4], index: 5, kind: output, shape index: {}]  }
   0x1 LB: > { %s8003_s19 = sadd.s32 4294967295, %s10685_s18   ;;  %p8007_p0 = scmp.ge.s32.totalorder %s10685_s18, 1  ;;  %s10685_s18 = sphi %s10718_s18, %s15_s18  }
   0x2   : > { %p187_p1 = scmp.lt.s32.totalorder %s10685_s18, 3 }
   0x4   : > { %p188_p2 = pnand %p8007_p0, %p187_p1 }
   0x6   : > { %191 = sbr.rel (%p188_p2) target bundleno = 1761 (0x6e1), region = 40 }
   0xd   : > { %v8012_v0 = vld [vmem:[%s13379_s1 + $0x4] sm:$0xf]  ;;  %vm772_vm0 = vcmask 1043456   ;;  %vm225_vm1 = vcmask 31744   ;;  %vm228_vm2 = vcmask 25600   ;;  %v10687_v1 = vmov 0.0  }
   0xe   : > { %9222 = vmatprep.subr.msk.mxu0 %vm772_vm0, %v8012_v0  ;;  %226 = vst.msk [vmem:[#allocation2] sm:$0xff] %vm225_vm1, %v10687_v1  ;;  %227 = vst.msk [vmem:[#allocation2 + $0x8] sm:$0xff] %vm225_vm1, %v10687_v1  ;;  %v641_v2 = vld [vmem:[%s13379_s1] sm:$0xf]  ;;  %p215_p3 = scmp.lt.s32.totalorder %s8003_s19, 1  ;;  %vm234_vm3 = vcmask 24576  }
   0xf   : > { %231 = vst.msk [vmem:[#allocation2 + $0x198] sm:$0xff] %vm225_vm1, %v10687_v1  ;;  %232 = vst.msk [vmem:[#allocation2 + $0x1a0] sm:$0xff] %vm225_vm1, %v10687_v1  ;;  %9223 = vmatpush3.msk.msra.mxu0 %vm772_vm0, %v8012_v0 }
  0x10   : > { %229 = vst.msk [vmem:[#allocation2 + $0x10] sm:$0x3] %vm228_vm2, %v10687_v1  ;;  %233 = vst.msk [vmem:[#allocation2 + $0x1a8] sm:$0x3] %vm228_vm2, %v10687_v1  ;;  %9272 = vmatprep.subr.msk.mxu0 %vm772_vm0, %v641_v2  ;;  %s13652_s19 = smov (!%p215_p3, %s8003_s19), 1 }
  0x11   : > { %s8626_s24 = sshll.u32 %s13652_s19, 8  ;;  %235 = vst.msk [vmem:[#allocation2] sm:$0x1] %vm234_vm3, %v10687_v1  ;;  %236 = vst.msk [vmem:[#allocation2 + $0x18] sm:$0x1] %vm234_vm3, %v10687_v1 }
  0x12   : > { %s10753_s27 = scalar_lea.vmem %s13378_s0, %s8626_s24  ;;  %237 = vst.msk [vmem:[#allocation2 + $0x30] sm:$0x1] %vm234_vm3, %v10687_v1  ;;  %238 = vst.msk [vmem:[#allocation2 + $0x48] sm:$0x1] %vm234_vm3, %v10687_v1  ;;  %s13246_s22 = scalar_lea.vmem %s13383_s5, %s8626_s24 }
  0x13   : > { %v10756_v3 = vld [vmem:[%s10753_s27] sm:$0xff]  ;;  %v10759_v4 = vld [vmem:[%s10753_s27 + $0x8] sm:$0xff]  ;;  %v10762_v5 = vld [vmem:[%s10753_s27 + $0x10] sm:$0xff]  ;;  %239 = vst.msk [vmem:[#allocation2 + $0x60] sm:$0x1] %vm234_vm3, %v10687_v1 }
  0x14   : > { %v10765_v8 = vld [vmem:[%s10753_s27 + $0x18] sm:$0xff]  ;;  %v303_v9 = vsel %vm225_vm1, %v10756_v3, 0.0  ;;  %v304_v10 = vsel %vm225_vm1, %v10759_v4, 0.0  ;;  %v306_v11 = vsel %vm225_vm1, %v10762_v5, 0.0  ;;  %v10775_v12 = vld [vmem:[%s10753_s27 + $0x20] sm:$0xff]  ;;  %v10782_v15 = vld [vmem:[%s10753_s27 + $0x28] sm:$0xff]  ;;  %v373_v34 = vmul.f32 %v10756_v3, %v10756_v3 }
  0x15   : > { %v642_v6 = vld [vmem:[#allocation2 + $0x1] sm:$0xff]  ;;  %v305_v13 = vadd.f32 %v304_v10, %v303_v9  ;;  %v308_v14 = vsel %vm225_vm1, %v10765_v8, 0.0  ;;  %v310_v17 = vsel %vm225_vm1, %v10775_v12, 0.0  ;;  %v10787_v18 = vld [vmem:[%s10753_s27 + $0x30] sm:$0xff]  ;;  %v312_v20 = vsel %vm225_vm1, %v10782_v15, 0.0  ;;  %v10792_v21 = vld [vmem:[%s10753_s27 + $0x38] sm:$0xff] }
  0x16   : > { %9224 = vmatprep.mubr.msk.f32.mxu0 %vm225_vm1, %v642_v6  ;;  %v314_v23 = vsel %vm225_vm1, %v10787_v18, 0.0  ;;  %v10797_v24 = vld [vmem:[%s10753_s27 + $0x40] sm:$0xff]  ;;  %v316_v26 = vsel %vm225_vm1, %v10792_v21, 0.0  ;;  %v10802_v27 = vld [vmem:[%s10753_s27 + $0x48] sm:$0xff]  ;;  %v10807_v30 = vld [vmem:[%s10753_s27 + $0x50] sm:$0xff]  ;;  %v374_v35 = vmul.f32 %v10759_v4, %v10759_v4  ;;  %v375_v36 = vmul.f32 %v10762_v5, %v10762_v5 }
  0x17   : > { %v643_v7 = vld [vmem:[#allocation2 + $0x9] sm:$0xff]  ;;  %v307_v16 = vadd.f32 %v306_v11, %v305_v13  ;;  %v318_v29 = vsel %vm225_vm1, %v10797_v24, 0.0  ;;  %v10810_v32 = vld [vmem:[%s10753_s27 + $0x58] sm:$0xff]  ;;  %v320_v33 = vsel %vm225_vm1, %v10802_v27, 0.0  ;;  %v322_v38 = vsel %vm225_vm1, %v10807_v30, 0.0  ;;  %v10825_v40 = vld [vmem:[%s10753_s27 + $0x60] sm:$0xff] }
  0x18   : > { %9225 = vmatmul.mubr.msk.f32.vlgmr.msra.gmra.mrb[0].mxu0 %vm225_vm1, %v643_v7  ;;  %v376_v39 = vmul.f32 %v10765_v8, %v10765_v8  ;;  %v324_v42 = vsel %vm225_vm1, %v10810_v32, 0.0  ;;  %v377_v43 = vmul.f32 %v10775_v12, %v10775_v12  ;;  %v405_v44 = vsel %vm225_vm1, %v373_v34, 0.0  ;;  %v10835_v47 = vld [vmem:[%s10753_s27 + $0x68] sm:$0xff]  ;;  %v10843_v53 = vld [vmem:[%s10753_s27 + $0x70] sm:$0xff]  ;;  %v10851_v59 = vld [vmem:[%s10753_s27 + $0x78] sm:$0xff] }
  0x19   : > { %9273 = vmatpush3.msk.msra.mxu0 %vm772_vm0, %v641_v2  ;;  %v309_v19 = vadd.f32 %v308_v14, %v307_v16  ;;  %v406_v45 = vsel %vm225_vm1, %v374_v35, 0.0  ;;  %v408_v46 = vsel %vm225_vm1, %v375_v36, 0.0  ;;  %v326_v50 = vsel %vm225_vm1, %v10825_v40, 0.0  ;;  %v10859_v2 = vld [vmem:[%s10753_s27 + $0x80] sm:$0xff]  ;;  %v10867_v13 = vld [vmem:[%s10753_s27 + $0x88] sm:$0xff] }
  0x1a   : > { %v407_v49 = vadd.f32 %v406_v45, %v405_v44  ;;  %v378_v51 = vmul.f32 %v10782_v15, %v10782_v15  ;;  %v410_v52 = vsel %vm225_vm1, %v376_v39, 0.0  ;;  %v328_v56 = vsel %vm225_vm1, %v10835_v47, 0.0  ;;  %v10899_v45 = vld [vmem:[%s10753_s27 + $0xa8] sm:$0xff]  ;;  %240 = vst.msk [vmem:[#allocation2 + $0x78] sm:$0x1] %vm234_vm3, %v10687_v1 }
  0x1b   : > { %v311_v22 = vadd.f32 %v310_v17, %v309_v19  ;;  %v379_v57 = vmul.f32 %v10787_v18, %v10787_v18  ;;  %v412_v58 = vsel %vm225_vm1, %v377_v43, 0.0  ;;  %v330_v62 = vsel %vm225_vm1, %v10843_v53, 0.0  ;;  %241 = vst.msk [vmem:[#allocation2 + $0x90] sm:$0x1] %vm234_vm3, %v10687_v1  ;;  %242 = vst.msk [vmem:[#allocation2 + $0xa8] sm:$0x1] %vm234_vm3, %v10687_v1 }
  0x1c   : > { %v409_v55 = vadd.f32 %v408_v46, %v407_v49  ;;  %v380_v63 = vmul.f32 %v10792_v21, %v10792_v21  ;;  %v414_v0 = vsel %vm225_vm1, %v378_v51, 0.0  ;;  %v332_v9 = vsel %vm225_vm1, %v10851_v59, 0.0  ;;  %243 = vst.msk [vmem:[#allocation2 + $0xc0] sm:$0x1] %vm234_vm3, %v10687_v1  ;;  %244 = vst.msk [vmem:[#allocation2 + $0xd8] sm:$0x1] %vm234_vm3, %v10687_v1 }
  0x1d   : > { %v313_v25 = vadd.f32 %v312_v20, %v311_v22  ;;  %v381_v10 = vmul.f32 %v10797_v24, %v10797_v24  ;;  %v416_v11 = vsel %vm225_vm1, %v379_v57, 0.0  ;;  %v334_v17 = vsel %vm225_vm1, %v10859_v2, 0.0  ;;  %v10875_v22 = vld [vmem:[%s10753_s27 + $0x90] sm:$0xff]  ;;  %245 = vst.msk [vmem:[#allocation2 + $0xf0] sm:$0x1] %vm234_vm3, %v10687_v1 }
  0x1e   : > { %v411_v61 = vadd.f32 %v410_v52, %v409_v55  ;;  %v382_v19 = vmul.f32 %v10802_v27, %v10802_v27  ;;  %v418_v20 = vsel %vm225_vm1, %v380_v63, 0.0  ;;  %v338_v35 = vsel %vm225_vm1, %v10875_v22, 0.0  ;;  %v10907_v52 = vld [vmem:[%s10753_s27 + $0xb0] sm:$0xff]  ;;  %246 = vst.msk [vmem:[#allocation2 + $0x108] sm:$0x1] %vm234_vm3, %v10687_v1 }
  0x1f   : > { %v315_v28 = vadd.f32 %v314_v23, %v313_v25  ;;  %v384_v36 = vmul.f32 %v10810_v32, %v10810_v32  ;;  %v385_v43 = vmul.f32 %v10825_v40, %v10825_v40  ;;  %v387_v57 = vmul.f32 %v10843_v53, %v10843_v53  ;;  %247 = vst.msk [vmem:[#allocation2 + $0x120] sm:$0x1] %vm234_vm3, %v10687_v1 }
  0x20   : > { %v413_v7 = vadd.f32 %v412_v58, %v411_v61  ;;  %v346_v63 = vsel %vm225_vm1, %v10907_v52, 0.0  ;;  %248 = vst.msk [vmem:[#allocation2 + $0x138] sm:$0x1] %vm234_vm3, %v10687_v1  ;;  %249 = vst.msk [vmem:[#allocation2 + $0x150] sm:$0x1] %vm234_vm3, %v10687_v1 }
  0x21   : > { %v317_v31 = vadd.f32 %v316_v26, %v315_v28  ;;  %v336_v26 = vsel %vm225_vm1, %v10867_v13, 0.0  ;;  %v383_v28 = vmul.f32 %v10807_v30, %v10807_v30  ;;  %v426_v51 = vsel %vm225_vm1, %v384_v36, 0.0  ;;  %250 = vst.msk [vmem:[#allocation2 + $0x168] sm:$0x1] %vm234_vm3, %v10687_v1  ;;  %251 = vst.msk [vmem:[#allocation2 + $0x180] sm:$0x1] %vm234_vm3, %v10687_v1 }
  0x22   : > { %v415_v16 = vadd.f32 %v414_v0, %v413_v7  ;;  %v428_v58 = vsel %vm225_vm1, %v385_v43, 0.0  ;;  %v388_v0 = vmul.f32 %v10851_v59, %v10851_v59  ;;  %v10923_v7 = vld [vmem:[%s10753_s27 + $0xc0] sm:$0xff]  ;;  %252 = vst.msk [vmem:[#allocation2 + $0x198] sm:$0x1] %vm234_vm3, %v10687_v1  ;;  %253 = vst.msk [vmem:[#allocation2 + $0x11] sm:$0x1] %vm234_vm3, %v10687_v1 }
  0x23   : > { %v319_v37 = vadd.f32 %v318_v29, %v317_v31  ;;  %v420_v29 = vsel %vm225_vm1, %v381_v10, 0.0  ;;  %v10883_v31 = vld [vmem:[%s10753_s27 + $0x98] sm:$0xff]  ;;  %v424_v44 = vsel %vm225_vm1, %v383_v28, 0.0  ;;  %v10939_v28 = vld [vmem:[%s10753_s27 + $0xd0] sm:$0xff]  ;;  %254 = vst.msk [vmem:[#allocation2 + $0x29] sm:$0x1] %vm234_vm3, %v10687_v1 }
  0x24   : > { %v417_v25 = vadd.f32 %v416_v11, %v415_v16  ;;  %v432_v16 = vsel %vm225_vm1, %v387_v57, 0.0  ;;  %v392_v43 = vmul.f32 %v10883_v31, %v10883_v31  ;;  %255 = vst.msk [vmem:[#allocation2 + $0x41] sm:$0x1] %vm234_vm3, %v10687_v1  ;;  %256 = vst.msk [vmem:[#allocation2 + $0x59] sm:$0x1] %vm234_vm3, %v10687_v1 }
  0x25   : > { %v321_v41 = vadd.f32 %v320_v33, %v319_v37  ;;  %v422_v37 = vsel %vm225_vm1, %v382_v19, 0.0  ;;  %257 = vst.msk [vmem:[#allocation2 + $0x71] sm:$0x1] %vm234_vm3, %v10687_v1  ;;  %258 = vst.msk [vmem:[#allocation2 + $0x89] sm:$0x1] %vm234_vm3, %v10687_v1 }
  0x26   : > { %v419_v34 = vadd.f32 %v418_v20, %v417_v25  ;;  %v390_v25 = vmul.f32 %v10867_v13, %v10867_v13  ;;  %259 = vst.msk [vmem:[#allocation2 + $0xa1] sm:$0x1] %vm234_vm3, %v10687_v1  ;;  %260 = vst.msk [vmem:[#allocation2 + $0xb9] sm:$0x1] %vm234_vm3, %v10687_v1 }
  0x27   : > { %v323_v48 = vadd.f32 %v322_v38, %v321_v41  ;;  %v10891_v38 = vld [vmem:[%s10753_s27 + $0xa0] sm:$0xff]  ;;  %261 = vst.msk [vmem:[#allocation2 + $0xd1] sm:$0x1] %vm234_vm3, %v10687_v1  ;;  %262 = vst.msk [vmem:[#allocation2 + $0xe9] sm:$0x1] %vm234_vm3, %v10687_v1 }
  0x28   : > { %v421_v41 = vadd.f32 %v420_v29, %v419_v34  ;;  %v342_v49 = vsel %vm225_vm1, %v10891_v38, 0.0  ;;  %263 = vst.msk [vmem:[#allocation2 + $0x101] sm:$0x1] %vm234_vm3, %v10687_v1  ;;  %264 = vst.msk [vmem:[#allocation2 + $0x119] sm:$0x1] %vm234_vm3, %v10687_v1 }
  0x29   : > { %v325_v54 = vadd.f32 %v324_v42, %v323_v48  ;;  %v340_v42 = vsel %vm225_vm1, %v10883_v31, 0.0  ;;  %265 = vst.msk [vmem:[#allocation2 + $0x131] sm:$0x1] %vm234_vm3, %v10687_v1  ;;  %266 = vst.msk [vmem:[#allocation2 + $0x149] sm:$0x1] %vm234_vm3, %v10687_v1 }
  0x2a   : > { %v423_v48 = vadd.f32 %v422_v37, %v421_v41  ;;  %v10947_v37 = vld [vmem:[%s10753_s27 + $0xd8] sm:$0xff]  ;;  %267 = vst.msk [vmem:[#allocation2 + $0x161] sm:$0x1] %vm234_vm3, %v10687_v1  ;;  %268 = vst.msk [vmem:[#allocation2 + $0x179] sm:$0x1] %vm234_vm3, %v10687_v1 }
  0x2b   : > { %v327_v60 = vadd.f32 %v326_v50, %v325_v54  ;;  %v386_v50 = vmul.f32 %v10835_v47, %v10835_v47  ;;  %269 = vst.msk [vmem:[#allocation2 + $0x191] sm:$0x1] %vm234_vm3, %v10687_v1  ;;  %270 = vst.msk [vmem:[#allocation2 + $0x1a9] sm:$0x1] %vm234_vm3, %v10687_v1 }
  0x2c   : > { %v425_v55 = vadd.f32 %v424_v44, %v423_v48  ;;  %v438_v44 = vsel %vm225_vm1, %v390_v25, 0.0 }
  0x2d   : > { %v329_v6 = vadd.f32 %v328_v56, %v327_v60  ;;  %v344_v56 = vsel %vm225_vm1, %v10899_v45, 0.0  ;;  %v10915_v60 = vld [vmem:[%s10753_s27 + $0xb8] sm:$0xff] }
  0x2e   : > { %v348_v11 = vsel %vm225_vm1, %v10915_v60, 0.0 }
  0x2f   : > { %v331_v14 = vadd.f32 %v330_v62, %v329_v6  ;;  %v427_v62 = vadd.f32 %v426_v51, %v425_v55  ;;  %v430_v6 = vsel %vm225_vm1, %v386_v50, 0.0  ;;  %v356_v50 = vsel %vm225_vm1, %v10947_v37, 0.0  ;;  %v11035_v55 = vld [vmem:[%s10753_s27 + $0xe8] sm:$0xff] }
  0x30   : > { %v393_v51 = vmul.f32 %v10891_v38, %v10891_v38 }
  0x31   : > { %v333_v23 = vadd.f32 %v332_v9, %v331_v14  ;;  %v429_v10 = vadd.f32 %v428_v58, %v427_v62  ;;  %v389_v14 = vmul.f32 %v10859_v2, %v10859_v2  ;;  %v394_v58 = vmul.f32 %v10899_v45, %v10899_v45  ;;  %v11043_v62 = vld [vmem:[%s10753_s27 + $0xf0] sm:$0xff] }
  0x33   : > { %v335_v33 = vadd.f32 %v334_v17, %v333_v23  ;;  %v10931_v17 = vld [vmem:[%s10753_s27 + $0xc8] sm:$0xff]  ;;  %v431_v20 = vadd.f32 %v430_v6, %v429_v10  ;;  %v350_v23 = vsel %vm225_vm1, %v10923_v7, 0.0  ;;  %v436_v36 = vsel %vm225_vm1, %v389_v14, 0.0  ;;  %v11056_v14 = vld [vmem:[%s10753_s27 + $0xf8] sm:$0xff] }
  0x34   : > { %v352_v34 = vsel %vm225_vm1, %v10931_v17, 0.0  ;;  %v360_v6 = vsel %vm225_vm1, %v11035_v55, 0.0  ;;  %v444_v10 = vsel %vm225_vm1, %v393_v51, 0.0  ;;  %v446_v25 = vsel %vm225_vm1, %v394_v58, 0.0 }
  0x35   : > { %v337_v39 = vadd.f32 %v336_v26, %v335_v33  ;;  %v434_v26 = vsel %vm225_vm1, %v388_v0, 0.0  ;;  %v433_v33 = vadd.f32 %v432_v16, %v431_v20  ;;  %v362_v20 = vsel %vm225_vm1, %v11043_v62, 0.0 }
  0x37   : > { %v339_v46 = vadd.f32 %v338_v35, %v337_v39  ;;  %v391_v35 = vmul.f32 %v10875_v22, %v10875_v22  ;;  %v435_v41 = vadd.f32 %v434_v26, %v433_v33  ;;  %v364_v33 = vsel %vm225_vm1, %v11056_v14, 0.0 }
  0x39   : > { %v341_v54 = vadd.f32 %v340_v42, %v339_v46  ;;  %v354_v42 = vsel %vm225_vm1, %v10939_v28, 0.0  ;;  %v11027_v46 = vld [vmem:[%s10753_s27 + $0xe0] sm:$0xff] }
  0x3a   : > { %v358_v1 = vsel %vm225_vm1, %v11027_v46, 0.0 }
  0x3b   : > { %v343_v61 = vadd.f32 %v342_v49, %v341_v54  ;;  %v437_v49 = vadd.f32 %v436_v36, %v435_v41  ;;  %v440_v54 = vsel %vm225_vm1, %v391_v35, 0.0  ;;  %v398_v41 = vmul.f32 %v10931_v17, %v10931_v17 }
  0x3d   : > { %v345_v9 = vadd.f32 %v344_v56, %v343_v61  ;;  %v439_v57 = vadd.f32 %v438_v44, %v437_v49  ;;  %v442_v61 = vsel %vm225_vm1, %v392_v43, 0.0 }
  0x3f   : > { %v347_v19 = vadd.f32 %v346_v63, %v345_v9  ;;  %v441_v0 = vadd.f32 %v440_v54, %v439_v57  ;;  %v395_v9 = vmul.f32 %v10907_v52, %v10907_v52  ;;  %v400_v54 = vmul.f32 %v10947_v37, %v10947_v37 }
  0x41   : > { %v349_v29 = vadd.f32 %v348_v11, %v347_v19  ;;  %v11053_v11 = vld [vmem:[%s13379_s1 + $0x8] sm:$0xf]  ;;  %v443_v19 = vadd.f32 %v442_v61, %v441_v0  ;;  %v448_v35 = vsel %vm225_vm1, %v395_v9, 0.0  ;;  %v402_v0 = vmul.f32 %v11035_v55, %v11035_v55 }
  0x42   : > { %9322 = vmatprep.subr.msk.mxu0 %vm772_vm0, %v11053_v11 }
  0x43   : > { %v351_v39 = vadd.f32 %v350_v23, %v349_v29  ;;  %v396_v23 = vmul.f32 %v10915_v60, %v10915_v60  ;;  %v445_v29 = vadd.f32 %v444_v10, %v443_v19  ;;  %v403_v10 = vmul.f32 %v11043_v62, %v11043_v62 }
  0x45   : > { %v353_v48 = vadd.f32 %v352_v34, %v351_v39  ;;  %v397_v34 = vmul.f32 %v10923_v7, %v10923_v7  ;;  %v447_v39 = vadd.f32 %v446_v25, %v445_v29  ;;  %v462_v25 = vsel %vm225_vm1, %v402_v0, 0.0 }
  0x46   : > { %v464_v29 = vsel %vm225_vm1, %v403_v10, 0.0 }
  0x47   : > { %v355_v56 = vadd.f32 %v354_v42, %v353_v48  ;;  %v450_v42 = vsel %vm225_vm1, %v396_v23, 0.0  ;;  %v449_v44 = vadd.f32 %v448_v35, %v447_v39  ;;  %v399_v48 = vmul.f32 %v10939_v28, %v10939_v28 }
  0x48   : > { %v452_v49 = vsel %vm225_vm1, %v397_v34, 0.0  ;;  %v404_v23 = vmul.f32 %v11056_v14, %v11056_v14 }
  0x49   : > { %v357_v63 = vadd.f32 %v356_v50, %v355_v56  ;;  %v451_v51 = vadd.f32 %v450_v42, %v449_v44  ;;  %v454_v56 = vsel %vm225_vm1, %v398_v41, 0.0  ;;  %v456_v58 = vsel %vm225_vm1, %v399_v48, 0.0 }
  0x4a   : > { %v466_v35 = vsel %vm225_vm1, %v404_v23, 0.0 }
  0x4b   : > { %v359_v16 = vadd.f32 %v358_v1, %v357_v63  ;;  %v453_v57 = vadd.f32 %v452_v49, %v451_v51  ;;  %v401_v1 = vmul.f32 %v11027_v46, %v11027_v46 }
  0x4d   : > { %v361_v26 = vadd.f32 %v360_v6, %v359_v16  ;;  %v455_v63 = vadd.f32 %v454_v56, %v453_v57  ;;  %v458_v6 = vsel %vm225_vm1, %v400_v54, 0.0  ;;  %v460_v16 = vsel %vm225_vm1, %v401_v1, 0.0 }
  0x4f   : > { %v363_v36 = vadd.f32 %v362_v20, %v361_v26  ;;  %v457_v9 = vadd.f32 %v456_v58, %v455_v63 }
  0x51   : > { %v365_v43 = vadd.f32 %v364_v33, %v363_v36  ;;  %v459_v20 = vadd.f32 %v458_v6, %v457_v9 }
  0x53   : > { %v366_v50 = vrot.slane %v365_v43, 4  ;;  %v461_v26 = vadd.f32 %v460_v16, %v459_v20 }
  0x55   : > { %v367_v61 = vadd.f32 %v366_v50, %v365_v43  ;;  %v463_v34 = vadd.f32 %v462_v25, %v461_v26 }
  0x57   : > { %v368_v19 = vrot.slane %v367_v61, 2  ;;  %v465_v36 = vadd.f32 %v464_v29, %v463_v34 }
  0x59   : > { %v369_v33 = vadd.f32 %v368_v19, %v367_v61  ;;  %v467_v41 = vadd.f32 %v466_v35, %v465_v36 }
  0x5b   : > { %v370_v39 = vrot.slane %v369_v33, 1  ;;  %v468_v42 = vrot.slane %v467_v41, 4 }
  0x5d   : > { %v371_v43 = vadd.f32 %v370_v39, %v369_v33  ;;  %v469_v44 = vadd.f32 %v468_v42, %v467_v41 }
  0x5f   : > { %v470_v48 = vrot.slane %v469_v44, 2  ;;  %v11093_v49 = vmul.f32 0.00390625, %v371_v43 }
  0x61   : > { %v471_v50 = vadd.f32 %v470_v48, %v469_v44  ;;  %v475_v56 = vmul.f32 %v11093_v49, %v11093_v49  ;;  %v478_v63 = vsub.f32 %v10756_v3, %v11093_v49  ;;  %v479_v0 = vsub.f32 %v10759_v4, %v11093_v49 }
  0x62   : > { %v480_v6 = vsub.f32 %v10762_v5, %v11093_v49  ;;  %v481_v9 = vsub.f32 %v10765_v8, %v11093_v49  ;;  %v482_v10 = vsub.f32 %v10775_v12, %v11093_v49  ;;  %v483_v16 = vsub.f32 %v10782_v15, %v11093_v49 }
  0x63   : > { %v472_v51 = vrot.slane %v471_v50, 1  ;;  %v484_v19 = vsub.f32 %v10787_v18, %v11093_v49  ;;  %v485_v3 = vsub.f32 %v10792_v21, %v11093_v49  ;;  %v486_v4 = vsub.f32 %v10797_v24, %v11093_v49 }
  0x64   : > { %v487_v5 = vsub.f32 %v10802_v27, %v11093_v49  ;;  %v488_v8 = vsub.f32 %v10807_v30, %v11093_v49  ;;  %v489_v12 = vsub.f32 %v10810_v32, %v11093_v49  ;;  %v490_v15 = vsub.f32 %v10825_v40, %v11093_v49 }
  0x65   : > { %v473_v54 = vadd.f32 %v472_v51, %v471_v50  ;;  %v491_v18 = vsub.f32 %v10835_v47, %v11093_v49  ;;  %v492_v21 = vsub.f32 %v10843_v53, %v11093_v49  ;;  %v493_v24 = vsub.f32 %v10851_v59, %v11093_v49 }
  0x66   : > { %v494_v27 = vsub.f32 %v10859_v2, %v11093_v49  ;;  %v495_v30 = vsub.f32 %v10867_v13, %v11093_v49  ;;  %v496_v32 = vsub.f32 %v10875_v22, %v11093_v49  ;;  %v497_v40 = vsub.f32 %v10883_v31, %v11093_v49 }
  0x67   : > { %v474_v57 = vmul.f32 0.00390625, %v473_v54  ;;  %v498_v47 = vsub.f32 %v10891_v38, %v11093_v49  ;;  %v499_v53 = vsub.f32 %v10899_v45, %v11093_v49  ;;  %v500_v59 = vsub.f32 %v10907_v52, %v11093_v49 }
  0x68   : > { %v501_v2 = vsub.f32 %v10915_v60, %v11093_v49  ;;  %v502_v13 = vsub.f32 %v10923_v7, %v11093_v49  ;;  %v503_v22 = vsub.f32 %v10931_v17, %v11093_v49  ;;  %v504_v31 = vsub.f32 %v10939_v28, %v11093_v49 }
  0x69   : > { %v476_v1 = vsub.f32 %v474_v57, %v475_v56  ;;  %v505_v23 = vsub.f32 %v10947_v37, %v11093_v49  ;;  %v506_v25 = vsub.f32 %v11027_v46, %v11093_v49  ;;  %v507_v26 = vsub.f32 %v11035_v55, %v11093_v49 }
  0x6b   : > { %v477_v58 = vmax.f32 %v476_v1, 0.0 }
  0x6d   : > { %v510_v61 = vadd.f32 1e-05, %v477_v58 }
  0x6f   : > { %10643 = vrsqrt.f32 %v510_v61 }
  0x79   : > { %v11149_v20 = vpop.eup %10643 }
  0x7a   : > { %v512_v29 = vmul.f32 %v11149_v20, %v478_v63  ;;  %v513_v33 = vmul.f32 %v11149_v20, %v479_v0  ;;  %v514_v34 = vmul.f32 %v11149_v20, %v480_v6  ;;  %v515_v35 = vmul.f32 %v11149_v20, %v481_v9 }
  0x7b   : > { %v516_v36 = vmul.f32 %v11149_v20, %v482_v10  ;;  %v517_v39 = vmul.f32 %v11149_v20, %v483_v16  ;;  %v518_v41 = vmul.f32 %v11149_v20, %v484_v19  ;;  %v519_v42 = vmul.f32 %v11149_v20, %v485_v3 }
  0x7c   : > { %v544_v43 = vmax.f32 %v512_v29, 0.0  ;;  %v545_v44 = vmax.f32 %v513_v33, 0.0  ;;  %v546_v48 = vmax.f32 %v514_v34, 0.0  ;;  %v547_v50 = vmax.f32 %v515_v35, 0.0 }
  0x7d   : > { %v548_v51 = vmax.f32 %v516_v36, 0.0  ;;  %v549_v54 = vmax.f32 %v517_v39, 0.0  ;;  %v550_v56 = vmax.f32 %v518_v41, 0.0  ;;  %v551_v57 = vmax.f32 %v519_v42, 0.0 }
  0x7e   : > { %577 = vst.msk [vmem:[#allocation2 + $0x19] sm:$0xff] %vm225_vm1, %v544_v43  ;;  %578 = vst.msk [vmem:[#allocation2 + $0x21] sm:$0xff] %vm225_vm1, %v545_v44  ;;  %v520_v1 = vmul.f32 %v11149_v20, %v486_v4  ;;  %v521_v58 = vmul.f32 %v11149_v20, %v487_v5  ;;  %v522_v61 = vmul.f32 %v11149_v20, %v488_v8 }
  0x7f   : > { %579 = vst.msk [vmem:[#allocation2 + $0x31] sm:$0xff] %vm225_vm1, %v546_v48  ;;  %580 = vst.msk [vmem:[#allocation2 + $0x39] sm:$0xff] %vm225_vm1, %v547_v50  ;;  %v523_v63 = vmul.f32 %v11149_v20, %v489_v12  ;;  %v524_v0 = vmul.f32 %v11149_v20, %v490_v15  ;;  %v525_v6 = vmul.f32 %v11149_v20, %v491_v18 }
  0x80   : > { %581 = vst.msk [vmem:[#allocation2 + $0x49] sm:$0xff] %vm225_vm1, %v548_v51  ;;  %582 = vst.msk [vmem:[#allocation2 + $0x51] sm:$0xff] %vm225_vm1, %v549_v54  ;;  %v526_v9 = vmul.f32 %v11149_v20, %v492_v21  ;;  %v527_v10 = vmul.f32 %v11149_v20, %v493_v24  ;;  %v552_v16 = vmax.f32 %v520_v1, 0.0  ;;  %v553_v19 = vmax.f32 %v521_v58, 0.0 }
  0x81   : > { %583 = vst.msk [vmem:[#allocation2 + $0x61] sm:$0xff] %vm225_vm1, %v550_v56  ;;  %584 = vst.msk [vmem:[#allocation2 + $0x69] sm:$0xff] %vm225_vm1, %v551_v57  ;;  %v554_v3 = vmax.f32 %v522_v61, 0.0  ;;  %v555_v4 = vmax.f32 %v523_v63, 0.0  ;;  %v556_v5 = vmax.f32 %v524_v0, 0.0  ;;  %v557_v8 = vmax.f32 %v525_v6, 0.0 }
  0x82   : > { %v558_v12 = vmax.f32 %v526_v9, 0.0  ;;  %v559_v29 = vmax.f32 %v527_v10, 0.0  ;;  %585 = vst.msk [vmem:[#allocation2 + $0x79] sm:$0xff] %vm225_vm1, %v552_v16  ;;  %586 = vst.msk [vmem:[#allocation2 + $0x81] sm:$0xff] %vm225_vm1, %v553_v19  ;;  %v528_v15 = vmul.f32 %v11149_v20, %v494_v27  ;;  %v529_v18 = vmul.f32 %v11149_v20, %v495_v30 }
  0x83   : > { %587 = vst.msk [vmem:[#allocation2 + $0x91] sm:$0xff] %vm225_vm1, %v554_v3  ;;  %588 = vst.msk [vmem:[#allocation2 + $0x99] sm:$0xff] %vm225_vm1, %v555_v4  ;;  %v530_v21 = vmul.f32 %v11149_v20, %v496_v32  ;;  %v531_v24 = vmul.f32 %v11149_v20, %v497_v40  ;;  %v532_v33 = vmul.f32 %v11149_v20, %v498_v47 }
  0x84   : > { %589 = vst.msk [vmem:[#allocation2 + $0xa9] sm:$0xff] %vm225_vm1, %v556_v5  ;;  %590 = vst.msk [vmem:[#allocation2 + $0xb1] sm:$0xff] %vm225_vm1, %v557_v8  ;;  %v533_v27 = vmul.f32 %v11149_v20, %v499_v53  ;;  %v534_v30 = vmul.f32 %v11149_v20, %v500_v59  ;;  %v535_v32 = vmul.f32 %v11149_v20, %v501_v2  ;;  %v560_v40 = vmax.f32 %v528_v15, 0.0  ;;  %v610_v15 = vld [vmem:[#allocation2 + $0x8] sm:$0xff] }
  0x85   : > { %591 = vst.msk [vmem:[#allocation2 + $0xc1] sm:$0xff] %vm225_vm1, %v558_v12  ;;  %592 = vst.msk [vmem:[#allocation2 + $0xc9] sm:$0xff] %vm225_vm1, %v559_v29  ;;  %v561_v34 = vmax.f32 %v529_v18, 0.0  ;;  %v562_v38 = vmax.f32 %v530_v21, 0.0  ;;  %v563_v35 = vmax.f32 %v531_v24, 0.0  ;;  %v11211_v47 = vld [vmem:[#allocation2 + $0x19] sm:$0xff]  ;;  %v536_v60 = vmul.f32 %v11149_v20, %v502_v13 }
  0x86   : > { %v11213_v36 = vld [vmem:[#allocation2 + $0x21] sm:$0xff]  ;;  %v11215_v45 = vld [vmem:[#allocation2 + $0x31] sm:$0xff]  ;;  %v564_v53 = vmax.f32 %v532_v33, 0.0  ;;  %v565_v39 = vmax.f32 %v533_v27, 0.0  ;;  %v566_v52 = vmax.f32 %v534_v30, 0.0  ;;  %9227 = vmatprep.mubr.msk.f32.mxu0 %vm225_vm1, %v11211_v47  ;;  %593 = vst.msk [vmem:[#allocation2 + $0xd9] sm:$0xff] %vm225_vm1, %v560_v40  ;;  %v537_v2 = vmul.f32 %v11149_v20, %v503_v22 }
  0x87   : > { %594 = vst.msk [vmem:[#allocation2 + $0xe1] sm:$0xff] %vm225_vm1, %v561_v34  ;;  %595 = vst.msk [vmem:[#allocation2 + $0xf1] sm:$0xff] %vm225_vm1, %v562_v38  ;;  %v567_v59 = vmax.f32 %v535_v32, 0.0  ;;  %v538_v7 = vmul.f32 %v11149_v20, %v504_v31  ;;  %v539_v13 = vmul.f32 %v11149_v20, %v505_v23  ;;  %9228 = vmatmul.mubr.msk.f32.gmra.mrb[2].mxu0 %vm225_vm1, %v11213_v36  ;;  %v568_v17 = vmax.f32 %v536_v60, 0.0  ;;  %v11254_v22 = vld [vmem:[#allocation2 + $0x39] sm:$0xff]  ;;  %v11257_v42 = vld [vmem:[#allocation2 + $0x49] sm:$0xff] }
  0x88   : > { %596 = vst.msk [vmem:[#allocation2 + $0xf9] sm:$0xff] %vm225_vm1, %v563_v35  ;;  %597 = vst.msk [vmem:[#allocation2 + $0x109] sm:$0xff] %vm225_vm1, %v564_v53  ;;  %v540_v28 = vmul.f32 %v11149_v20, %v506_v25  ;;  %v541_v37 = vmul.f32 %v11149_v20, %v507_v26  ;;  %9230 = vmatprep.mubr.msk.f32.mxu0 %vm225_vm1, %v11215_v45  ;;  %v569_v31 = vmax.f32 %v537_v2, 0.0  ;;  %v11269_v55 = vld [vmem:[#allocation2 + $0x51] sm:$0xff]  ;;  %v11271_v26 = vld [vmem:[#allocation2 + $0x61] sm:$0xff] }
  0x89   : > { %598 = vst.msk [vmem:[#allocation2 + $0x111] sm:$0xff] %vm225_vm1, %v565_v39  ;;  %599 = vst.msk [vmem:[#allocation2 + $0x121] sm:$0xff] %vm225_vm1, %v566_v52  ;;  %v570_v23 = vmax.f32 %v538_v7, 0.0  ;;  %v571_v41 = vmax.f32 %v539_v13, 0.0  ;;  %v11277_v43 = vld [vmem:[#allocation2 + $0x69] sm:$0xff]  ;;  %v11279_v44 = vld [vmem:[#allocation2 + $0x79] sm:$0xff] }
  0x8a   : > { %600 = vst.msk [vmem:[#allocation2 + $0x129] sm:$0xff] %vm225_vm1, %v567_v59  ;;  %601 = vst.msk [vmem:[#allocation2 + $0x139] sm:$0xff] %vm225_vm1, %v568_v17  ;;  %v572_v46 = vmax.f32 %v540_v28, 0.0  ;;  %v573_v25 = vmax.f32 %v541_v37, 0.0  ;;  %v11285_v48 = vld [vmem:[#allocation2 + $0x81] sm:$0xff]  ;;  %v11287_v50 = vld [vmem:[#allocation2 + $0x91] sm:$0xff] }
  0x8b   : > { %602 = vst.msk [vmem:[#allocation2 + $0x141] sm:$0xff] %vm225_vm1, %v569_v31  ;;  %603 = vst.msk [vmem:[#allocation2 + $0x151] sm:$0xff] %vm225_vm1, %v570_v23  ;;  %9231 = vmatmul.mubr.msk.f32.gmra.mrb[4].mxu0 %vm225_vm1, %v11254_v22  ;;  %v11293_v51 = vld [vmem:[#allocation2 + $0x99] sm:$0xff]  ;;  %v11295_v54 = vld [vmem:[#allocation2 + $0xa9] sm:$0xff] }
  0x8c   : > { %604 = vst.msk [vmem:[#allocation2 + $0x159] sm:$0xff] %vm225_vm1, %v571_v41  ;;  %605 = vst.msk [vmem:[#allocation2 + $0x169] sm:$0xff] %vm225_vm1, %v572_v46  ;;  %9233 = vmatprep.mubr.msk.f32.mxu0 %vm225_vm1, %v11257_v42  ;;  %v11301_v56 = vld [vmem:[#allocation2 + $0xb1] sm:$0xff]  ;;  %v11303_v57 = vld [vmem:[#allocation2 + $0xc1] sm:$0xff]  ;;  %v508_v41 = vsub.f32 %v11043_v62, %v11093_v49 }
  0x8d   : > { %606 = vst.msk [vmem:[#allocation2 + $0x171] sm:$0xff] %vm225_vm1, %v573_v25  ;;  %v11309_v1 = vld [vmem:[#allocation2 + $0xc9] sm:$0xff]  ;;  %v11311_v58 = vld [vmem:[#allocation2 + $0xd9] sm:$0xff]  ;;  %v509_v25 = vsub.f32 %v11056_v14, %v11093_v49 }
  0x8e   : > { %v11317_v61 = vld [vmem:[#allocation2 + $0xe1] sm:$0xff]  ;;  %v11319_v63 = vld [vmem:[#allocation2 + $0xf1] sm:$0xff]  ;;  %v11375_v21 = vld [vmem:[%s13379_s1 + $0xc] sm:$0xf] }
  0x8f   : > { %9234 = vmatmul.mubr.msk.f32.gmra.mrb[6].mxu0 %vm225_vm1, %v11269_v55  ;;  %v11325_v0 = vld [vmem:[#allocation2 + $0xf9] sm:$0xff]  ;;  %v11327_v6 = vld [vmem:[#allocation2 + $0x109] sm:$0xff] }
  0x90   : > { %9236 = vmatprep.mubr.msk.f32.mxu0 %vm225_vm1, %v11271_v26  ;;  %v11333_v9 = vld [vmem:[#allocation2 + $0x111] sm:$0xff]  ;;  %v11335_v10 = vld [vmem:[#allocation2 + $0x121] sm:$0xff] }
  0x91   : > { %v11341_v16 = vld [vmem:[#allocation2 + $0x129] sm:$0xff]  ;;  %v11343_v19 = vld [vmem:[#allocation2 + $0x139] sm:$0xff] }
  0x92   : > { %v11349_v3 = vld [vmem:[#allocation2 + $0x141] sm:$0xff]  ;;  %v11351_v4 = vld [vmem:[#allocation2 + $0x151] sm:$0xff] }
  0x93   : > { %9237 = vmatmul.mubr.msk.f32.gmra.mrb[8].mxu0 %vm225_vm1, %v11277_v43  ;;  %v11357_v5 = vld [vmem:[#allocation2 + $0x159] sm:$0xff]  ;;  %v11359_v8 = vld [vmem:[#allocation2 + $0x169] sm:$0xff] }
  0x94   : > { %9239 = vmatprep.mubr.msk.f32.mxu0 %vm225_vm1, %v11279_v44  ;;  %13500 = vst [vmem:[#allocation3_spill] sm:$0xff] %v11357_v5  ;;  %13501 = vst [vmem:[#allocation4_spill] sm:$0xff] %v11359_v8  ;;  %v11365_v12 = vld [vmem:[#allocation2 + $0x171] sm:$0xff]  ;;  %v609_v29 = vld [vmem:[#allocation2] sm:$0xff] }
  0x95   : > { %13502 = vst [vmem:[#allocation5_spill] sm:$0xff] %v11365_v12  ;;  %v11370_v18 = vld [vmem:[#allocation2 + $0x18] sm:$0xff]  ;;  %v11382_v24 = vld [vmem:[#allocation2 + $0x20] sm:$0xff]  ;;  %v11384_v33 = vld [vmem:[#allocation2 + $0x30] sm:$0xff] }
  0x96   : > { %v11392_v27 = vld [vmem:[#allocation2 + $0x38] sm:$0xff]  ;;  %v11394_v30 = vld [vmem:[#allocation2 + $0x48] sm:$0xff]  ;;  %v11402_v32 = vld [vmem:[#allocation2 + $0x60] sm:$0xff] }
  0x97   : > { %9240 = vmatmul.mubr.msk.f32.gmra.mrb[10].mxu0 %vm225_vm1, %v11285_v48  ;;  %v11408_v40 = vld [vmem:[#allocation2 + $0x68] sm:$0xff]  ;;  %v11410_v34 = vld [vmem:[#allocation2 + $0x78] sm:$0xff]  ;;  %v11416_v38 = vld [vmem:[#allocation2 + $0x80] sm:$0xff] }
  0x98   : > { %9242 = vmatprep.mubr.msk.f32.mxu0 %vm225_vm1, %v11287_v50  ;;  %v11418_v35 = vld [vmem:[#allocation2 + $0x90] sm:$0xff]  ;;  %v11424_v53 = vld [vmem:[#allocation2 + $0x98] sm:$0xff]  ;;  %v11426_v39 = vld [vmem:[#allocation2 + $0xa8] sm:$0xff] }
  0x99   : > { %v11432_v52 = vld [vmem:[#allocation2 + $0xb0] sm:$0xff]  ;;  %v11434_v60 = vld [vmem:[#allocation2 + $0xc0] sm:$0xff]  ;;  %v11440_v59 = vld [vmem:[#allocation2 + $0xc8] sm:$0xff] }
  0x9a   : > { %v11442_v2 = vld [vmem:[#allocation2 + $0xd8] sm:$0xff]  ;;  %v11448_v7 = vld [vmem:[#allocation2 + $0xe0] sm:$0xff]  ;;  %v11450_v13 = vld [vmem:[#allocation2 + $0xf0] sm:$0xff] }
  0x9b   : > { %9243 = vmatmul.mubr.msk.f32.gmra.mrb[12].mxu0 %vm225_vm1, %v11293_v51  ;;  %v11456_v17 = vld [vmem:[#allocation2 + $0xf8] sm:$0xff]  ;;  %v11458_v28 = vld [vmem:[#allocation2 + $0x108] sm:$0xff]  ;;  %v11464_v37 = vld [vmem:[#allocation2 + $0x110] sm:$0xff] }
  0x9c   : > { %9245 = vmatprep.mubr.msk.f32.mxu0 %vm225_vm1, %v11295_v54  ;;  %v11466_v31 = vld [vmem:[#allocation2 + $0x120] sm:$0xff]  ;;  %v11472_v23 = vld [vmem:[#allocation2 + $0x128] sm:$0xff]  ;;  %v11476_v46 = vld [vmem:[#allocation2 + $0x138] sm:$0xff] }
  0x9d   : > { %v11496_v14 = vld [vmem:[#allocation2 + $0x158] sm:$0xff]  ;;  %v11498_v49 = vld [vmem:[#allocation2 + $0x168] sm:$0xff] }
  0x9f   : > { %9246 = vmatmul.mubr.msk.f32.gmra.mrb[14].mxu0 %vm225_vm1, %v11301_v56 }
  0xa0   : > { %9248 = vmatprep.mubr.msk.f32.mxu0 %vm225_vm1, %v11303_v57 }
  0xa3   : > { %9249 = vmatmul.mubr.msk.f32.gmra.mrb[16].mxu0 %vm225_vm1, %v11309_v1 }
  0xa4   : > { %9251 = vmatprep.mubr.msk.f32.mxu0 %vm225_vm1, %v11311_v58 }
  0xa7   : > { %9252 = vmatmul.mubr.msk.f32.gmra.mrb[18].mxu0 %vm225_vm1, %v11317_v61 }
  0xa8   : > { %9254 = vmatprep.mubr.msk.f32.mxu0 %vm225_vm1, %v11319_v63 }
  0xab   : > { %9255 = vmatmul.mubr.msk.f32.gmra.mrb[20].mxu0 %vm225_vm1, %v11325_v0 }
  0xac   : > { %9257 = vmatprep.mubr.msk.f32.mxu0 %vm225_vm1, %v11327_v6 }
  0xaf   : > { %9258 = vmatmul.mubr.msk.f32.gmra.mrb[22].mxu0 %vm225_vm1, %v11333_v9 }
  0xb0   : > { %9260 = vmatprep.mubr.msk.f32.mxu0 %vm225_vm1, %v11335_v10 }
  0xb3   : > { %9261 = vmatmul.mubr.msk.f32.gmra.mrb[24].mxu0 %vm225_vm1, %v11341_v16 }
  0xb4   : > { %9263 = vmatprep.mubr.msk.f32.mxu0 %vm225_vm1, %v11343_v19 }
  0xb7   : > { %9264 = vmatmul.mubr.msk.f32.gmra.mrb[26].mxu0 %vm225_vm1, %v11349_v3 }
  0xb8   : > { %9266 = vmatprep.mubr.msk.f32.mxu0 %vm225_vm1, %v11351_v4 }
  0xbb   : > { %9267 = vmatmul.mubr.msk.f32.gmra.mrb[28].mxu0 %vm225_vm1, %v11357_v5  ;;  %v11488_v5 = vld [vmem:[#allocation2 + $0x150] sm:$0xff] }
  0xbc   : > { %9269 = vmatprep.mubr.msk.f32.mxu0 %vm225_vm1, %v11359_v8 }
  0xbf   : > { %9270 = vmatmul.mubr.msk.f32.gmra.mrb[30].mxu0 %vm225_vm1, %v11365_v12  ;;  %v11486_v12 = vld [vmem:[#allocation2 + $0x140] sm:$0xff] }
  0xc0   : > { %9274 = vmatprep.mubr.msk.f32.mxu0 %vm225_vm1, %v609_v29  ;;  %v542_v29 = vmul.f32 %v11149_v20, %v508_v41  ;;  %v1326_v41 = vld [vmem:[#allocation2 + $0xa] sm:$0xff] }
  0xc2   : > { %v574_v8 = vmax.f32 %v542_v29, 0.0  ;;  %v11514_v29 = vld [vmem:[%s13379_s1 + $0x10] sm:$0xf] }
  0xc3   : > { %9275 = vmatmul.mubr.msk.f32.vlgmr.msra.gmra.mrb[0].mxu0 %vm225_vm1, %v610_v15  ;;  %v543_v15 = vmul.f32 %v11149_v20, %v509_v25  ;;  %v11504_v20 = vld [vmem:[#allocation2 + $0x170] sm:$0xff]  ;;  %v11509_v25 = vld [vmem:[#allocation2 + $0x1a] sm:$0xff] }
  0xc4   : > { %9323 = vmatpush3.msk.msra.mxu0 %vm772_vm0, %v11053_v11  ;;  %9277 = vmatprep.mubr.msk.f32.mxu0 %vm225_vm1, %v11370_v18  ;;  %v11400_v11 = vld [vmem:[#allocation2 + $0x50] sm:$0xff]  ;;  %607 = vst.msk [vmem:[#allocation2 + $0x181] sm:$0xff] %vm225_vm1, %v574_v8  ;;  %v1325_v8 = vld [vmem:[#allocation2 + $0x2] sm:$0xff]  ;;  %13503 = vst [vmem:[#allocation6_spill] sm:$0xff] %v11509_v25 }
  0xc5   : > { %9372 = vmatprep.subr.msk.mxu0 %vm772_vm0, %v11375_v21  ;;  %v575_v62 = vmax.f32 %v543_v15, 0.0  ;;  %v11521_v15 = vld [vmem:[#allocation2 + $0x22] sm:$0xff] }
  0xc6   : > { %13504 = vst [vmem:[#allocation7_spill] sm:$0xff] %v11521_v15 }
  0xc7   : > { %9278 = vmatmul.mubr.msk.f32.gmra.mrb[2].mxu0 %vm225_vm1, %v11382_v24  ;;  %608 = vst.msk [vmem:[#allocation2 + $0x189] sm:$0xff] %vm225_vm1, %v575_v62  ;;  %v11523_v62 = vld [vmem:[#allocation2 + $0x32] sm:$0xff] }
  0xc8   : > { %9280 = vmatprep.mubr.msk.f32.mxu0 %vm225_vm1, %v11384_v33  ;;  %13505 = vst [vmem:[#allocation8_spill] sm:$0xff] %v11523_v62 }
  0xcb   : > { %9281 = vmatmul.mubr.msk.f32.gmra.mrb[4].mxu0 %vm225_vm1, %v11392_v27 }
  0xcc   : > { %9283 = vmatprep.mubr.msk.f32.mxu0 %vm225_vm1, %v11394_v30 }
  0xcf   : > { %9284 = vmatmul.mubr.msk.f32.gmra.mrb[6].mxu0 %vm225_vm1, %v11400_v11 }
  0xd0   : > { %9286 = vmatprep.mubr.msk.f32.mxu0 %vm225_vm1, %v11402_v32 }
  0xd3   : > { %9287 = vmatmul.mubr.msk.f32.gmra.mrb[8].mxu0 %vm225_vm1, %v11408_v40 }
  0xd4   : > { %9289 = vmatprep.mubr.msk.f32.mxu0 %vm225_vm1, %v11410_v34 }
  0xd7   : > { %9290 = vmatmul.mubr.msk.f32.gmra.mrb[10].mxu0 %vm225_vm1, %v11416_v38 }
  0xd8   : > { %9292 = vmatprep.mubr.msk.f32.mxu0 %vm225_vm1, %v11418_v35 }
  0xdb   : > { %9293 = vmatmul.mubr.msk.f32.gmra.mrb[12].mxu0 %vm225_vm1, %v11424_v53 }
  0xdc   : > { %9295 = vmatprep.mubr.msk.f32.mxu0 %vm225_vm1, %v11426_v39 }
  0xdf   : > { %9296 = vmatmul.mubr.msk.f32.gmra.mrb[14].mxu0 %vm225_vm1, %v11432_v52 }
  0xe0   : > { %9298 = vmatprep.mubr.msk.f32.mxu0 %vm225_vm1, %v11434_v60 }
  0xe3   : > { %9299 = vmatmul.mubr.msk.f32.gmra.mrb[16].mxu0 %vm225_vm1, %v11440_v59 }
  0xe4   : > { %9301 = vmatprep.mubr.msk.f32.mxu0 %vm225_vm1, %v11442_v2 }
  0xe7   : > { %9302 = vmatmul.mubr.msk.f32.gmra.mrb[18].mxu0 %vm225_vm1, %v11448_v7 }
  0xe8   : > { %9304 = vmatprep.mubr.msk.f32.mxu0 %vm225_vm1, %v11450_v13 }
  0xeb   : > { %9305 = vmatmul.mubr.msk.f32.gmra.mrb[20].mxu0 %vm225_vm1, %v11456_v17 }
  0xec   : > { %9307 = vmatprep.mubr.msk.f32.mxu0 %vm225_vm1, %v11458_v28 }
  0xef   : > { %9308 = vmatmul.mubr.msk.f32.gmra.mrb[22].mxu0 %vm225_vm1, %v11464_v37 }
  0xf0   : > { %9310 = vmatprep.mubr.msk.f32.mxu0 %vm225_vm1, %v11466_v31 }
  0xf3   : > { %9311 = vmatmul.mubr.msk.f32.gmra.mrb[24].mxu0 %vm225_vm1, %v11472_v23 }
  0xf4   : > { %9313 = vmatprep.mubr.msk.f32.mxu0 %vm225_vm1, %v11476_v46 }
  0xf7   : > { %9314 = vmatmul.mubr.msk.f32.gmra.mrb[26].mxu0 %vm225_vm1, %v11486_v12 }
  0xf8   : > { %9316 = vmatprep.mubr.msk.f32.mxu0 %vm225_vm1, %v11488_v5 }
  0xfb   : > { %9317 = vmatmul.mubr.msk.f32.gmra.mrb[28].mxu0 %vm225_vm1, %v11496_v14 }
  0xfc   : > { %9319 = vmatprep.mubr.msk.f32.mxu0 %vm225_vm1, %v11498_v49 }
  0xff   : > { %9320 = vmatmul.mubr.msk.f32.gmra.mrb[30].mxu0 %vm225_vm1, %v11504_v20 }
 0x100   : > { %9324 = vmatprep.mubr.msk.f32.mxu0 %vm225_vm1, %v1325_v8  ;;  %v11531_v8 = vld [vmem:[#allocation2 + $0x3a] sm:$0xff] }
 0x101   : > { %13506 = vst [vmem:[#allocation9_spill] sm:$0xff] %v11531_v8 }
 0x103   : > { %9325 = vmatmul.mubr.msk.f32.vlgmr.msra.gmra.mrb[0].mxu0 %vm225_vm1, %v1326_v41  ;;  %v11533_v41 = vld [vmem:[#allocation2 + $0x4a] sm:$0xff] }
 0x104   : > { %9373 = vmatpush3.msk.msra.mxu0 %vm772_vm0, %v11375_v21  ;;  %9327 = vmatprep.mubr.msk.f32.mxu0 %vm225_vm1, %v11509_v25  ;;  %13507 = vst [vmem:[#allocation10_spill] sm:$0xff] %v11533_v41  ;;  %v11539_v21 = vld [vmem:[#allocation2 + $0x52] sm:$0xff]  ;;  %v11541_v25 = vld [vmem:[#allocation2 + $0x62] sm:$0xff] }
 0x105   : > { %9422 = vmatprep.subr.msk.mxu0 %vm772_vm0, %v11514_v29  ;;  %13508 = vst [vmem:[#allocation11_spill] sm:$0xff] %v11539_v21  ;;  %13509 = vst [vmem:[#allocation12_spill] sm:$0xff] %v11541_v25 }
 0x107   : > { %9328 = vmatmul.mubr.msk.f32.gmra.mrb[2].mxu0 %vm225_vm1, %v11521_v15  ;;  %v11549_v15 = vld [vmem:[#allocation2 + $0x7a] sm:$0xff] }
 0x108   : > { %9330 = vmatprep.mubr.msk.f32.mxu0 %vm225_vm1, %v11523_v62  ;;  %v11547_v62 = vld [vmem:[#allocation2 + $0x6a] sm:$0xff]  ;;  %13511 = vst [vmem:[#allocation14_spill] sm:$0xff] %v11549_v15 }
 0x109   : > { %13510 = vst [vmem:[#allocation13_spill] sm:$0xff] %v11547_v62 }
 0x10b   : > { %9331 = vmatmul.mubr.msk.f32.gmra.mrb[4].mxu0 %vm225_vm1, %v11531_v8  ;;  %v11557_v8 = vld [vmem:[#allocation2 + $0x92] sm:$0xff] }
 0x10c   : > { %9333 = vmatprep.mubr.msk.f32.mxu0 %vm225_vm1, %v11533_v41  ;;  %v11555_v41 = vld [vmem:[#allocation2 + $0x82] sm:$0xff]  ;;  %13513 = vst [vmem:[#allocation16_spill] sm:$0xff] %v11557_v8 }
 0x10d   : > { %13512 = vst [vmem:[#allocation15_spill] sm:$0xff] %v11555_v41 }
 0x10f   : > { %9334 = vmatmul.mubr.msk.f32.gmra.mrb[6].mxu0 %vm225_vm1, %v11539_v21  ;;  %v11565_v21 = vld [vmem:[#allocation2 + $0xaa] sm:$0xff] }
 0x110   : > { %9336 = vmatprep.mubr.msk.f32.mxu0 %vm225_vm1, %v11541_v25  ;;  %v11563_v25 = vld [vmem:[#allocation2 + $0x9a] sm:$0xff]  ;;  %13515 = vst [vmem:[#allocation18_spill] sm:$0xff] %v11565_v21 }
 0x111   : > { %13514 = vst [vmem:[#allocation17_spill] sm:$0xff] %v11563_v25 }
 0x113   : > { %9337 = vmatmul.mubr.msk.f32.gmra.mrb[8].mxu0 %vm225_vm1, %v11547_v62  ;;  %v11573_v62 = vld [vmem:[#allocation2 + $0xc2] sm:$0xff] }
 0x114   : > { %9339 = vmatprep.mubr.msk.f32.mxu0 %vm225_vm1, %v11549_v15  ;;  %v11571_v15 = vld [vmem:[#allocation2 + $0xb2] sm:$0xff]  ;;  %13517 = vst [vmem:[#allocation20_spill] sm:$0xff] %v11573_v62 }
 0x115   : > { %13516 = vst [vmem:[#allocation19_spill] sm:$0xff] %v11571_v15 }
 0x117   : > { %9340 = vmatmul.mubr.msk.f32.gmra.mrb[10].mxu0 %vm225_vm1, %v11555_v41  ;;  %v11581_v41 = vld [vmem:[#allocation2 + $0xda] sm:$0xff] }
 0x118   : > { %9342 = vmatprep.mubr.msk.f32.mxu0 %vm225_vm1, %v11557_v8  ;;  %v11579_v8 = vld [vmem:[#allocation2 + $0xca] sm:$0xff]  ;;  %13519 = vst [vmem:[#allocation22_spill] sm:$0xff] %v11581_v41 }
 0x119   : > { %13518 = vst [vmem:[#allocation21_spill] sm:$0xff] %v11579_v8 }
 0x11b   : > { %9343 = vmatmul.mubr.msk.f32.gmra.mrb[12].mxu0 %vm225_vm1, %v11563_v25  ;;  %v11589_v25 = vld [vmem:[#allocation2 + $0xf2] sm:$0xff] }
 0x11c   : > { %9345 = vmatprep.mubr.msk.f32.mxu0 %vm225_vm1, %v11565_v21  ;;  %v11587_v21 = vld [vmem:[#allocation2 + $0xe2] sm:$0xff]  ;;  %13521 = vst [vmem:[#allocation24_spill] sm:$0xff] %v11589_v25 }
 0x11d   : > { %13520 = vst [vmem:[#allocation23_spill] sm:$0xff] %v11587_v21 }
 0x11f   : > { %9346 = vmatmul.mubr.msk.f32.gmra.mrb[14].mxu0 %vm225_vm1, %v11571_v15  ;;  %v11597_v15 = vld [vmem:[#allocation2 + $0x10a] sm:$0xff] }
 0x120   : > { %9348 = vmatprep.mubr.msk.f32.mxu0 %vm225_vm1, %v11573_v62  ;;  %v11595_v62 = vld [vmem:[#allocation2 + $0xfa] sm:$0xff]  ;;  %13523 = vst [vmem:[#allocation26_spill] sm:$0xff] %v11597_v15 }
 0x121   : > { %13522 = vst [vmem:[#allocation25_spill] sm:$0xff] %v11595_v62 }
 0x123   : > { %9349 = vmatmul.mubr.msk.f32.gmra.mrb[16].mxu0 %vm225_vm1, %v11579_v8  ;;  %v11605_v8 = vld [vmem:[#allocation2 + $0x122] sm:$0xff] }
 0x124   : > { %9351 = vmatprep.mubr.msk.f32.mxu0 %vm225_vm1, %v11581_v41  ;;  %v11603_v41 = vld [vmem:[#allocation2 + $0x112] sm:$0xff]  ;;  %13525 = vst [vmem:[#allocation28_spill] sm:$0xff] %v11605_v8 }
 0x125   : > { %13524 = vst [vmem:[#allocation27_spill] sm:$0xff] %v11603_v41 }
 0x127   : > { %9352 = vmatmul.mubr.msk.f32.gmra.mrb[18].mxu0 %vm225_vm1, %v11587_v21  ;;  %v11613_v21 = vld [vmem:[#allocation2 + $0x13a] sm:$0xff] }
 0x128   : > { %9354 = vmatprep.mubr.msk.f32.mxu0 %vm225_vm1, %v11589_v25  ;;  %v11611_v25 = vld [vmem:[#allocation2 + $0x12a] sm:$0xff]  ;;  %13526 = vst [vmem:[#allocation29_spill] sm:$0xff] %v11613_v21 }
 0x12b   : > { %9355 = vmatmul.mubr.msk.f32.gmra.mrb[20].mxu0 %vm225_vm1, %v11595_v62  ;;  %v11621_v62 = vld [vmem:[#allocation2 + $0x152] sm:$0xff] }
 0x12c   : > { %9357 = vmatprep.mubr.msk.f32.mxu0 %vm225_vm1, %v11597_v15  ;;  %v11619_v15 = vld [vmem:[#allocation2 + $0x142] sm:$0xff]  ;;  %13527 = vst [vmem:[#allocation30_spill] sm:$0xff] %v11621_v62 }
 0x12f   : > { %9358 = vmatmul.mubr.msk.f32.gmra.mrb[22].mxu0 %vm225_vm1, %v11603_v41  ;;  %v11629_v41 = vld [vmem:[#allocation2 + $0x16a] sm:$0xff] }
 0x130   : > { %9360 = vmatprep.mubr.msk.f32.mxu0 %vm225_vm1, %v11605_v8  ;;  %v11627_v8 = vld [vmem:[#allocation2 + $0x15a] sm:$0xff]  ;;  %13528 = vst [vmem:[#allocation31_spill] sm:$0xff] %v11629_v41 }
 0x133   : > { %9361 = vmatmul.mubr.msk.f32.gmra.mrb[24].mxu0 %vm225_vm1, %v11611_v25 }
 0x134   : > { %9363 = vmatprep.mubr.msk.f32.mxu0 %vm225_vm1, %v11613_v21  ;;  %v11635_v21 = vld [vmem:[#allocation2 + $0x172] sm:$0xff] }
 0x137   : > { %9364 = vmatmul.mubr.msk.f32.gmra.mrb[26].mxu0 %vm225_vm1, %v11619_v15 }
 0x138   : > { %9366 = vmatprep.mubr.msk.f32.mxu0 %vm225_vm1, %v11621_v62  ;;  %v8181_v62 = vld [vmem:[%s13379_s1 + $0x14] sm:$0xf] }
 0x13b   : > { %9367 = vmatmul.mubr.msk.f32.gmra.mrb[28].mxu0 %vm225_vm1, %v11627_v8 }
 0x13c   : > { %9369 = vmatprep.mubr.msk.f32.mxu0 %vm225_vm1, %v11629_v41 }
 0x13f   : > { %9370 = vmatmul.mubr.msk.f32.gmra.mrb[30].mxu0 %vm225_vm1, %v11635_v21 }
 0x140   : > { %9374 = vmatprep.mubr.msk.f32.mxu0 %vm225_vm1, %v11370_v18  ;;  %v11703_v18 = vld [vmem:[#allocation2 + $0x180] sm:$0xff] }
 0x143   : > { %9375 = vmatmul.mubr.msk.f32.vlgmr.msra.gmra.mrb[0].mxu0 %vm225_vm1, %v11382_v24  ;;  %v11709_v24 = vld [vmem:[#allocation2 + $0x188] sm:$0xff] }
 0x144   : > { %9423 = vmatpush3.msk.msra.mxu0 %vm772_vm0, %v11514_v29  ;;  %9377 = vmatprep.mubr.msk.f32.mxu0 %vm225_vm1, %v11384_v33  ;;  %v8215_v29 = vld [vmem:[%s13379_s1 + $0x18] sm:$0xf] }
 0x145   : > { %9472 = vmatprep.subr.msk.mxu0 %vm772_vm0, %v8181_v62 }
 0x147   : > { %9378 = vmatmul.mubr.msk.f32.gmra.mrb[2].mxu0 %vm225_vm1, %v11392_v27 }
 0x148   : > { %9380 = vmatprep.mubr.msk.f32.mxu0 %vm225_vm1, %v11394_v30 }
 0x14b   : > { %9381 = vmatmul.mubr.msk.f32.gmra.mrb[4].mxu0 %vm225_vm1, %v11400_v11 }
 0x14c   : > { %9383 = vmatprep.mubr.msk.f32.mxu0 %vm225_vm1, %v11402_v32 }
 0x14f   : > { %9384 = vmatmul.mubr.msk.f32.gmra.mrb[6].mxu0 %vm225_vm1, %v11408_v40 }
 0x150   : > { %9386 = vmatprep.mubr.msk.f32.mxu0 %vm225_vm1, %v11410_v34 }
 0x153   : > { %9387 = vmatmul.mubr.msk.f32.gmra.mrb[8].mxu0 %vm225_vm1, %v11416_v38 }
 0x154   : > { %9389 = vmatprep.mubr.msk.f32.mxu0 %vm225_vm1, %v11418_v35 }
 0x157   : > { %9390 = vmatmul.mubr.msk.f32.gmra.mrb[10].mxu0 %vm225_vm1, %v11424_v53 }
 0x158   : > { %9392 = vmatprep.mubr.msk.f32.mxu0 %vm225_vm1, %v11426_v39 }
 0x15b   : > { %9393 = vmatmul.mubr.msk.f32.gmra.mrb[12].mxu0 %vm225_vm1, %v11432_v52 }
 0x15c   : > { %9395 = vmatprep.mubr.msk.f32.mxu0 %vm225_vm1, %v11434_v60 }
 0x15f   : > { %9396 = vmatmul.mubr.msk.f32.gmra.mrb[14].mxu0 %vm225_vm1, %v11440_v59 }
 0x160   : > { %9398 = vmatprep.mubr.msk.f32.mxu0 %vm225_vm1, %v11442_v2 }
 0x163   : > { %9399 = vmatmul.mubr.msk.f32.gmra.mrb[16].mxu0 %vm225_vm1, %v11448_v7 }
 0x164   : > { %9401 = vmatprep.mubr.msk.f32.mxu0 %vm225_vm1, %v11450_v13 }
 0x167   : > { %9402 = vmatmul.mubr.msk.f32.gmra.mrb[18].mxu0 %vm225_vm1, %v11456_v17 }
 0x168   : > { %9404 = vmatprep.mubr.msk.f32.mxu0 %vm225_vm1, %v11458_v28 }
 0x16b   : > { %9405 = vmatmul.mubr.msk.f32.gmra.mrb[20].mxu0 %vm225_vm1, %v11464_v37 }
 0x16c   : > { %9407 = vmatprep.mubr.msk.f32.mxu0 %vm225_vm1, %v11466_v31 }
 0x16f   : > { %9408 = vmatmul.mubr.msk.f32.gmra.mrb[22].mxu0 %vm225_vm1, %v11472_v23 }
 0x170   : > { %9410 = vmatprep.mubr.msk.f32.mxu0 %vm225_vm1, %v11476_v46 }
 0x173   : > { %9411 = vmatmul.mubr.msk.f32.gmra.mrb[24].mxu0 %vm225_vm1, %v11486_v12 }
 0x174   : > { %9413 = vmatprep.mubr.msk.f32.mxu0 %vm225_vm1, %v11488_v5 }
 0x177   : > { %9414 = vmatmul.mubr.msk.f32.gmra.mrb[26].mxu0 %vm225_vm1, %v11496_v14 }
 0x178   : > { %9416 = vmatprep.mubr.msk.f32.mxu0 %vm225_vm1, %v11498_v49 }
 0x17b   : > { %9417 = vmatmul.mubr.msk.f32.gmra.mrb[28].mxu0 %vm225_vm1, %v11504_v20 }
 0x17c   : > { %9419 = vmatprep.mubr.msk.f32.mxu0 %vm225_vm1, %v11703_v18 }
 0x17f   : > { %9420 = vmatmul.mubr.msk.f32.gmra.mrb[30].mxu0 %vm225_vm1, %v11709_v24 }
 0x180   : > { %9424 = vmatprep.mubr.msk.f32.mxu0 %vm225_vm1, %v11211_v47  ;;  %v13529_v47 = vld [vmem:[#allocation3_spill] sm:$0xff] }
 0x183   : > { %9425 = vmatmul.mubr.msk.f32.vlgmr.msra.gmra.mrb[0].mxu0 %vm225_vm1, %v11213_v36  ;;  %v13530_v36 = vld [vmem:[#allocation4_spill] sm:$0xff] }
 0x184   : > { %9473 = vmatpush3.msk.msra.mxu0 %vm772_vm0, %v8181_v62  ;;  %9427 = vmatprep.mubr.msk.f32.mxu0 %vm225_vm1, %v11215_v45  ;;  %v11776_v45 = vld [vmem:[#allocation2 + $0x181] sm:$0xff]  ;;  %v13553_v62 = vld [vmem:[#allocation27_spill] sm:$0xff] }
 0x185   : > { %9522 = vmatprep.subr.msk.mxu0 %vm772_vm0, %v8215_v29 }
 0x187   : > { %9428 = vmatmul.mubr.msk.f32.gmra.mrb[2].mxu0 %vm225_vm1, %v11254_v22  ;;  %v13531_v22 = vld [vmem:[#allocation5_spill] sm:$0xff] }
 0x188   : > { %9430 = vmatprep.mubr.msk.f32.mxu0 %vm225_vm1, %v11257_v42  ;;  %v11782_v42 = vld [vmem:[#allocation2 + $0x189] sm:$0xff] }
 0x18b   : > { %9431 = vmatmul.mubr.msk.f32.gmra.mrb[4].mxu0 %vm225_vm1, %v11269_v55  ;;  %v13532_v55 = vld [vmem:[#allocation6_spill] sm:$0xff] }
 0x18c   : > { %9433 = vmatprep.mubr.msk.f32.mxu0 %vm225_vm1, %v11271_v26  ;;  %v8249_v26 = vld [vmem:[%s13379_s1 + $0x1c] sm:$0xf] }
 0x18f   : > { %9434 = vmatmul.mubr.msk.f32.gmra.mrb[6].mxu0 %vm225_vm1, %v11277_v43  ;;  %v13533_v43 = vld [vmem:[#allocation7_spill] sm:$0xff] }
 0x190   : > { %9436 = vmatprep.mubr.msk.f32.mxu0 %vm225_vm1, %v11279_v44  ;;  %v13534_v44 = vld [vmem:[#allocation8_spill] sm:$0xff] }
 0x193   : > { %9437 = vmatmul.mubr.msk.f32.gmra.mrb[8].mxu0 %vm225_vm1, %v11285_v48  ;;  %v13535_v48 = vld [vmem:[#allocation9_spill] sm:$0xff] }
 0x194   : > { %9439 = vmatprep.mubr.msk.f32.mxu0 %vm225_vm1, %v11287_v50  ;;  %v13536_v50 = vld [vmem:[#allocation10_spill] sm:$0xff] }
 0x197   : > { %9440 = vmatmul.mubr.msk.f32.gmra.mrb[10].mxu0 %vm225_vm1, %v11293_v51  ;;  %v13537_v51 = vld [vmem:[#allocation11_spill] sm:$0xff] }
 0x198   : > { %9442 = vmatprep.mubr.msk.f32.mxu0 %vm225_vm1, %v11295_v54  ;;  %v13538_v54 = vld [vmem:[#allocation12_spill] sm:$0xff] }
 0x19b   : > { %9443 = vmatmul.mubr.msk.f32.gmra.mrb[12].mxu0 %vm225_vm1, %v11301_v56  ;;  %v13539_v56 = vld [vmem:[#allocation13_spill] sm:$0xff] }
 0x19c   : > { %9445 = vmatprep.mubr.msk.f32.mxu0 %vm225_vm1, %v11303_v57  ;;  %v13540_v57 = vld [vmem:[#allocation14_spill] sm:$0xff] }
 0x19f   : > { %9446 = vmatmul.mubr.msk.f32.gmra.mrb[14].mxu0 %vm225_vm1, %v11309_v1  ;;  %v13541_v1 = vld [vmem:[#allocation15_spill] sm:$0xff] }
 0x1a0   : > { %9448 = vmatprep.mubr.msk.f32.mxu0 %vm225_vm1, %v11311_v58  ;;  %v13542_v58 = vld [vmem:[#allocation16_spill] sm:$0xff] }
 0x1a3   : > { %9449 = vmatmul.mubr.msk.f32.gmra.mrb[16].mxu0 %vm225_vm1, %v11317_v61  ;;  %v13543_v61 = vld [vmem:[#allocation17_spill] sm:$0xff] }
 0x1a4   : > { %9451 = vmatprep.mubr.msk.f32.mxu0 %vm225_vm1, %v11319_v63  ;;  %v13544_v63 = vld [vmem:[#allocation18_spill] sm:$0xff] }
 0x1a7   : > { %9452 = vmatmul.mubr.msk.f32.gmra.mrb[18].mxu0 %vm225_vm1, %v11325_v0  ;;  %v13545_v0 = vld [vmem:[#allocation19_spill] sm:$0xff] }
 0x1a8   : > { %9454 = vmatprep.mubr.msk.f32.mxu0 %vm225_vm1, %v11327_v6  ;;  %v13546_v6 = vld [vmem:[#allocation20_spill] sm:$0xff] }
 0x1ab   : > { %9455 = vmatmul.mubr.msk.f32.gmra.mrb[20].mxu0 %vm225_vm1, %v11333_v9  ;;  %v13547_v9 = vld [vmem:[#allocation21_spill] sm:$0xff] }
 0x1ac   : > { %9457 = vmatprep.mubr.msk.f32.mxu0 %vm225_vm1, %v11335_v10  ;;  %v13548_v10 = vld [vmem:[#allocation22_spill] sm:$0xff] }
 0x1af   : > { %9458 = vmatmul.mubr.msk.f32.gmra.mrb[22].mxu0 %vm225_vm1, %v11341_v16  ;;  %v13549_v16 = vld [vmem:[#allocation23_spill] sm:$0xff] }
 0x1b0   : > { %9460 = vmatprep.mubr.msk.f32.mxu0 %vm225_vm1, %v11343_v19  ;;  %v13550_v19 = vld [vmem:[#allocation24_spill] sm:$0xff] }
 0x1b3   : > { %9461 = vmatmul.mubr.msk.f32.gmra.mrb[24].mxu0 %vm225_vm1, %v11349_v3  ;;  %v13551_v3 = vld [vmem:[#allocation25_spill] sm:$0xff] }
 0x1b4   : > { %9463 = vmatprep.mubr.msk.f32.mxu0 %vm225_vm1, %v11351_v4  ;;  %v13552_v4 = vld [vmem:[#allocation26_spill] sm:$0xff] }
 0x1b7   : > { %9464 = vmatmul.mubr.msk.f32.gmra.mrb[26].mxu0 %vm225_vm1, %v13529_v47  ;;  %v13555_v47 = vld [vmem:[#allocation29_spill] sm:$0xff] }
 0x1b8   : > { %9466 = vmatprep.mubr.msk.f32.mxu0 %vm225_vm1, %v13530_v36 }
 0x1bb   : > { %9467 = vmatmul.mubr.msk.f32.gmra.mrb[28].mxu0 %vm225_vm1, %v13531_v22 }
 0x1bc   : > { %9469 = vmatprep.mubr.msk.f32.mxu0 %vm225_vm1, %v11776_v45 }
 0x1bf   : > { %9470 = vmatmul.mubr.msk.f32.gmra.mrb[30].mxu0 %vm225_vm1, %v11782_v42 }
 0x1c0   : > { %9474 = vmatprep.mubr.msk.f32.mxu0 %vm225_vm1, %v13532_v55  ;;  %v13556_v55 = vld [vmem:[#allocation30_spill] sm:$0xff] }
 0x1c3   : > { %9475 = vmatmul.mubr.msk.f32.vlgmr.msra.gmra.mrb[0].mxu0 %vm225_vm1, %v13533_v43  ;;  %v11849_v43 = vld [vmem:[#allocation2 + $0x182] sm:$0xff] }
 0x1c4   : > { %9523 = vmatpush3.msk.msra.mxu0 %vm772_vm0, %v8215_v29  ;;  %9477 = vmatprep.mubr.msk.f32.mxu0 %vm225_vm1, %v13534_v44  ;;  %v13554_v29 = vld [vmem:[#allocation28_spill] sm:$0xff] }
 0x1c5   : > { %9572 = vmatprep.subr.msk.mxu0 %vm772_vm0, %v8249_v26 }
 0x1c7   : > { %9478 = vmatmul.mubr.msk.f32.gmra.mrb[2].mxu0 %vm225_vm1, %v13535_v48 }
 0x1c8   : > { %9480 = vmatprep.mubr.msk.f32.mxu0 %vm225_vm1, %v13536_v50 }
 0x1cb   : > { %9481 = vmatmul.mubr.msk.f32.gmra.mrb[4].mxu0 %vm225_vm1, %v13537_v51 }
 0x1cc   : > { %9483 = vmatprep.mubr.msk.f32.mxu0 %vm225_vm1, %v13538_v54 }
 0x1cf   : > { %9484 = vmatmul.mubr.msk.f32.gmra.mrb[6].mxu0 %vm225_vm1, %v13539_v56 }
 0x1d0   : > { %9486 = vmatprep.mubr.msk.f32.mxu0 %vm225_vm1, %v13540_v57 }
 0x1d3   : > { %9487 = vmatmul.mubr.msk.f32.gmra.mrb[8].mxu0 %vm225_vm1, %v13541_v1 }
 0x1d4   : > { %9489 = vmatprep.mubr.msk.f32.mxu0 %vm225_vm1, %v13542_v58 }
 0x1d7   : > { %9490 = vmatmul.mubr.msk.f32.gmra.mrb[10].mxu0 %vm225_vm1, %v13543_v61 }
 0x1d8   : > { %9492 = vmatprep.mubr.msk.f32.mxu0 %vm225_vm1, %v13544_v63 }
 0x1db   : > { %9493 = vmatmul.mubr.msk.f32.gmra.mrb[12].mxu0 %vm225_vm1, %v13545_v0 }
 0x1dc   : > { %9495 = vmatprep.mubr.msk.f32.mxu0 %vm225_vm1, %v13546_v6 }
 0x1df   : > { %9496 = vmatmul.mubr.msk.f32.gmra.mrb[14].mxu0 %vm225_vm1, %v13547_v9 }
 0x1e0   : > { %9498 = vmatprep.mubr.msk.f32.mxu0 %vm225_vm1, %v13548_v10 }
 0x1e3   : > { %9499 = vmatmul.mubr.msk.f32.gmra.mrb[16].mxu0 %vm225_vm1, %v13549_v16 }
 0x1e4   : > { %9501 = vmatprep.mubr.msk.f32.mxu0 %vm225_vm1, %v13550_v19 }
 0x1e7   : > { %9502 = vmatmul.mubr.msk.f32.gmra.mrb[18].mxu0 %vm225_vm1, %v13551_v3 }
 0x1e8   : > { %9504 = vmatprep.mubr.msk.f32.mxu0 %vm225_vm1, %v13552_v4 }
 0x1eb   : > { %9505 = vmatmul.mubr.msk.f32.gmra.mrb[20].mxu0 %vm225_vm1, %v13553_v62 }
 0x1ec   : > { %9507 = vmatprep.mubr.msk.f32.mxu0 %vm225_vm1, %v13554_v29 }
 0x1ef   : > { %9508 = vmatmul.mubr.msk.f32.gmra.mrb[22].mxu0 %vm225_vm1, %v11611_v25 }
 0x1f0   : > { %9510 = vmatprep.mubr.msk.f32.mxu0 %vm225_vm1, %v13555_v47  ;;  %v11855_v47 = vld [vmem:[#allocation2 + $0x18a] sm:$0xff] }
 0x1f3   : > { %9511 = vmatmul.mubr.msk.f32.gmra.mrb[24].mxu0 %vm225_vm1, %v11619_v15 }
 0x1f4   : > { %9513 = vmatprep.mubr.msk.f32.mxu0 %vm225_vm1, %v13556_v55 }
 0x1f7   : > { %9514 = vmatmul.mubr.msk.f32.gmra.mrb[26].mxu0 %vm225_vm1, %v11627_v8 }
 0x1f8   : > { %9516 = vmatprep.mubr.msk.f32.mxu0 %vm225_vm1, %v11629_v41  ;;  %v8283_v41 = vld [vmem:[%s13379_s1 + $0x20] sm:$0xf] }
 0x1fb   : > { %9517 = vmatmul.mubr.msk.f32.gmra.mrb[28].mxu0 %vm225_vm1, %v11635_v21 }
 0x1fc   : > { %9519 = vmatprep.mubr.msk.f32.mxu0 %vm225_vm1, %v11849_v43 }
 0x1ff   : > { %9520 = vmatmul.mubr.msk.f32.gmra.mrb[30].mxu0 %vm225_vm1, %v11855_v47 }
 0x200   : > { %9524 = vmatprep.mubr.msk.f32.mxu0 %vm225_vm1, %v11384_v33  ;;  %v2916_v33 = vld [vmem:[#allocation2 + $0x198] sm:$0xff] }
 0x203   : > { %9525 = vmatmul.mubr.msk.f32.vlgmr.msra.gmra.mrb[0].mxu0 %vm225_vm1, %v11392_v27  ;;  %v3277_v27 = vld [vmem:[#allocation2 + $0x39] sm:$0xff] }
 0x204   : > { %9573 = vmatpush3.msk.msra.mxu0 %vm772_vm0, %v8249_v26  ;;  %9527 = vmatprep.mubr.msk.f32.mxu0 %vm225_vm1, %v11394_v30  ;;  %v3278_v30 = vld [vmem:[#allocation2 + $0x49] sm:$0xff] }
 0x205   : > { %9622 = vmatprep.subr.msk.mxu0 %vm772_vm0, %v8283_v41 }
 0x207   : > { %9528 = vmatmul.mubr.msk.f32.gmra.mrb[2].mxu0 %vm225_vm1, %v11400_v11  ;;  %v3279_v11 = vld [vmem:[#allocation2 + $0x51] sm:$0xff] }
 0x208   : > { %9530 = vmatprep.mubr.msk.f32.mxu0 %vm225_vm1, %v11402_v32  ;;  %v3280_v32 = vld [vmem:[#allocation2 + $0x61] sm:$0xff] }
 0x20b   : > { %9531 = vmatmul.mubr.msk.f32.gmra.mrb[4].mxu0 %vm225_vm1, %v11408_v40  ;;  %v3281_v40 = vld [vmem:[#allocation2 + $0x69] sm:$0xff] }
 0x20c   : > { %9533 = vmatprep.mubr.msk.f32.mxu0 %vm225_vm1, %v11410_v34  ;;  %v3282_v34 = vld [vmem:[#allocation2 + $0x79] sm:$0xff] }
 0x20f   : > { %9534 = vmatmul.mubr.msk.f32.gmra.mrb[6].mxu0 %vm225_vm1, %v11416_v38  ;;  %v3283_v38 = vld [vmem:[#allocation2 + $0x81] sm:$0xff] }
 0x210   : > { %9536 = vmatprep.mubr.msk.f32.mxu0 %vm225_vm1, %v11418_v35  ;;  %v3284_v35 = vld [vmem:[#allocation2 + $0x91] sm:$0xff] }
 0x213   : > { %9537 = vmatmul.mubr.msk.f32.gmra.mrb[8].mxu0 %vm225_vm1, %v11424_v53  ;;  %v3285_v53 = vld [vmem:[#allocation2 + $0x99] sm:$0xff] }
 0x214   : > { %9539 = vmatprep.mubr.msk.f32.mxu0 %vm225_vm1, %v11426_v39  ;;  %v3286_v39 = vld [vmem:[#allocation2 + $0xa9] sm:$0xff] }
 0x217   : > { %9540 = vmatmul.mubr.msk.f32.gmra.mrb[10].mxu0 %vm225_vm1, %v11432_v52  ;;  %v3287_v52 = vld [vmem:[#allocation2 + $0xb1] sm:$0xff] }
 0x218   : > { %9542 = vmatprep.mubr.msk.f32.mxu0 %vm225_vm1, %v11434_v60  ;;  %v3288_v60 = vld [vmem:[#allocation2 + $0xc1] sm:$0xff] }
 0x21b   : > { %9543 = vmatmul.mubr.msk.f32.gmra.mrb[12].mxu0 %vm225_vm1, %v11440_v59  ;;  %v3289_v59 = vld [vmem:[#allocation2 + $0xc9] sm:$0xff] }
 0x21c   : > { %9545 = vmatprep.mubr.msk.f32.mxu0 %vm225_vm1, %v11442_v2  ;;  %v3290_v2 = vld [vmem:[#allocation2 + $0xd9] sm:$0xff] }
 0x21f   : > { %9546 = vmatmul.mubr.msk.f32.gmra.mrb[14].mxu0 %vm225_vm1, %v11448_v7  ;;  %v3291_v7 = vld [vmem:[#allocation2 + $0xe1] sm:$0xff] }
 0x220   : > { %9548 = vmatprep.mubr.msk.f32.mxu0 %vm225_vm1, %v11450_v13  ;;  %v3292_v13 = vld [vmem:[#allocation2 + $0xf1] sm:$0xff] }
 0x223   : > { %9549 = vmatmul.mubr.msk.f32.gmra.mrb[16].mxu0 %vm225_vm1, %v11456_v17  ;;  %v3293_v17 = vld [vmem:[#allocation2 + $0xf9] sm:$0xff] }
 0x224   : > { %9551 = vmatprep.mubr.msk.f32.mxu0 %vm225_vm1, %v11458_v28  ;;  %v3294_v28 = vld [vmem:[#allocation2 + $0x109] sm:$0xff] }
 0x227   : > { %9552 = vmatmul.mubr.msk.f32.gmra.mrb[18].mxu0 %vm225_vm1, %v11464_v37  ;;  %v3295_v37 = vld [vmem:[#allocation2 + $0x111] sm:$0xff] }
 0x228   : > { %9554 = vmatprep.mubr.msk.f32.mxu0 %vm225_vm1, %v11466_v31  ;;  %v3296_v31 = vld [vmem:[#allocation2 + $0x121] sm:$0xff] }
 0x22b   : > { %9555 = vmatmul.mubr.msk.f32.gmra.mrb[20].mxu0 %vm225_vm1, %v11472_v23  ;;  %v3297_v23 = vld [vmem:[#allocation2 + $0x129] sm:$0xff] }
 0x22c   : > { %9557 = vmatprep.mubr.msk.f32.mxu0 %vm225_vm1, %v11476_v46  ;;  %v3298_v46 = vld [vmem:[#allocation2 + $0x139] sm:$0xff] }
 0x22f   : > { %9558 = vmatmul.mubr.msk.f32.gmra.mrb[22].mxu0 %vm225_vm1, %v11486_v12  ;;  %v2917_v12 = vld [vmem:[#allocation2 + $0x1a0] sm:$0xff] }
 0x230   : > { %9560 = vmatprep.mubr.msk.f32.mxu0 %vm225_vm1, %v11488_v5  ;;  %v3276_v5 = vld [vmem:[#allocation2 + $0x31] sm:$0xff] }
 0x233   : > { %9561 = vmatmul.mubr.msk.f32.gmra.mrb[24].mxu0 %vm225_vm1, %v11496_v14  ;;  %v3299_v14 = vld [vmem:[#allocation2 + $0x141] sm:$0xff] }
 0x234   : > { %9563 = vmatprep.mubr.msk.f32.mxu0 %vm225_vm1, %v11498_v49  ;;  %v3300_v49 = vld [vmem:[#allocation2 + $0x151] sm:$0xff] }
 0x237   : > { %9564 = vmatmul.mubr.msk.f32.gmra.mrb[26].mxu0 %vm225_vm1, %v11504_v20  ;;  %v3301_v20 = vld [vmem:[#allocation2 + $0x159] sm:$0xff] }
 0x238   : > { %9566 = vmatprep.mubr.msk.f32.mxu0 %vm225_vm1, %v11703_v18  ;;  %v3307_v18 = vld [vmem:[#allocation2 + $0x1a1] sm:$0xff] }
 0x23b   : > { %9567 = vmatmul.mubr.msk.f32.gmra.mrb[28].mxu0 %vm225_vm1, %v11709_v24  ;;  %v13557_v24 = vld [vmem:[#allocation29_spill] sm:$0xff] }
 0x23c   : > { %9569 = vmatprep.mubr.msk.f32.mxu0 %vm225_vm1, %v2916_v33 }
 0x23f   : > { %9570 = vmatmul.mubr.msk.f32.gmra.mrb[30].mxu0 %vm225_vm1, %v2917_v12 }
 0x240   : > { %9574 = vmatprep.mubr.msk.f32.mxu0 %vm225_vm1, %v3276_v5 }
 0x243   : > { %9575 = vmatmul.mubr.msk.f32.vlgmr.msra.gmra.mrb[0].mxu0 %vm225_vm1, %v3277_v27 }
 0x244   : > { %9623 = vmatpush3.msk.msra.mxu0 %vm772_vm0, %v8283_v41  ;;  %9577 = vmatprep.mubr.msk.f32.mxu0 %vm225_vm1, %v3278_v30  ;;  %v3306_v41 = vld [vmem:[#allocation2 + $0x199] sm:$0xff] }
 0x247   : > { %9578 = vmatmul.mubr.msk.f32.gmra.mrb[2].mxu0 %vm225_vm1, %v3279_v11 }
 0x248   : > { %9580 = vmatprep.mubr.msk.f32.mxu0 %vm225_vm1, %v3280_v32 }
 0x24b   : > { %9581 = vmatmul.mubr.msk.f32.gmra.mrb[4].mxu0 %vm225_vm1, %v3281_v40 }
 0x24c   : > { %9583 = vmatprep.mubr.msk.f32.mxu0 %vm225_vm1, %v3282_v34 }
 0x24f   : > { %9584 = vmatmul.mubr.msk.f32.gmra.mrb[6].mxu0 %vm225_vm1, %v3283_v38 }
 0x250   : > { %9586 = vmatprep.mubr.msk.f32.mxu0 %vm225_vm1, %v3284_v35 }
 0x253   : > { %9587 = vmatmul.mubr.msk.f32.gmra.mrb[8].mxu0 %vm225_vm1, %v3285_v53 }
 0x254   : > { %9589 = vmatprep.mubr.msk.f32.mxu0 %vm225_vm1, %v3286_v39 }
 0x257   : > { %9590 = vmatmul.mubr.msk.f32.gmra.mrb[10].mxu0 %vm225_vm1, %v3287_v52 }
 0x258   : > { %9592 = vmatprep.mubr.msk.f32.mxu0 %vm225_vm1, %v3288_v60 }
 0x25b   : > { %9593 = vmatmul.mubr.msk.f32.gmra.mrb[12].mxu0 %vm225_vm1, %v3289_v59 }
 0x25c   : > { %9595 = vmatprep.mubr.msk.f32.mxu0 %vm225_vm1, %v3290_v2 }
 0x25f   : > { %9596 = vmatmul.mubr.msk.f32.gmra.mrb[14].mxu0 %vm225_vm1, %v3291_v7 }
 0x260   : > { %9598 = vmatprep.mubr.msk.f32.mxu0 %vm225_vm1, %v3292_v13 }
 0x263   : > { %9599 = vmatmul.mubr.msk.f32.gmra.mrb[16].mxu0 %vm225_vm1, %v3293_v17 }
 0x264   : > { %9601 = vmatprep.mubr.msk.f32.mxu0 %vm225_vm1, %v3294_v28 }
 0x267   : > { %9602 = vmatmul.mubr.msk.f32.gmra.mrb[18].mxu0 %vm225_vm1, %v3295_v37 }
 0x268   : > { %9604 = vmatprep.mubr.msk.f32.mxu0 %vm225_vm1, %v3296_v31 }
 0x26b   : > { %9605 = vmatmul.mubr.msk.f32.gmra.mrb[20].mxu0 %vm225_vm1, %v3297_v23 }
 0x26c   : > { %9607 = vmatprep.mubr.msk.f32.mxu0 %vm225_vm1, %v3298_v46 }
 0x26f   : > { %9608 = vmatmul.mubr.msk.f32.gmra.mrb[22].mxu0 %vm225_vm1, %v3299_v14 }
 0x270   : > { %9610 = vmatprep.mubr.msk.f32.mxu0 %vm225_vm1, %v3300_v49 }
 0x273   : > { %9611 = vmatmul.mubr.msk.f32.gmra.mrb[24].mxu0 %vm225_vm1, %v3301_v20 }
 0x274   : > { %9613 = vmatprep.mubr.msk.f32.mxu0 %vm225_vm1, %v13530_v36  ;;  %v13558_v36 = vld [vmem:[#allocation31_spill] sm:$0xff] }
 0x277   : > { %9614 = vmatmul.mubr.msk.f32.gmra.mrb[26].mxu0 %vm225_vm1, %v13531_v22  ;;  %v4434_v22 = vld [vmem:[#allocation2 + $0x9] sm:$0xff] }
 0x278   : > { %9616 = vmatprep.mubr.msk.f32.mxu0 %vm225_vm1, %v11776_v45  ;;  %v4432_v45 = vld [vmem:[%s13381_s3] sm:$0xf] }
 0x27b   : > { %9617 = vmatmul.mubr.msk.f32.gmra.mrb[28].mxu0 %vm225_vm1, %v11782_v42  ;;  %v12040_v42 = vld [vmem:[%s13380_s2] ss:$0 sm:$0xff] }
 0x27c   : > { %9619 = vmatprep.mubr.msk.f32.mxu0 %vm225_vm1, %v3306_v41 }
 0x27f   : > { %9620 = vmatmul.mubr.msk.f32.gmra.mrb[30].mxu0 %vm225_vm1, %v3307_v18 }
 0x280   : > { %9624 = vmatprep.mubr.msk.f32.mxu0 %vm225_vm1, %v13534_v44 }
 0x283   : > { %9625 = vmatmul.mubr.msk.f32.vlgmr.msra.gmra.mrb[0].mxu0 %vm225_vm1, %v13535_v48 }
 0x284   : > { %9627 = vmatprep.mubr.msk.f32.mxu0 %vm225_vm1, %v13536_v50 }
 0x287   : > { %9628 = vmatmul.mubr.msk.f32.gmra.mrb[2].mxu0 %vm225_vm1, %v13537_v51 }
 0x288   : > { %9630 = vmatprep.mubr.msk.f32.mxu0 %vm225_vm1, %v13538_v54 }
 0x28b   : > { %9631 = vmatmul.mubr.msk.f32.gmra.mrb[4].mxu0 %vm225_vm1, %v13539_v56 }
 0x28c   : > { %9633 = vmatprep.mubr.msk.f32.mxu0 %vm225_vm1, %v13540_v57 }
 0x28f   : > { %9634 = vmatmul.mubr.msk.f32.gmra.mrb[6].mxu0 %vm225_vm1, %v13541_v1 }
 0x290   : > { %9636 = vmatprep.mubr.msk.f32.mxu0 %vm225_vm1, %v13542_v58 }
 0x293   : > { %9637 = vmatmul.mubr.msk.f32.gmra.mrb[8].mxu0 %vm225_vm1, %v13543_v61 }
 0x294   : > { %9639 = vmatprep.mubr.msk.f32.mxu0 %vm225_vm1, %v13544_v63 }
 0x297   : > { %9640 = vmatmul.mubr.msk.f32.gmra.mrb[10].mxu0 %vm225_vm1, %v13545_v0 }
 0x298   : > { %9642 = vmatprep.mubr.msk.f32.mxu0 %vm225_vm1, %v13546_v6 }
 0x29b   : > { %9643 = vmatmul.mubr.msk.f32.gmra.mrb[12].mxu0 %vm225_vm1, %v13547_v9 }
 0x29c   : > { %9645 = vmatprep.mubr.msk.f32.mxu0 %vm225_vm1, %v13548_v10 }
 0x29f   : > { %9646 = vmatmul.mubr.msk.f32.gmra.mrb[14].mxu0 %vm225_vm1, %v13549_v16 }
 0x2a0   : > { %9648 = vmatprep.mubr.msk.f32.mxu0 %vm225_vm1, %v13550_v19 }
 0x2a3   : > { %9649 = vmatmul.mubr.msk.f32.gmra.mrb[16].mxu0 %vm225_vm1, %v13551_v3 }
 0x2a4   : > { %9651 = vmatprep.mubr.msk.f32.mxu0 %vm225_vm1, %v13552_v4 }
 0x2a7   : > { %9652 = vmatmul.mubr.msk.f32.gmra.mrb[18].mxu0 %vm225_vm1, %v13553_v62 }
 0x2a8   : > { %9654 = vmatprep.mubr.msk.f32.mxu0 %vm225_vm1, %v13554_v29 }
 0x2ab   : > { %9655 = vmatmul.mubr.msk.f32.gmra.mrb[20].mxu0 %vm225_vm1, %v11611_v25  ;;  %v3696_v25 = vld [vmem:[#allocation2 + $0x19a] sm:$0xff] }
 0x2ac   : > { %9657 = vmatprep.mubr.msk.f32.mxu0 %vm225_vm1, %v13557_v24 }
 0x2af   : > { %9658 = vmatmul.mubr.msk.f32.gmra.mrb[22].mxu0 %vm225_vm1, %v11619_v15  ;;  %v3697_v15 = vld [vmem:[#allocation2 + $0x1a2] sm:$0xff] }
 0x2b0   : > { %9660 = vmatprep.mubr.msk.f32.mxu0 %vm225_vm1, %v13556_v55 }
 0x2b3   : > { %9661 = vmatmul.mubr.msk.f32.gmra.mrb[24].mxu0 %vm225_vm1, %v11627_v8  ;;  %v8318_v8 = vld [vmem:[%s13381_s3 + $0x4] sm:$0xf] }
 0x2b4   : > { %9663 = vmatprep.mubr.msk.f32.mxu0 %vm225_vm1, %v13558_v36  ;;  %9672 = vmatprep.subr.msk.mxu1 %vm772_vm0, %v8318_v8 }
 0x2b5   : > { %9673 = vmatpush3.msk.msra.mxu1 %vm772_vm0, %v8318_v8 }
 0x2b6   : > { %9722 = vmatprep.subr.msk.mxu1 %vm772_vm0, %v4432_v45 }
 0x2b7   : > { %9664 = vmatmul.mubr.msk.f32.gmra.mrb[26].mxu0 %vm225_vm1, %v11635_v21  ;;  %v4433_v21 = vld [vmem:[#allocation2 + $0x1] sm:$0xff] }
 0x2b8   : > { %9666 = vmatprep.mubr.msk.f32.mxu0 %vm225_vm1, %v11849_v43  ;;  %9674 = vmatprep.mubr.msk.f32.mxu1 %vm225_vm1, %v4433_v21 }
 0x2b9   : > { %9675 = vmatmul.mubr.msk.f32.vlgmr.msra.gmra.mrb[0].mxu1 %vm225_vm1, %v4434_v22 }
 0x2ba   : > { %9723 = vmatpush3.msk.msra.mxu1 %vm772_vm0, %v4432_v45 }
 0x2bb   : > { %9667 = vmatmul.mubr.msk.f32.gmra.mrb[28].mxu0 %vm225_vm1, %v11855_v47 }
 0x2bc   : > { %9669 = vmatprep.mubr.msk.f32.mxu0 %vm225_vm1, %v3696_v25 }
 0x2bf   : > { %9670 = vmatmul.mubr.msk.f32.gmra.mrb[30].mxu0 %vm225_vm1, %v3697_v15 }
 0x356   : > { %v9626_v26 = vpop.f32.mrb[0].mxu0 }
 0x357   : > { %v12043_v44 = vadd.f32 %v9626_v26, %v12040_v42  ;;  %v3865_v48 = vpop.f32.mrb[1].mxu0 }
 0x358   : > { %v12046_v50 = vadd.f32 %v12040_v42, %v3865_v48 }
 0x359   : > { %v4166_v51 = vmul.f32 %v12043_v44, %v12043_v44  ;;  %v4096_v54 = vsel %vm225_vm1, %v12043_v44, 0.0 }
 0x35a   : > { %v4095_v56 = vsel %vm225_vm1, %v12046_v50, 0.0  ;;  %v4165_v57 = vmul.f32 %v12046_v50, %v12046_v50  ;;  %v9629_v1 = vpop.f32.mrb[2].mxu0 }
 0x35b   : > { %v12057_v58 = vadd.f32 %v9629_v1, %v12040_v42  ;;  %v3875_v61 = vpop.f32.mrb[3].mxu0  ;;  %v4198_v63 = vsel %vm225_vm1, %v4166_v51, 0.0  ;;  %v4097_v9 = vadd.f32 %v4096_v54, %v4095_v56 }
 0x35c   : > { %v4197_v0 = vsel %vm225_vm1, %v4165_v57, 0.0  ;;  %v12062_v6 = vadd.f32 %v12040_v42, %v3875_v61 }
 0x35d   : > { %v4168_v10 = vmul.f32 %v12057_v58, %v12057_v58  ;;  %v4199_v4 = vadd.f32 %v4198_v63, %v4197_v0  ;;  %v4100_v55 = vsel %vm225_vm1, %v12057_v58, 0.0 }
 0x35e   : > { %v4098_v16 = vsel %vm225_vm1, %v12062_v6, 0.0  ;;  %v4167_v19 = vmul.f32 %v12062_v6, %v12062_v6  ;;  %v9632_v3 = vpop.f32.mrb[4].mxu0 }
 0x35f   : > { %v4099_v62 = vadd.f32 %v4098_v16, %v4097_v9  ;;  %v12071_v29 = vadd.f32 %v9632_v3, %v12040_v42  ;;  %v3885_v47 = vpop.f32.mrb[5].mxu0  ;;  %v4202_v27 = vsel %vm225_vm1, %v4168_v10, 0.0 }
 0x360   : > { %v4200_v43 = vsel %vm225_vm1, %v4167_v19, 0.0  ;;  %v12077_v33 = vadd.f32 %v12040_v42, %v3885_v47 }
 0x361   : > { %v4201_v12 = vadd.f32 %v4200_v43, %v4199_v4  ;;  %v4101_v5 = vadd.f32 %v4100_v55, %v4099_v62  ;;  %v4170_v30 = vmul.f32 %v12071_v29, %v12071_v29  ;;  %v4104_v39 = vsel %vm225_vm1, %v12071_v29, 0.0 }
 0x362   : > { %v4102_v11 = vsel %vm225_vm1, %v12077_v33, 0.0  ;;  %v4169_v32 = vmul.f32 %v12077_v33, %v12077_v33  ;;  %v9635_v40 = vpop.f32.mrb[6].mxu0 }
 0x363   : > { %v4103_v34 = vadd.f32 %v4102_v11, %v4101_v5  ;;  %v4203_v38 = vadd.f32 %v4202_v27, %v4201_v12  ;;  %v12087_v35 = vadd.f32 %v9635_v40, %v12040_v42  ;;  %v3895_v53 = vpop.f32.mrb[7].mxu0  ;;  %v4206_v7 = vsel %vm225_vm1, %v4170_v30, 0.0 }
 0x364   : > { %v4204_v52 = vsel %vm225_vm1, %v4169_v32, 0.0  ;;  %v12093_v60 = vadd.f32 %v12040_v42, %v3895_v53 }
 0x365   : > { %v4205_v59 = vadd.f32 %v4204_v52, %v4203_v38  ;;  %v4105_v2 = vadd.f32 %v4104_v39, %v4103_v34  ;;  %v4172_v13 = vmul.f32 %v12087_v35, %v12087_v35  ;;  %v4108_v49 = vsel %vm225_vm1, %v12087_v35, 0.0 }
 0x366   : > { %v4106_v17 = vsel %vm225_vm1, %v12093_v60, 0.0  ;;  %v4171_v28 = vmul.f32 %v12093_v60, %v12093_v60  ;;  %v9638_v37 = vpop.f32.mrb[8].mxu0 }
 0x367   : > { %v4107_v31 = vadd.f32 %v4106_v17, %v4105_v2  ;;  %v4207_v23 = vadd.f32 %v4206_v7, %v4205_v59  ;;  %v12103_v46 = vadd.f32 %v9638_v37, %v12040_v42  ;;  %v3905_v14 = vpop.f32.mrb[9].mxu0  ;;  %v4210_v36 = vsel %vm225_vm1, %v4172_v13, 0.0 }
 0x368   : > { %v4208_v20 = vsel %vm225_vm1, %v4171_v28, 0.0  ;;  %v12109_v41 = vadd.f32 %v12040_v42, %v3905_v14 }
 0x369   : > { %v4209_v18 = vadd.f32 %v4208_v20, %v4207_v23  ;;  %v4109_v24 = vadd.f32 %v4108_v49, %v4107_v31  ;;  %v4174_v25 = vmul.f32 %v12103_v46, %v12103_v46  ;;  %v4112_v51 = vsel %vm225_vm1, %v12103_v46, 0.0 }
 0x36a   : > { %v4110_v15 = vsel %vm225_vm1, %v12109_v41, 0.0  ;;  %v4173_v8 = vmul.f32 %v12109_v41, %v12109_v41  ;;  %v9641_v21 = vpop.f32.mrb[10].mxu0 }
 0x36b   : > { %v4111_v45 = vadd.f32 %v4110_v15, %v4109_v24  ;;  %v4211_v22 = vadd.f32 %v4210_v36, %v4209_v18  ;;  %v12119_v26 = vadd.f32 %v9641_v21, %v12040_v42  ;;  %v3915_v48 = vpop.f32.mrb[11].mxu0  ;;  %v4214_v61 = vsel %vm225_vm1, %v4174_v25, 0.0 }
 0x36c   : > { %v4212_v54 = vsel %vm225_vm1, %v4173_v8, 0.0  ;;  %v12125_v56 = vadd.f32 %v12040_v42, %v3915_v48 }
 0x36d   : > { %v4213_v57 = vadd.f32 %v4212_v54, %v4211_v22  ;;  %v4113_v1 = vadd.f32 %v4112_v51, %v4111_v45  ;;  %v4176_v63 = vmul.f32 %v12119_v26, %v12119_v26  ;;  %v4116_v62 = vsel %vm225_vm1, %v12119_v26, 0.0 }
 0x36e   : > { %v4114_v0 = vsel %vm225_vm1, %v12125_v56, 0.0  ;;  %v4175_v9 = vmul.f32 %v12125_v56, %v12125_v56  ;;  %v9644_v10 = vpop.f32.mrb[12].mxu0 }
 0x36f   : > { %v4115_v16 = vadd.f32 %v4114_v0, %v4113_v1  ;;  %v4215_v19 = vadd.f32 %v4214_v61, %v4213_v57  ;;  %v12135_v3 = vadd.f32 %v9644_v10, %v12040_v42  ;;  %v3925_v4 = vpop.f32.mrb[13].mxu0  ;;  %v4218_v5 = vsel %vm225_vm1, %v4176_v63, 0.0 }
 0x370   : > { %v4216_v47 = vsel %vm225_vm1, %v4175_v9, 0.0  ;;  %v12141_v55 = vadd.f32 %v12040_v42, %v3925_v4 }
 0x371   : > { %v4217_v43 = vadd.f32 %v4216_v47, %v4215_v19  ;;  %v4117_v12 = vadd.f32 %v4116_v62, %v4115_v16  ;;  %v4178_v27 = vmul.f32 %v12135_v3, %v12135_v3  ;;  %v4120_v39 = vsel %vm225_vm1, %v12135_v3, 0.0 }
 0x372   : > { %v4118_v30 = vsel %vm225_vm1, %v12141_v55, 0.0  ;;  %v4177_v11 = vmul.f32 %v12141_v55, %v12141_v55  ;;  %v9647_v32 = vpop.f32.mrb[14].mxu0 }
 0x373   : > { %v4119_v40 = vadd.f32 %v4118_v30, %v4117_v12  ;;  %v4219_v34 = vadd.f32 %v4218_v5, %v4217_v43  ;;  %v12151_v38 = vadd.f32 %v9647_v32, %v12040_v42  ;;  %v3935_v53 = vpop.f32.mrb[15].mxu0  ;;  %v4222_v13 = vsel %vm225_vm1, %v4178_v27, 0.0 }
 0x374   : > { %v4220_v52 = vsel %vm225_vm1, %v4177_v11, 0.0  ;;  %v12157_v59 = vadd.f32 %v12040_v42, %v3935_v53 }
 0x375   : > { %v4221_v2 = vadd.f32 %v4220_v52, %v4219_v34  ;;  %v4121_v7 = vadd.f32 %v4120_v39, %v4119_v40  ;;  %v4180_v17 = vmul.f32 %v12151_v38, %v12151_v38  ;;  %v4124_v18 = vsel %vm225_vm1, %v12151_v38, 0.0 }
 0x376   : > { %v4122_v28 = vsel %vm225_vm1, %v12157_v59, 0.0  ;;  %v4179_v37 = vmul.f32 %v12157_v59, %v12157_v59  ;;  %v9650_v31 = vpop.f32.mrb[16].mxu0 }
 0x377   : > { %v4123_v23 = vadd.f32 %v4122_v28, %v4121_v7  ;;  %v4223_v14 = vadd.f32 %v4222_v13, %v4221_v2  ;;  %v12167_v49 = vadd.f32 %v9650_v31, %v12040_v42  ;;  %v3945_v20 = vpop.f32.mrb[17].mxu0  ;;  %v4226_v8 = vsel %vm225_vm1, %v4180_v17, 0.0 }
 0x378   : > { %v4224_v24 = vsel %vm225_vm1, %v4179_v37, 0.0  ;;  %v12173_v36 = vadd.f32 %v12040_v42, %v3945_v20 }
 0x379   : > { %v4225_v25 = vadd.f32 %v4224_v24, %v4223_v14  ;;  %v4125_v15 = vadd.f32 %v4124_v18, %v4123_v23  ;;  %v4182_v21 = vmul.f32 %v12167_v49, %v12167_v49  ;;  %v4128_v61 = vsel %vm225_vm1, %v12167_v49, 0.0 }
 0x37a   : > { %v4126_v45 = vsel %vm225_vm1, %v12173_v36, 0.0  ;;  %v4181_v22 = vmul.f32 %v12173_v36, %v12173_v36  ;;  %v9653_v48 = vpop.f32.mrb[18].mxu0 }
 0x37b   : > { %v4127_v51 = vadd.f32 %v4126_v45, %v4125_v15  ;;  %v4227_v54 = vadd.f32 %v4226_v8, %v4225_v25  ;;  %v12183_v57 = vadd.f32 %v9653_v48, %v12040_v42  ;;  %v3955_v1 = vpop.f32.mrb[19].mxu0  ;;  %v4230_v16 = vsel %vm225_vm1, %v4182_v21, 0.0 }
 0x37c   : > { %v4228_v63 = vsel %vm225_vm1, %v4181_v22, 0.0  ;;  %v12189_v0 = vadd.f32 %v12040_v42, %v3955_v1 }
 0x37d   : > { %v4229_v9 = vadd.f32 %v4228_v63, %v4227_v54  ;;  %v4129_v10 = vadd.f32 %v4128_v61, %v4127_v51  ;;  %v4184_v19 = vmul.f32 %v12183_v57, %v12183_v57  ;;  %v4132_v30 = vsel %vm225_vm1, %v12183_v57, 0.0  ;;  %v12242_v63 = vld [vmem:[%s13381_s3 + $0x8] sm:$0xf] }
 0x37e   : > { %v4130_v4 = vsel %vm225_vm1, %v12189_v0, 0.0  ;;  %v4183_v62 = vmul.f32 %v12189_v0, %v12189_v0  ;;  %v9656_v47 = vpop.f32.mrb[20].mxu0  ;;  %9772 = vmatprep.subr.msk.mxu1 %vm772_vm0, %v12242_v63 }
 0x37f   : > { %v4131_v43 = vadd.f32 %v4130_v4, %v4129_v10  ;;  %v4231_v12 = vadd.f32 %v4230_v16, %v4229_v9  ;;  %v12199_v5 = vadd.f32 %v9656_v47, %v12040_v42  ;;  %v3965_v27 = vpop.f32.mrb[21].mxu0  ;;  %v4234_v53 = vsel %vm225_vm1, %v4184_v19, 0.0 }
 0x380   : > { %v4232_v11 = vsel %vm225_vm1, %v4183_v62, 0.0  ;;  %v12205_v32 = vadd.f32 %v12040_v42, %v3965_v27 }
 0x381   : > { %v4233_v40 = vadd.f32 %v4232_v11, %v4231_v12  ;;  %v4133_v34 = vadd.f32 %v4132_v30, %v4131_v43  ;;  %v4186_v39 = vmul.f32 %v12199_v5, %v12199_v5  ;;  %v4136_v31 = vsel %vm225_vm1, %v12199_v5, 0.0 }
 0x382   : > { %v4134_v52 = vsel %vm225_vm1, %v12205_v32, 0.0  ;;  %v4185_v2 = vmul.f32 %v12205_v32, %v12205_v32  ;;  %v9659_v7 = vpop.f32.mrb[22].mxu0 }
 0x383   : > { %v4135_v13 = vadd.f32 %v4134_v52, %v4133_v34  ;;  %v4235_v17 = vadd.f32 %v4234_v53, %v4233_v40  ;;  %v12215_v28 = vadd.f32 %v9659_v7, %v12040_v42  ;;  %v3975_v37 = vpop.f32.mrb[23].mxu0  ;;  %v4238_v24 = vsel %vm225_vm1, %v4186_v39, 0.0 }
 0x384   : > { %v4236_v23 = vsel %vm225_vm1, %v4185_v2, 0.0  ;;  %v12221_v14 = vadd.f32 %v12040_v42, %v3975_v37 }
 0x385   : > { %v4237_v20 = vadd.f32 %v4236_v23, %v4235_v17  ;;  %v4137_v18 = vadd.f32 %v4136_v31, %v4135_v13  ;;  %v4188_v25 = vmul.f32 %v12215_v28, %v12215_v28  ;;  %v4140_v54 = vsel %vm225_vm1, %v12215_v28, 0.0 }
 0x386   : > { %v4138_v15 = vsel %vm225_vm1, %v12221_v14, 0.0  ;;  %v4187_v8 = vmul.f32 %v12221_v14, %v12221_v14  ;;  %v9662_v21 = vpop.f32.mrb[24].mxu0 }
 0x387   : > { %v4139_v45 = vadd.f32 %v4138_v15, %v4137_v18  ;;  %v4239_v22 = vadd.f32 %v4238_v24, %v4237_v20  ;;  %v12231_v48 = vadd.f32 %v9662_v21, %v12040_v42  ;;  %v3985_v51 = vpop.f32.mrb[25].mxu0  ;;  %v4242_v16 = vsel %vm225_vm1, %v4188_v25, 0.0 }
 0x388   : > { %v4240_v1 = vsel %vm225_vm1, %v4187_v8, 0.0  ;;  %v12237_v61 = vadd.f32 %v12040_v42, %v3985_v51 }
 0x389   : > { %v4241_v9 = vadd.f32 %v4240_v1, %v4239_v22  ;;  %v4141_v10 = vadd.f32 %v4140_v54, %v4139_v45  ;;  %v4190_v19 = vmul.f32 %v12231_v48, %v12231_v48  ;;  %v4144_v11 = vsel %vm225_vm1, %v12231_v48, 0.0 }
 0x38a   : > { %v4142_v4 = vsel %vm225_vm1, %v12237_v61, 0.0  ;;  %v4189_v62 = vmul.f32 %v12237_v61, %v12237_v61  ;;  %v9665_v47 = vpop.f32.mrb[26].mxu0 }
 0x38b   : > { %v4143_v43 = vadd.f32 %v4142_v4, %v4141_v10  ;;  %v4243_v12 = vadd.f32 %v4242_v16, %v4241_v9  ;;  %v12254_v27 = vadd.f32 %v9665_v47, %v12040_v42  ;;  %v3995_v30 = vpop.f32.mrb[27].mxu0  ;;  %v4246_v52 = vsel %vm225_vm1, %v4190_v19, 0.0 }
 0x38c   : > { %v4244_v40 = vsel %vm225_vm1, %v4189_v62, 0.0  ;;  %v12260_v34 = vadd.f32 %v12040_v42, %v3995_v30 }
 0x38d   : > { %v4245_v53 = vadd.f32 %v4244_v40, %v4243_v12  ;;  %v4145_v39 = vadd.f32 %v4144_v11, %v4143_v43  ;;  %v4192_v2 = vmul.f32 %v12254_v27, %v12254_v27  ;;  %v4148_v18 = vsel %vm225_vm1, %v12254_v27, 0.0 }
 0x38e   : > { %v4146_v7 = vsel %vm225_vm1, %v12260_v34, 0.0  ;;  %v4191_v13 = vmul.f32 %v12260_v34, %v12260_v34  ;;  %v9668_v17 = vpop.f32.mrb[28].mxu0 }
 0x38f   : > { %v4147_v37 = vadd.f32 %v4146_v7, %v4145_v39  ;;  %v4247_v31 = vadd.f32 %v4246_v52, %v4245_v53  ;;  %v12270_v23 = vadd.f32 %v9668_v17, %v12040_v42  ;;  %v4005_v20 = vpop.f32.mrb[29].mxu0  ;;  %v4250_v21 = vsel %vm225_vm1, %v4192_v2, 0.0 }
 0x390   : > { %v4248_v24 = vsel %vm225_vm1, %v4191_v13, 0.0  ;;  %v12276_v25 = vadd.f32 %v12040_v42, %v4005_v20 }
 0x391   : > { %v4249_v15 = vadd.f32 %v4248_v24, %v4247_v31  ;;  %v4149_v8 = vadd.f32 %v4148_v18, %v4147_v37  ;;  %v4194_v45 = vmul.f32 %v12270_v23, %v12270_v23  ;;  %v4152_v19 = vsel %vm225_vm1, %v12270_v23, 0.0 }
 0x392   : > { %v4150_v22 = vsel %vm225_vm1, %v12276_v25, 0.0  ;;  %v4193_v51 = vmul.f32 %v12276_v25, %v12276_v25  ;;  %v9671_v54 = vpop.f32.mrb[30].mxu0 }
 0x393   : > { %v4151_v1 = vadd.f32 %v4150_v22, %v4149_v8  ;;  %v4251_v9 = vadd.f32 %v4250_v21, %v4249_v15  ;;  %v12286_v10 = vadd.f32 %v9671_v54, %v12040_v42  ;;  %v4015_v16 = vpop.f32.mrb[31].mxu0  ;;  %v4254_v12 = vsel %vm225_vm1, %v4194_v45, 0.0 }
 0x394   : > { %v4252_v4 = vsel %vm225_vm1, %v4193_v51, 0.0  ;;  %v12292_v62 = vadd.f32 %v12040_v42, %v4015_v16 }
 0x395   : > { %v4253_v47 = vadd.f32 %v4252_v4, %v4251_v9  ;;  %v4153_v43 = vadd.f32 %v4152_v19, %v4151_v1  ;;  %v4196_v30 = vmul.f32 %v12286_v10, %v12286_v10  ;;  %v4156_v52 = vsel %vm225_vm1, %v12286_v10, 0.0 }
 0x396   : > { %v4154_v11 = vsel %vm225_vm1, %v12292_v62, 0.0  ;;  %v4195_v40 = vmul.f32 %v12292_v62, %v12292_v62 }
 0x397   : > { %v4155_v53 = vadd.f32 %v4154_v11, %v4153_v43  ;;  %v4255_v39 = vadd.f32 %v4254_v12, %v4253_v47  ;;  %v4258_v13 = vsel %vm225_vm1, %v4196_v30, 0.0 }
 0x398   : > { %v4256_v42 = vsel %vm225_vm1, %v4195_v40, 0.0 }
 0x399   : > { %v4157_v2 = vadd.f32 %v4156_v52, %v4155_v53  ;;  %v4257_v7 = vadd.f32 %v4256_v42, %v4255_v39 }
 0x39b   : > { %v4158_v17 = vrot.slane %v4157_v2, 4  ;;  %v4259_v37 = vadd.f32 %v4258_v13, %v4257_v7 }
 0x39d   : > { %v4159_v31 = vadd.f32 %v4158_v17, %v4157_v2  ;;  %v4260_v20 = vrot.slane %v4259_v37, 4 }
 0x39f   : > { %v4160_v18 = vrot.slane %v4159_v31, 2  ;;  %v4261_v24 = vadd.f32 %v4260_v20, %v4259_v37 }
 0x3a1   : > { %v4161_v15 = vadd.f32 %v4160_v18, %v4159_v31  ;;  %v4262_v8 = vrot.slane %v4261_v24, 2 }
 0x3a3   : > { %v4162_v21 = vrot.slane %v4161_v15, 1  ;;  %v4263_v45 = vadd.f32 %v4262_v8, %v4261_v24 }
 0x3a5   : > { %v4163_v22 = vadd.f32 %v4162_v21, %v4161_v15  ;;  %v4264_v51 = vrot.slane %v4263_v45, 1 }
 0x3a7   : > { %v12305_v54 = vmul.f32 0.00390625, %v4163_v22  ;;  %v4265_v1 = vadd.f32 %v4264_v51, %v4263_v45 }
 0x3a9   : > { %v4266_v9 = vmul.f32 0.00390625, %v4265_v1  ;;  %v4267_v16 = vmul.f32 %v12305_v54, %v12305_v54  ;;  %v4300_v19 = vsub.f32 %v12292_v62, %v12305_v54  ;;  %v4280_v47 = vsub.f32 %v12125_v56, %v12305_v54 }
 0x3aa   : > { %v4281_v43 = vsub.f32 %v12119_v26, %v12305_v54  ;;  %v4282_v30 = vsub.f32 %v12141_v55, %v12305_v54  ;;  %v4283_v11 = vsub.f32 %v12135_v3, %v12305_v54  ;;  %v4284_v40 = vsub.f32 %v12157_v59, %v12305_v54 }
 0x3ab   : > { %v4268_v4 = vsub.f32 %v4266_v9, %v4267_v16  ;;  %v4285_v62 = vsub.f32 %v12151_v38, %v12305_v54  ;;  %v4286_v53 = vsub.f32 %v12173_v36, %v12305_v54  ;;  %v4287_v56 = vsub.f32 %v12167_v49, %v12305_v54 }
 0x3ac   : > { %v4288_v26 = vsub.f32 %v12189_v0, %v12305_v54  ;;  %v4289_v55 = vsub.f32 %v12183_v57, %v12305_v54  ;;  %v4290_v3 = vsub.f32 %v12205_v32, %v12305_v54  ;;  %v4291_v59 = vsub.f32 %v12199_v5, %v12305_v54 }
 0x3ad   : > { %v4269_v12 = vmax.f32 %v4268_v4, 0.0  ;;  %v4292_v38 = vsub.f32 %v12221_v14, %v12305_v54  ;;  %v4293_v36 = vsub.f32 %v12215_v28, %v12305_v54  ;;  %v4294_v49 = vsub.f32 %v12237_v61, %v12305_v54 }
 0x3ae   : > { %v4295_v0 = vsub.f32 %v12231_v48, %v12305_v54  ;;  %v4296_v57 = vsub.f32 %v12260_v34, %v12305_v54  ;;  %v4297_v32 = vsub.f32 %v12254_v27, %v12305_v54  ;;  %v4298_v5 = vsub.f32 %v12276_v25, %v12305_v54 }
 0x3af   : > { %v4302_v39 = vadd.f32 1e-05, %v4269_v12  ;;  %v4299_v14 = vsub.f32 %v12270_v23, %v12305_v54  ;;  %v4301_v28 = vsub.f32 %v12286_v10, %v12305_v54  ;;  %v4270_v61 = vsub.f32 %v12046_v50, %v12305_v54 }
 0x3b0   : > { %v4271_v48 = vsub.f32 %v12043_v44, %v12305_v54  ;;  %v4272_v34 = vsub.f32 %v12062_v6, %v12305_v54  ;;  %v4273_v27 = vsub.f32 %v12057_v58, %v12305_v54  ;;  %v4274_v25 = vsub.f32 %v12077_v33, %v12305_v54 }
 0x3b1   : > { %10645 = vrsqrt.f32 %v4302_v39  ;;  %v4275_v23 = vsub.f32 %v12071_v29, %v12305_v54  ;;  %v4276_v10 = vsub.f32 %v12093_v60, %v12305_v54  ;;  %v4277_v50 = vsub.f32 %v12087_v35, %v12305_v54 }
 0x3b2   : > { %v4278_v44 = vsub.f32 %v12109_v41, %v12305_v54  ;;  %v4279_v6 = vsub.f32 %v12103_v46, %v12305_v54 }
 0x3bb   : > { %v10646_v52 = vpop.eup %10645 }
 0x3bc   : > { %v4334_v58 = vmul.f32 %v10646_v52, %v4300_v19  ;;  %v4304_v42 = vmul.f32 %v10646_v52, %v4270_v61  ;;  %v4305_v2 = vmul.f32 %v10646_v52, %v4271_v48  ;;  %v4306_v33 = vmul.f32 %v10646_v52, %v4272_v34 }
 0x3bd   : > { %v4307_v7 = vmul.f32 %v10646_v52, %v4273_v27  ;;  %v4308_v13 = vmul.f32 %v10646_v52, %v4274_v25  ;;  %v4309_v29 = vmul.f32 %v10646_v52, %v4275_v23  ;;  %v4310_v17 = vmul.f32 %v10646_v52, %v4276_v10 }
 0x3be   : > { %v4366_v37 = vmax.f32 %v4334_v58, 0.0  ;;  %v4311_v31 = vmul.f32 %v10646_v52, %v4277_v50  ;;  %v4312_v60 = vmul.f32 %v10646_v52, %v4278_v44  ;;  %v4313_v20 = vmul.f32 %v10646_v52, %v4279_v6 }
 0x3bf   : > { %v4314_v18 = vmul.f32 %v10646_v52, %v4280_v47  ;;  %v4315_v35 = vmul.f32 %v10646_v52, %v4281_v43  ;;  %v4316_v24 = vmul.f32 %v10646_v52, %v4282_v30  ;;  %v4317_v15 = vmul.f32 %v10646_v52, %v4283_v11 }
 0x3c0   : > { %4398 = vst.msk [vmem:[#allocation2 + $0x181] sm:$0xff] %vm225_vm1, %v4366_v37  ;;  %v4318_v41 = vmul.f32 %v10646_v52, %v4284_v40  ;;  %v4319_v46 = vmul.f32 %v10646_v52, %v4285_v62  ;;  %v4320_v8 = vmul.f32 %v10646_v52, %v4286_v53  ;;  %v4321_v21 = vmul.f32 %v10646_v52, %v4287_v56 }
 0x3c1   : > { %v4322_v45 = vmul.f32 %v10646_v52, %v4288_v26  ;;  %v12374_v22 = vmul.f32 %v10646_v52, %v4289_v55  ;;  %v12376_v51 = vmul.f32 %v10646_v52, %v4290_v3  ;;  %v12378_v54 = vmul.f32 %v10646_v52, %v4291_v59 }
 0x3c2   : > { %v12380_v1 = vmul.f32 %v10646_v52, %v4292_v38  ;;  %v12382_v9 = vmul.f32 %v10646_v52, %v4293_v36  ;;  %v12384_v16 = vmul.f32 %v10646_v52, %v4294_v49  ;;  %v12386_v19 = vmul.f32 %v10646_v52, %v4295_v0 }
 0x3c3   : > { %v12388_v4 = vmul.f32 %v10646_v52, %v4296_v57  ;;  %v12390_v47 = vmul.f32 %v10646_v52, %v4297_v32  ;;  %v12392_v43 = vmul.f32 %v10646_v52, %v4298_v5  ;;  %v12394_v12 = vmul.f32 %v10646_v52, %v4299_v14 }
 0x3c4   : > { %v12396_v30 = vmul.f32 %v10646_v52, %v4301_v28  ;;  %v4336_v11 = vmax.f32 %v4304_v42, 0.0  ;;  %v4337_v40 = vmax.f32 %v4305_v2, 0.0  ;;  %v4338_v62 = vmax.f32 %v4306_v33, 0.0 }
 0x3c5   : > { %v4339_v53 = vmax.f32 %v4307_v7, 0.0  ;;  %v4340_v56 = vmax.f32 %v4308_v13, 0.0  ;;  %v4341_v26 = vmax.f32 %v4309_v29, 0.0  ;;  %v4342_v39 = vmax.f32 %v4310_v17, 0.0 }
 0x3c6   : > { %v4343_v55 = vmax.f32 %v4311_v31, 0.0  ;;  %v4344_v3 = vmax.f32 %v4312_v60, 0.0  ;;  %v4345_v59 = vmax.f32 %v4313_v20, 0.0  ;;  %v4346_v38 = vmax.f32 %v4314_v18, 0.0  ;;  %4368 = vst.msk [vmem:[#allocation2 + $0x19] sm:$0xff] %vm225_vm1, %v4336_v11  ;;  %4369 = vst.msk [vmem:[#allocation2 + $0x21] sm:$0xff] %vm225_vm1, %v4337_v40 }
 0x3c7   : > { %4370 = vst.msk [vmem:[#allocation2 + $0x31] sm:$0xff] %vm225_vm1, %v4338_v62  ;;  %v4347_v36 = vmax.f32 %v4315_v35, 0.0  ;;  %v4348_v49 = vmax.f32 %v4316_v24, 0.0  ;;  %v4349_v0 = vmax.f32 %v4317_v15, 0.0  ;;  %v4350_v57 = vmax.f32 %v4318_v41, 0.0  ;;  %4371 = vst.msk [vmem:[#allocation2 + $0x39] sm:$0xff] %vm225_vm1, %v4339_v53 }
 0x3c8   : > { %4372 = vst.msk [vmem:[#allocation2 + $0x49] sm:$0xff] %vm225_vm1, %v4340_v56  ;;  %4373 = vst.msk [vmem:[#allocation2 + $0x51] sm:$0xff] %vm225_vm1, %v4341_v26  ;;  %v4351_v32 = vmax.f32 %v4319_v46, 0.0  ;;  %v4352_v5 = vmax.f32 %v4320_v8, 0.0  ;;  %v4353_v14 = vmax.f32 %v4321_v21, 0.0  ;;  %v4354_v28 = vmax.f32 %v4322_v45, 0.0 }
 0x3c9   : > { %4374 = vst.msk [vmem:[#allocation2 + $0x61] sm:$0xff] %vm225_vm1, %v4342_v39  ;;  %4375 = vst.msk [vmem:[#allocation2 + $0x69] sm:$0xff] %vm225_vm1, %v4343_v55  ;;  %v4355_v61 = vmax.f32 %v12374_v22, 0.0  ;;  %v4356_v48 = vmax.f32 %v12376_v51, 0.0  ;;  %v4357_v34 = vmax.f32 %v12378_v54, 0.0  ;;  %v4358_v27 = vmax.f32 %v12380_v1, 0.0 }
 0x3ca   : > { %4376 = vst.msk [vmem:[#allocation2 + $0x79] sm:$0xff] %vm225_vm1, %v4344_v3  ;;  %4377 = vst.msk [vmem:[#allocation2 + $0x81] sm:$0xff] %vm225_vm1, %v4345_v59  ;;  %v4359_v25 = vmax.f32 %v12382_v9, 0.0  ;;  %v4360_v23 = vmax.f32 %v12384_v16, 0.0  ;;  %v4361_v52 = vmax.f32 %v12386_v19, 0.0  ;;  %v4362_v10 = vmax.f32 %v12388_v4, 0.0 }
 0x3cb   : > { %4378 = vst.msk [vmem:[#allocation2 + $0x91] sm:$0xff] %vm225_vm1, %v4346_v38  ;;  %4379 = vst.msk [vmem:[#allocation2 + $0x99] sm:$0xff] %vm225_vm1, %v4347_v36  ;;  %v4363_v50 = vmax.f32 %v12390_v47, 0.0  ;;  %v4364_v44 = vmax.f32 %v12392_v43, 0.0  ;;  %v4365_v6 = vmax.f32 %v12394_v12, 0.0  ;;  %v4367_v58 = vmax.f32 %v12396_v30, 0.0 }
 0x3cc   : > { %4380 = vst.msk [vmem:[#allocation2 + $0xa9] sm:$0xff] %vm225_vm1, %v4348_v49  ;;  %4381 = vst.msk [vmem:[#allocation2 + $0xb1] sm:$0xff] %vm225_vm1, %v4349_v0  ;;  %v4400_v43 = vld [vmem:[#allocation2] sm:$0xff]  ;;  %v4401_v30 = vld [vmem:[#allocation2 + $0x8] sm:$0xff] }
 0x3cd   : > { %4382 = vst.msk [vmem:[#allocation2 + $0xc1] sm:$0xff] %vm225_vm1, %v4350_v57  ;;  %4383 = vst.msk [vmem:[#allocation2 + $0xc9] sm:$0xff] %vm225_vm1, %v4351_v32  ;;  %v12441_v42 = vld [vmem:[#allocation2 + $0x19] sm:$0xff]  ;;  %v12443_v2 = vld [vmem:[#allocation2 + $0x21] sm:$0xff] }
 0x3ce   : > { %4384 = vst.msk [vmem:[#allocation2 + $0xd9] sm:$0xff] %vm225_vm1, %v4352_v5  ;;  %4385 = vst.msk [vmem:[#allocation2 + $0xe1] sm:$0xff] %vm225_vm1, %v4353_v14  ;;  %9677 = vmatprep.mubr.msk.f32.mxu1 %vm225_vm1, %v12441_v42  ;;  %v12449_v33 = vld [vmem:[#allocation2 + $0x31] sm:$0xff]  ;;  %v12453_v7 = vld [vmem:[#allocation2 + $0x39] sm:$0xff] }
 0x3cf   : > { %4386 = vst.msk [vmem:[#allocation2 + $0xf1] sm:$0xff] %vm225_vm1, %v4354_v28  ;;  %4387 = vst.msk [vmem:[#allocation2 + $0xf9] sm:$0xff] %vm225_vm1, %v4355_v61  ;;  %9678 = vmatmul.mubr.msk.f32.gmra.mrb[2].mxu1 %vm225_vm1, %v12443_v2  ;;  %v12457_v13 = vld [vmem:[#allocation2 + $0x49] sm:$0xff]  ;;  %v12461_v29 = vld [vmem:[#allocation2 + $0x51] sm:$0xff] }
 0x3d0   : > { %4388 = vst.msk [vmem:[#allocation2 + $0x109] sm:$0xff] %vm225_vm1, %v4356_v48  ;;  %4389 = vst.msk [vmem:[#allocation2 + $0x111] sm:$0xff] %vm225_vm1, %v4357_v34  ;;  %9680 = vmatprep.mubr.msk.f32.mxu1 %vm225_vm1, %v12449_v33  ;;  %v12465_v17 = vld [vmem:[#allocation2 + $0x61] sm:$0xff]  ;;  %v12469_v37 = vld [vmem:[#allocation2 + $0x69] sm:$0xff] }
 0x3d1   : > { %4390 = vst.msk [vmem:[#allocation2 + $0x121] sm:$0xff] %vm225_vm1, %v4358_v27  ;;  %4391 = vst.msk [vmem:[#allocation2 + $0x129] sm:$0xff] %vm225_vm1, %v4359_v25  ;;  %v12473_v31 = vld [vmem:[#allocation2 + $0x79] sm:$0xff]  ;;  %v12477_v60 = vld [vmem:[#allocation2 + $0x81] sm:$0xff] }
 0x3d2   : > { %4392 = vst.msk [vmem:[#allocation2 + $0x139] sm:$0xff] %vm225_vm1, %v4360_v23  ;;  %4393 = vst.msk [vmem:[#allocation2 + $0x141] sm:$0xff] %vm225_vm1, %v4361_v52  ;;  %v12481_v20 = vld [vmem:[#allocation2 + $0x91] sm:$0xff]  ;;  %v12485_v18 = vld [vmem:[#allocation2 + $0x99] sm:$0xff] }
 0x3d3   : > { %4394 = vst.msk [vmem:[#allocation2 + $0x151] sm:$0xff] %vm225_vm1, %v4362_v10  ;;  %4395 = vst.msk [vmem:[#allocation2 + $0x159] sm:$0xff] %vm225_vm1, %v4363_v50  ;;  %9681 = vmatmul.mubr.msk.f32.gmra.mrb[4].mxu1 %vm225_vm1, %v12453_v7  ;;  %v12489_v35 = vld [vmem:[#allocation2 + $0xa9] sm:$0xff]  ;;  %v12493_v24 = vld [vmem:[#allocation2 + $0xb1] sm:$0xff] }
 0x3d4   : > { %4396 = vst.msk [vmem:[#allocation2 + $0x169] sm:$0xff] %vm225_vm1, %v4364_v44  ;;  %4397 = vst.msk [vmem:[#allocation2 + $0x171] sm:$0xff] %vm225_vm1, %v4365_v6  ;;  %9683 = vmatprep.mubr.msk.f32.mxu1 %vm225_vm1, %v12457_v13  ;;  %v12497_v15 = vld [vmem:[#allocation2 + $0xc1] sm:$0xff]  ;;  %v12501_v41 = vld [vmem:[#allocation2 + $0xc9] sm:$0xff] }
 0x3d5   : > { %4399 = vst.msk [vmem:[#allocation2 + $0x189] sm:$0xff] %vm225_vm1, %v4367_v58  ;;  %v12505_v46 = vld [vmem:[#allocation2 + $0xd9] sm:$0xff]  ;;  %v12509_v8 = vld [vmem:[#allocation2 + $0xe1] sm:$0xff]  ;;  %v12565_v11 = vld [vmem:[%s13381_s3 + $0xc] sm:$0xf] }
 0x3d6   : > { %v12513_v21 = vld [vmem:[#allocation2 + $0xf1] sm:$0xff]  ;;  %v12517_v45 = vld [vmem:[#allocation2 + $0xf9] sm:$0xff]  ;;  %v12600_v55 = vld [vmem:[#allocation2 + $0x68] sm:$0xff] }
 0x3d7   : > { %9684 = vmatmul.mubr.msk.f32.gmra.mrb[6].mxu1 %vm225_vm1, %v12461_v29  ;;  %v12521_v22 = vld [vmem:[#allocation2 + $0x109] sm:$0xff]  ;;  %v12525_v51 = vld [vmem:[#allocation2 + $0x111] sm:$0xff]  ;;  %v12576_v62 = vld [vmem:[#allocation2 + $0x20] sm:$0xff] }
 0x3d8   : > { %9686 = vmatprep.mubr.msk.f32.mxu1 %vm225_vm1, %v12465_v17  ;;  %v12529_v54 = vld [vmem:[#allocation2 + $0x121] sm:$0xff]  ;;  %v12533_v1 = vld [vmem:[#allocation2 + $0x129] sm:$0xff]  ;;  %v12568_v40 = vld [vmem:[#allocation2 + $0x18] sm:$0xff] }
 0x3d9   : > { %13559 = vst [vmem:[#allocation3_spill] sm:$0xff] %v12533_v1  ;;  %v12537_v9 = vld [vmem:[#allocation2 + $0x139] sm:$0xff]  ;;  %v12541_v16 = vld [vmem:[#allocation2 + $0x141] sm:$0xff]  ;;  %v12580_v53 = vld [vmem:[#allocation2 + $0x30] sm:$0xff] }
 0x3da   : > { %13560 = vst [vmem:[#allocation4_spill] sm:$0xff] %v12537_v9  ;;  %13561 = vst [vmem:[#allocation5_spill] sm:$0xff] %v12541_v16  ;;  %v12545_v19 = vld [vmem:[#allocation2 + $0x151] sm:$0xff]  ;;  %v12549_v4 = vld [vmem:[#allocation2 + $0x159] sm:$0xff] }
 0x3db   : > { %9687 = vmatmul.mubr.msk.f32.gmra.mrb[8].mxu1 %vm225_vm1, %v12469_v37  ;;  %13562 = vst [vmem:[#allocation6_spill] sm:$0xff] %v12545_v19  ;;  %13563 = vst [vmem:[#allocation7_spill] sm:$0xff] %v12549_v4  ;;  %v12553_v47 = vld [vmem:[#allocation2 + $0x169] sm:$0xff]  ;;  %v12557_v12 = vld [vmem:[#allocation2 + $0x171] sm:$0xff] }
 0x3dc   : > { %9689 = vmatprep.mubr.msk.f32.mxu1 %vm225_vm1, %v12473_v31  ;;  %13564 = vst [vmem:[#allocation8_spill] sm:$0xff] %v12553_v47  ;;  %13565 = vst [vmem:[#allocation9_spill] sm:$0xff] %v12557_v12  ;;  %v12584_v56 = vld [vmem:[#allocation2 + $0x38] sm:$0xff]  ;;  %v12592_v26 = vld [vmem:[#allocation2 + $0x50] sm:$0xff] }
 0x3dd   : > { %v12596_v39 = vld [vmem:[#allocation2 + $0x60] sm:$0xff]  ;;  %v12604_v3 = vld [vmem:[#allocation2 + $0x78] sm:$0xff]  ;;  %v12612_v38 = vld [vmem:[#allocation2 + $0x90] sm:$0xff] }
 0x3de   : > { %v12608_v59 = vld [vmem:[#allocation2 + $0x80] sm:$0xff]  ;;  %v12616_v36 = vld [vmem:[#allocation2 + $0x98] sm:$0xff]  ;;  %v12620_v49 = vld [vmem:[#allocation2 + $0xa8] sm:$0xff] }
 0x3df   : > { %9690 = vmatmul.mubr.msk.f32.gmra.mrb[10].mxu1 %vm225_vm1, %v12477_v60  ;;  %v12624_v0 = vld [vmem:[#allocation2 + $0xb0] sm:$0xff]  ;;  %v12628_v57 = vld [vmem:[#allocation2 + $0xc0] sm:$0xff]  ;;  %v12632_v32 = vld [vmem:[#allocation2 + $0xc8] sm:$0xff] }
 0x3e0   : > { %9692 = vmatprep.mubr.msk.f32.mxu1 %vm225_vm1, %v12481_v20  ;;  %v12636_v5 = vld [vmem:[#allocation2 + $0xd8] sm:$0xff]  ;;  %v12640_v14 = vld [vmem:[#allocation2 + $0xe0] sm:$0xff]  ;;  %v12644_v28 = vld [vmem:[#allocation2 + $0xf0] sm:$0xff] }
 0x3e1   : > { %v12648_v61 = vld [vmem:[#allocation2 + $0xf8] sm:$0xff]  ;;  %v12652_v48 = vld [vmem:[#allocation2 + $0x108] sm:$0xff]  ;;  %v12656_v34 = vld [vmem:[#allocation2 + $0x110] sm:$0xff] }
 0x3e2   : > { %v12660_v27 = vld [vmem:[#allocation2 + $0x120] sm:$0xff]  ;;  %v12664_v25 = vld [vmem:[#allocation2 + $0x128] sm:$0xff]  ;;  %v12668_v23 = vld [vmem:[#allocation2 + $0x138] sm:$0xff] }
 0x3e3   : > { %9693 = vmatmul.mubr.msk.f32.gmra.mrb[12].mxu1 %vm225_vm1, %v12485_v18  ;;  %v12672_v52 = vld [vmem:[#allocation2 + $0x140] sm:$0xff]  ;;  %v12676_v10 = vld [vmem:[#allocation2 + $0x150] sm:$0xff]  ;;  %v12680_v50 = vld [vmem:[#allocation2 + $0x158] sm:$0xff] }
 0x3e4   : > { %9695 = vmatprep.mubr.msk.f32.mxu1 %vm225_vm1, %v12489_v35  ;;  %v12684_v44 = vld [vmem:[#allocation2 + $0x168] sm:$0xff]  ;;  %v12688_v58 = vld [vmem:[#allocation2 + $0x170] sm:$0xff] }
 0x3e5   : > { %v5115_v6 = vld [vmem:[#allocation2 + $0x2] sm:$0xff] }
 0x3e7   : > { %9696 = vmatmul.mubr.msk.f32.gmra.mrb[14].mxu1 %vm225_vm1, %v12493_v24 }
 0x3e8   : > { %9698 = vmatprep.mubr.msk.f32.mxu1 %vm225_vm1, %v12497_v15 }
 0x3eb   : > { %9699 = vmatmul.mubr.msk.f32.gmra.mrb[16].mxu1 %vm225_vm1, %v12501_v41 }
 0x3ec   : > { %9701 = vmatprep.mubr.msk.f32.mxu1 %vm225_vm1, %v12505_v46 }
 0x3ef   : > { %9702 = vmatmul.mubr.msk.f32.gmra.mrb[18].mxu1 %vm225_vm1, %v12509_v8 }
 0x3f0   : > { %9704 = vmatprep.mubr.msk.f32.mxu1 %vm225_vm1, %v12513_v21 }
 0x3f3   : > { %9705 = vmatmul.mubr.msk.f32.gmra.mrb[20].mxu1 %vm225_vm1, %v12517_v45 }
 0x3f4   : > { %9707 = vmatprep.mubr.msk.f32.mxu1 %vm225_vm1, %v12521_v22 }
 0x3f7   : > { %9708 = vmatmul.mubr.msk.f32.gmra.mrb[22].mxu1 %vm225_vm1, %v12525_v51 }
 0x3f8   : > { %9710 = vmatprep.mubr.msk.f32.mxu1 %vm225_vm1, %v12529_v54 }
 0x3fb   : > { %9711 = vmatmul.mubr.msk.f32.gmra.mrb[24].mxu1 %vm225_vm1, %v12533_v1 }
 0x3fc   : > { %9713 = vmatprep.mubr.msk.f32.mxu1 %vm225_vm1, %v12537_v9 }
 0x3ff   : > { %9714 = vmatmul.mubr.msk.f32.gmra.mrb[26].mxu1 %vm225_vm1, %v12541_v16 }
 0x400   : > { %9716 = vmatprep.mubr.msk.f32.mxu1 %vm225_vm1, %v12545_v19 }
 0x403   : > { %9717 = vmatmul.mubr.msk.f32.gmra.mrb[28].mxu1 %vm225_vm1, %v12549_v4 }
 0x404   : > { %9719 = vmatprep.mubr.msk.f32.mxu1 %vm225_vm1, %v12553_v47  ;;  %v12711_v47 = vld [vmem:[#allocation2 + $0x32] sm:$0xff] }
 0x405   : > { %13568 = vst [vmem:[#allocation12_spill] sm:$0xff] %v12711_v47 }
 0x407   : > { %9720 = vmatmul.mubr.msk.f32.gmra.mrb[30].mxu1 %vm225_vm1, %v12557_v12  ;;  %v12699_v12 = vld [vmem:[#allocation2 + $0x1a] sm:$0xff] }
 0x408   : > { %9724 = vmatprep.mubr.msk.f32.mxu1 %vm225_vm1, %v4400_v43  ;;  %v5116_v43 = vld [vmem:[#allocation2 + $0xa] sm:$0xff]  ;;  %13566 = vst [vmem:[#allocation10_spill] sm:$0xff] %v12699_v12 }
 0x40b   : > { %9725 = vmatmul.mubr.msk.f32.vlgmr.msra.gmra.mrb[0].mxu1 %vm225_vm1, %v4401_v30  ;;  %v12696_v30 = vld [vmem:[%s13381_s3 + $0x10] sm:$0xf] }
 0x40c   : > { %9773 = vmatpush3.msk.msra.mxu1 %vm772_vm0, %v12242_v63  ;;  %9727 = vmatprep.mubr.msk.f32.mxu1 %vm225_vm1, %v12568_v40  ;;  %v12588_v63 = vld [vmem:[#allocation2 + $0x48] sm:$0xff] }
 0x40d   : > { %9822 = vmatprep.subr.msk.mxu1 %vm772_vm0, %v12565_v11 }
 0x40f   : > { %9728 = vmatmul.mubr.msk.f32.gmra.mrb[2].mxu1 %vm225_vm1, %v12576_v62 }
 0x410   : > { %9730 = vmatprep.mubr.msk.f32.mxu1 %vm225_vm1, %v12580_v53 }
 0x413   : > { %9731 = vmatmul.mubr.msk.f32.gmra.mrb[4].mxu1 %vm225_vm1, %v12584_v56 }
 0x414   : > { %9733 = vmatprep.mubr.msk.f32.mxu1 %vm225_vm1, %v12588_v63 }
 0x417   : > { %9734 = vmatmul.mubr.msk.f32.gmra.mrb[6].mxu1 %vm225_vm1, %v12592_v26 }
 0x418   : > { %9736 = vmatprep.mubr.msk.f32.mxu1 %vm225_vm1, %v12596_v39 }
 0x41b   : > { %9737 = vmatmul.mubr.msk.f32.gmra.mrb[8].mxu1 %vm225_vm1, %v12600_v55 }
 0x41c   : > { %9739 = vmatprep.mubr.msk.f32.mxu1 %vm225_vm1, %v12604_v3 }
 0x41f   : > { %9740 = vmatmul.mubr.msk.f32.gmra.mrb[10].mxu1 %vm225_vm1, %v12608_v59 }
 0x420   : > { %9742 = vmatprep.mubr.msk.f32.mxu1 %vm225_vm1, %v12612_v38 }
 0x423   : > { %9743 = vmatmul.mubr.msk.f32.gmra.mrb[12].mxu1 %vm225_vm1, %v12616_v36 }
 0x424   : > { %9745 = vmatprep.mubr.msk.f32.mxu1 %vm225_vm1, %v12620_v49 }
 0x427   : > { %9746 = vmatmul.mubr.msk.f32.gmra.mrb[14].mxu1 %vm225_vm1, %v12624_v0 }
 0x428   : > { %9748 = vmatprep.mubr.msk.f32.mxu1 %vm225_vm1, %v12628_v57 }
 0x42b   : > { %9749 = vmatmul.mubr.msk.f32.gmra.mrb[16].mxu1 %vm225_vm1, %v12632_v32 }
 0x42c   : > { %9751 = vmatprep.mubr.msk.f32.mxu1 %vm225_vm1, %v12636_v5 }
 0x42f   : > { %9752 = vmatmul.mubr.msk.f32.gmra.mrb[18].mxu1 %vm225_vm1, %v12640_v14 }
 0x430   : > { %9754 = vmatprep.mubr.msk.f32.mxu1 %vm225_vm1, %v12644_v28 }
 0x433   : > { %9755 = vmatmul.mubr.msk.f32.gmra.mrb[20].mxu1 %vm225_vm1, %v12648_v61 }
 0x434   : > { %9757 = vmatprep.mubr.msk.f32.mxu1 %vm225_vm1, %v12652_v48 }
 0x437   : > { %9758 = vmatmul.mubr.msk.f32.gmra.mrb[22].mxu1 %vm225_vm1, %v12656_v34 }
 0x438   : > { %9760 = vmatprep.mubr.msk.f32.mxu1 %vm225_vm1, %v12660_v27 }
 0x43b   : > { %9761 = vmatmul.mubr.msk.f32.gmra.mrb[24].mxu1 %vm225_vm1, %v12664_v25 }
 0x43c   : > { %9763 = vmatprep.mubr.msk.f32.mxu1 %vm225_vm1, %v12668_v23 }
 0x43f   : > { %9764 = vmatmul.mubr.msk.f32.gmra.mrb[26].mxu1 %vm225_vm1, %v12672_v52 }
 0x440   : > { %9766 = vmatprep.mubr.msk.f32.mxu1 %vm225_vm1, %v12676_v10 }
 0x443   : > { %9767 = vmatmul.mubr.msk.f32.gmra.mrb[28].mxu1 %vm225_vm1, %v12680_v50 }
 0x444   : > { %9769 = vmatprep.mubr.msk.f32.mxu1 %vm225_vm1, %v12684_v44 }
 0x447   : > { %9770 = vmatmul.mubr.msk.f32.gmra.mrb[30].mxu1 %vm225_vm1, %v12688_v58 }
 0x448   : > { %9774 = vmatprep.mubr.msk.f32.mxu1 %vm225_vm1, %v5115_v6  ;;  %v12707_v6 = vld [vmem:[#allocation2 + $0x22] sm:$0xff] }
 0x449   : > { %13567 = vst [vmem:[#allocation11_spill] sm:$0xff] %v12707_v6 }
 0x44b   : > { %9775 = vmatmul.mubr.msk.f32.vlgmr.msra.gmra.mrb[0].mxu1 %vm225_vm1, %v5116_v43  ;;  %v12715_v43 = vld [vmem:[#allocation2 + $0x3a] sm:$0xff] }
 0x44c   : > { %9823 = vmatpush3.msk.msra.mxu1 %vm772_vm0, %v12565_v11  ;;  %9777 = vmatprep.mubr.msk.f32.mxu1 %vm225_vm1, %v12699_v12  ;;  %13569 = vst [vmem:[#allocation13_spill] sm:$0xff] %v12715_v43  ;;  %v12719_v11 = vld [vmem:[#allocation2 + $0x4a] sm:$0xff]  ;;  %v12723_v12 = vld [vmem:[#allocation2 + $0x52] sm:$0xff] }
 0x44d   : > { %9872 = vmatprep.subr.msk.mxu1 %vm772_vm0, %v12696_v30  ;;  %13570 = vst [vmem:[#allocation14_spill] sm:$0xff] %v12719_v11  ;;  %13571 = vst [vmem:[#allocation15_spill] sm:$0xff] %v12723_v12 }
 0x44f   : > { %9778 = vmatmul.mubr.msk.f32.gmra.mrb[2].mxu1 %vm225_vm1, %v12707_v6  ;;  %v12727_v6 = vld [vmem:[#allocation2 + $0x62] sm:$0xff] }
 0x450   : > { %9780 = vmatprep.mubr.msk.f32.mxu1 %vm225_vm1, %v12711_v47  ;;  %13572 = vst [vmem:[#allocation16_spill] sm:$0xff] %v12727_v6  ;;  %v12731_v47 = vld [vmem:[#allocation2 + $0x6a] sm:$0xff] }
 0x451   : > { %13573 = vst [vmem:[#allocation17_spill] sm:$0xff] %v12731_v47 }
 0x453   : > { %9781 = vmatmul.mubr.msk.f32.gmra.mrb[4].mxu1 %vm225_vm1, %v12715_v43  ;;  %v12735_v43 = vld [vmem:[#allocation2 + $0x7a] sm:$0xff] }
 0x454   : > { %9783 = vmatprep.mubr.msk.f32.mxu1 %vm225_vm1, %v12719_v11  ;;  %13574 = vst [vmem:[#allocation18_spill] sm:$0xff] %v12735_v43  ;;  %v12739_v11 = vld [vmem:[#allocation2 + $0x82] sm:$0xff] }
 0x455   : > { %13575 = vst [vmem:[#allocation19_spill] sm:$0xff] %v12739_v11 }
 0x457   : > { %9784 = vmatmul.mubr.msk.f32.gmra.mrb[6].mxu1 %vm225_vm1, %v12723_v12  ;;  %v12743_v12 = vld [vmem:[#allocation2 + $0x92] sm:$0xff] }
 0x458   : > { %9786 = vmatprep.mubr.msk.f32.mxu1 %vm225_vm1, %v12727_v6  ;;  %13576 = vst [vmem:[#allocation20_spill] sm:$0xff] %v12743_v12  ;;  %v12747_v6 = vld [vmem:[#allocation2 + $0x9a] sm:$0xff] }
 0x459   : > { %13577 = vst [vmem:[#allocation21_spill] sm:$0xff] %v12747_v6 }
 0x45b   : > { %9787 = vmatmul.mubr.msk.f32.gmra.mrb[8].mxu1 %vm225_vm1, %v12731_v47  ;;  %v12751_v47 = vld [vmem:[#allocation2 + $0xaa] sm:$0xff] }
 0x45c   : > { %9789 = vmatprep.mubr.msk.f32.mxu1 %vm225_vm1, %v12735_v43  ;;  %13578 = vst [vmem:[#allocation22_spill] sm:$0xff] %v12751_v47  ;;  %v12755_v43 = vld [vmem:[#allocation2 + $0xb2] sm:$0xff] }
 0x45d   : > { %13579 = vst [vmem:[#allocation23_spill] sm:$0xff] %v12755_v43 }
 0x45f   : > { %9790 = vmatmul.mubr.msk.f32.gmra.mrb[10].mxu1 %vm225_vm1, %v12739_v11  ;;  %v12759_v11 = vld [vmem:[#allocation2 + $0xc2] sm:$0xff] }
 0x460   : > { %9792 = vmatprep.mubr.msk.f32.mxu1 %vm225_vm1, %v12743_v12  ;;  %13580 = vst [vmem:[#allocation24_spill] sm:$0xff] %v12759_v11  ;;  %v12763_v12 = vld [vmem:[#allocation2 + $0xca] sm:$0xff] }
 0x461   : > { %13581 = vst [vmem:[#allocation25_spill] sm:$0xff] %v12763_v12 }
 0x463   : > { %9793 = vmatmul.mubr.msk.f32.gmra.mrb[12].mxu1 %vm225_vm1, %v12747_v6  ;;  %v12767_v6 = vld [vmem:[#allocation2 + $0xda] sm:$0xff] }
 0x464   : > { %9795 = vmatprep.mubr.msk.f32.mxu1 %vm225_vm1, %v12751_v47  ;;  %13582 = vst [vmem:[#allocation26_spill] sm:$0xff] %v12767_v6  ;;  %v12771_v47 = vld [vmem:[#allocation2 + $0xe2] sm:$0xff] }
 0x465   : > { %13583 = vst [vmem:[#allocation27_spill] sm:$0xff] %v12771_v47 }
 0x467   : > { %9796 = vmatmul.mubr.msk.f32.gmra.mrb[14].mxu1 %vm225_vm1, %v12755_v43  ;;  %v12775_v43 = vld [vmem:[#allocation2 + $0xf2] sm:$0xff] }
 0x468   : > { %9798 = vmatprep.mubr.msk.f32.mxu1 %vm225_vm1, %v12759_v11  ;;  %13584 = vst [vmem:[#allocation28_spill] sm:$0xff] %v12775_v43  ;;  %v12779_v11 = vld [vmem:[#allocation2 + $0xfa] sm:$0xff] }
 0x469   : > { %13585 = vst [vmem:[#allocation30_spill] sm:$0xff] %v12779_v11 }
 0x46b   : > { %9799 = vmatmul.mubr.msk.f32.gmra.mrb[16].mxu1 %vm225_vm1, %v12763_v12  ;;  %v12783_v12 = vld [vmem:[#allocation2 + $0x10a] sm:$0xff] }
 0x46c   : > { %9801 = vmatprep.mubr.msk.f32.mxu1 %vm225_vm1, %v12767_v6  ;;  %13586 = vst [vmem:[#allocation29_spill] sm:$0xff] %v12783_v12  ;;  %v12787_v6 = vld [vmem:[#allocation2 + $0x112] sm:$0xff] }
 0x46d   : > { %13587 = vst [vmem:[#allocation31_spill] sm:$0xff] %v12787_v6 }
 0x46f   : > { %9802 = vmatmul.mubr.msk.f32.gmra.mrb[18].mxu1 %vm225_vm1, %v12771_v47  ;;  %v12791_v47 = vld [vmem:[#allocation2 + $0x122] sm:$0xff] }
 0x470   : > { %9804 = vmatprep.mubr.msk.f32.mxu1 %vm225_vm1, %v12775_v43  ;;  %13588 = vst [vmem:[#allocation32_spill] sm:$0xff] %v12791_v47  ;;  %v12795_v43 = vld [vmem:[#allocation2 + $0x12a] sm:$0xff] }
 0x471   : > { %13589 = vst [vmem:[#allocation33_spill] sm:$0xff] %v12795_v43 }
 0x473   : > { %9805 = vmatmul.mubr.msk.f32.gmra.mrb[20].mxu1 %vm225_vm1, %v12779_v11  ;;  %v12799_v11 = vld [vmem:[#allocation2 + $0x13a] sm:$0xff] }
 0x474   : > { %9807 = vmatprep.mubr.msk.f32.mxu1 %vm225_vm1, %v12783_v12  ;;  %13590 = vst [vmem:[#allocation34_spill] sm:$0xff] %v12799_v11  ;;  %v12803_v12 = vld [vmem:[#allocation2 + $0x142] sm:$0xff] }
 0x477   : > { %9808 = vmatmul.mubr.msk.f32.gmra.mrb[22].mxu1 %vm225_vm1, %v12787_v6  ;;  %v12807_v6 = vld [vmem:[#allocation2 + $0x152] sm:$0xff] }
 0x478   : > { %9810 = vmatprep.mubr.msk.f32.mxu1 %vm225_vm1, %v12791_v47  ;;  %13591 = vst [vmem:[#allocation35_spill] sm:$0xff] %v12807_v6  ;;  %v12811_v47 = vld [vmem:[#allocation2 + $0x15a] sm:$0xff] }
 0x47b   : > { %9811 = vmatmul.mubr.msk.f32.gmra.mrb[24].mxu1 %vm225_vm1, %v12795_v43  ;;  %v12815_v43 = vld [vmem:[#allocation2 + $0x16a] sm:$0xff] }
 0x47c   : > { %9813 = vmatprep.mubr.msk.f32.mxu1 %vm225_vm1, %v12799_v11  ;;  %13592 = vst [vmem:[#allocation36_spill] sm:$0xff] %v12815_v43  ;;  %v12819_v11 = vld [vmem:[#allocation2 + $0x172] sm:$0xff] }
 0x47f   : > { %9814 = vmatmul.mubr.msk.f32.gmra.mrb[26].mxu1 %vm225_vm1, %v12803_v12 }
 0x480   : > { %9816 = vmatprep.mubr.msk.f32.mxu1 %vm225_vm1, %v12807_v6  ;;  %v8487_v6 = vld [vmem:[%s13381_s3 + $0x14] sm:$0xf] }
 0x483   : > { %9817 = vmatmul.mubr.msk.f32.gmra.mrb[28].mxu1 %vm225_vm1, %v12811_v47 }
 0x484   : > { %9819 = vmatprep.mubr.msk.f32.mxu1 %vm225_vm1, %v12815_v43 }
 0x487   : > { %9820 = vmatmul.mubr.msk.f32.gmra.mrb[30].mxu1 %vm225_vm1, %v12819_v11 }
 0x488   : > { %9824 = vmatprep.mubr.msk.f32.mxu1 %vm225_vm1, %v12568_v40  ;;  %v12889_v40 = vld [vmem:[#allocation2 + $0x180] sm:$0xff] }
 0x48b   : > { %9825 = vmatmul.mubr.msk.f32.vlgmr.msra.gmra.mrb[0].mxu1 %vm225_vm1, %v12576_v62  ;;  %v12893_v62 = vld [vmem:[#allocation2 + $0x188] sm:$0xff] }
 0x48c   : > { %9873 = vmatpush3.msk.msra.mxu1 %vm772_vm0, %v12696_v30  ;;  %9827 = vmatprep.mubr.msk.f32.mxu1 %vm225_vm1, %v12580_v53  ;;  %v8521_v30 = vld [vmem:[%s13381_s3 + $0x18] sm:$0xf] }
 0x48d   : > { %9922 = vmatprep.subr.msk.mxu1 %vm772_vm0, %v8487_v6 }
 0x48f   : > { %9828 = vmatmul.mubr.msk.f32.gmra.mrb[2].mxu1 %vm225_vm1, %v12584_v56 }
 0x490   : > { %9830 = vmatprep.mubr.msk.f32.mxu1 %vm225_vm1, %v12588_v63 }
 0x493   : > { %9831 = vmatmul.mubr.msk.f32.gmra.mrb[4].mxu1 %vm225_vm1, %v12592_v26 }
 0x494   : > { %9833 = vmatprep.mubr.msk.f32.mxu1 %vm225_vm1, %v12596_v39 }
 0x497   : > { %9834 = vmatmul.mubr.msk.f32.gmra.mrb[6].mxu1 %vm225_vm1, %v12600_v55 }
 0x498   : > { %9836 = vmatprep.mubr.msk.f32.mxu1 %vm225_vm1, %v12604_v3 }
 0x49b   : > { %9837 = vmatmul.mubr.msk.f32.gmra.mrb[8].mxu1 %vm225_vm1, %v12608_v59 }
 0x49c   : > { %9839 = vmatprep.mubr.msk.f32.mxu1 %vm225_vm1, %v12612_v38 }
 0x49f   : > { %9840 = vmatmul.mubr.msk.f32.gmra.mrb[10].mxu1 %vm225_vm1, %v12616_v36 }
 0x4a0   : > { %9842 = vmatprep.mubr.msk.f32.mxu1 %vm225_vm1, %v12620_v49 }
 0x4a3   : > { %9843 = vmatmul.mubr.msk.f32.gmra.mrb[12].mxu1 %vm225_vm1, %v12624_v0 }
 0x4a4   : > { %9845 = vmatprep.mubr.msk.f32.mxu1 %vm225_vm1, %v12628_v57 }
 0x4a7   : > { %9846 = vmatmul.mubr.msk.f32.gmra.mrb[14].mxu1 %vm225_vm1, %v12632_v32 }
 0x4a8   : > { %9848 = vmatprep.mubr.msk.f32.mxu1 %vm225_vm1, %v12636_v5 }
 0x4ab   : > { %9849 = vmatmul.mubr.msk.f32.gmra.mrb[16].mxu1 %vm225_vm1, %v12640_v14 }
 0x4ac   : > { %9851 = vmatprep.mubr.msk.f32.mxu1 %vm225_vm1, %v12644_v28 }
 0x4af   : > { %9852 = vmatmul.mubr.msk.f32.gmra.mrb[18].mxu1 %vm225_vm1, %v12648_v61 }
 0x4b0   : > { %9854 = vmatprep.mubr.msk.f32.mxu1 %vm225_vm1, %v12652_v48 }
 0x4b3   : > { %9855 = vmatmul.mubr.msk.f32.gmra.mrb[20].mxu1 %vm225_vm1, %v12656_v34 }
 0x4b4   : > { %9857 = vmatprep.mubr.msk.f32.mxu1 %vm225_vm1, %v12660_v27 }
 0x4b7   : > { %9858 = vmatmul.mubr.msk.f32.gmra.mrb[22].mxu1 %vm225_vm1, %v12664_v25 }
 0x4b8   : > { %9860 = vmatprep.mubr.msk.f32.mxu1 %vm225_vm1, %v12668_v23 }
 0x4bb   : > { %9861 = vmatmul.mubr.msk.f32.gmra.mrb[24].mxu1 %vm225_vm1, %v12672_v52 }
 0x4bc   : > { %9863 = vmatprep.mubr.msk.f32.mxu1 %vm225_vm1, %v12676_v10 }
 0x4bf   : > { %9864 = vmatmul.mubr.msk.f32.gmra.mrb[26].mxu1 %vm225_vm1, %v12680_v50 }
 0x4c0   : > { %9866 = vmatprep.mubr.msk.f32.mxu1 %vm225_vm1, %v12684_v44 }
 0x4c3   : > { %9867 = vmatmul.mubr.msk.f32.gmra.mrb[28].mxu1 %vm225_vm1, %v12688_v58 }
 0x4c4   : > { %9869 = vmatprep.mubr.msk.f32.mxu1 %vm225_vm1, %v12889_v40 }
 0x4c7   : > { %9870 = vmatmul.mubr.msk.f32.gmra.mrb[30].mxu1 %vm225_vm1, %v12893_v62 }
 0x4c8   : > { %9874 = vmatprep.mubr.msk.f32.mxu1 %vm225_vm1, %v12441_v42  ;;  %v13593_v42 = vld [vmem:[#allocation8_spill] sm:$0xff] }
 0x4cb   : > { %9875 = vmatmul.mubr.msk.f32.vlgmr.msra.gmra.mrb[0].mxu1 %vm225_vm1, %v12443_v2  ;;  %v13594_v2 = vld [vmem:[#allocation9_spill] sm:$0xff] }
 0x4cc   : > { %9923 = vmatpush3.msk.msra.mxu1 %vm772_vm0, %v8487_v6  ;;  %9877 = vmatprep.mubr.msk.f32.mxu1 %vm225_vm1, %v12449_v33  ;;  %v12962_v6 = vld [vmem:[#allocation2 + $0x181] sm:$0xff] }
 0x4cd   : > { %9972 = vmatprep.subr.msk.mxu1 %vm772_vm0, %v8521_v30  ;;  %13595 = vst [vmem:[#allocation37_spill] sm:$0xff] %v12962_v6 }
 0x4cf   : > { %9878 = vmatmul.mubr.msk.f32.gmra.mrb[2].mxu1 %vm225_vm1, %v12453_v7 }
 0x4d0   : > { %9880 = vmatprep.mubr.msk.f32.mxu1 %vm225_vm1, %v12457_v13 }
 0x4d3   : > { %9881 = vmatmul.mubr.msk.f32.gmra.mrb[4].mxu1 %vm225_vm1, %v12461_v29 }
 0x4d4   : > { %9883 = vmatprep.mubr.msk.f32.mxu1 %vm225_vm1, %v12465_v17 }
 0x4d7   : > { %9884 = vmatmul.mubr.msk.f32.gmra.mrb[6].mxu1 %vm225_vm1, %v12469_v37 }
 0x4d8   : > { %9886 = vmatprep.mubr.msk.f32.mxu1 %vm225_vm1, %v12473_v31 }
 0x4db   : > { %9887 = vmatmul.mubr.msk.f32.gmra.mrb[8].mxu1 %vm225_vm1, %v12477_v60 }
 0x4dc   : > { %9889 = vmatprep.mubr.msk.f32.mxu1 %vm225_vm1, %v12481_v20 }
 0x4df   : > { %9890 = vmatmul.mubr.msk.f32.gmra.mrb[10].mxu1 %vm225_vm1, %v12485_v18 }
 0x4e0   : > { %9892 = vmatprep.mubr.msk.f32.mxu1 %vm225_vm1, %v12489_v35 }
 0x4e3   : > { %9893 = vmatmul.mubr.msk.f32.gmra.mrb[12].mxu1 %vm225_vm1, %v12493_v24 }
 0x4e4   : > { %9895 = vmatprep.mubr.msk.f32.mxu1 %vm225_vm1, %v12497_v15 }
 0x4e7   : > { %9896 = vmatmul.mubr.msk.f32.gmra.mrb[14].mxu1 %vm225_vm1, %v12501_v41 }
 0x4e8   : > { %9898 = vmatprep.mubr.msk.f32.mxu1 %vm225_vm1, %v12505_v46 }
 0x4eb   : > { %9899 = vmatmul.mubr.msk.f32.gmra.mrb[16].mxu1 %vm225_vm1, %v12509_v8 }
 0x4ec   : > { %9901 = vmatprep.mubr.msk.f32.mxu1 %vm225_vm1, %v12513_v21 }
 0x4ef   : > { %9902 = vmatmul.mubr.msk.f32.gmra.mrb[18].mxu1 %vm225_vm1, %v12517_v45 }
 0x4f0   : > { %9904 = vmatprep.mubr.msk.f32.mxu1 %vm225_vm1, %v12521_v22 }
 0x4f3   : > { %9905 = vmatmul.mubr.msk.f32.gmra.mrb[20].mxu1 %vm225_vm1, %v12525_v51 }
 0x4f4   : > { %9907 = vmatprep.mubr.msk.f32.mxu1 %vm225_vm1, %v12529_v54 }
 0x4f7   : > { %9908 = vmatmul.mubr.msk.f32.gmra.mrb[22].mxu1 %vm225_vm1, %v12533_v1  ;;  %v13607_v1 = vld [vmem:[#allocation20_spill] sm:$0xff] }
 0x4f8   : > { %9910 = vmatprep.mubr.msk.f32.mxu1 %vm225_vm1, %v12537_v9  ;;  %v12966_v9 = vld [vmem:[#allocation2 + $0x189] sm:$0xff] }
 0x4f9   : > { %13596 = vst [vmem:[#allocation38_spill] sm:$0xff] %v12966_v9 }
 0x4fb   : > { %9911 = vmatmul.mubr.msk.f32.gmra.mrb[24].mxu1 %vm225_vm1, %v12541_v16  ;;  %v13603_v16 = vld [vmem:[#allocation16_spill] sm:$0xff] }
 0x4fc   : > { %9913 = vmatprep.mubr.msk.f32.mxu1 %vm225_vm1, %v12545_v19  ;;  %v13597_v19 = vld [vmem:[#allocation10_spill] sm:$0xff] }
 0x4ff   : > { %9914 = vmatmul.mubr.msk.f32.gmra.mrb[26].mxu1 %vm225_vm1, %v12549_v4  ;;  %v13598_v4 = vld [vmem:[#allocation11_spill] sm:$0xff] }
 0x500   : > { %9916 = vmatprep.mubr.msk.f32.mxu1 %vm225_vm1, %v13593_v42  ;;  %v8555_v42 = vld [vmem:[%s13381_s3 + $0x1c] sm:$0xf] }
 0x503   : > { %9917 = vmatmul.mubr.msk.f32.gmra.mrb[28].mxu1 %vm225_vm1, %v13594_v2  ;;  %v13599_v2 = vld [vmem:[#allocation12_spill] sm:$0xff] }
 0x504   : > { %9919 = vmatprep.mubr.msk.f32.mxu1 %vm225_vm1, %v12962_v6  ;;  %v13600_v6 = vld [vmem:[#allocation13_spill] sm:$0xff] }
 0x507   : > { %9920 = vmatmul.mubr.msk.f32.gmra.mrb[30].mxu1 %vm225_vm1, %v12966_v9  ;;  %v13601_v9 = vld [vmem:[#allocation14_spill] sm:$0xff] }
 0x508   : > { %9924 = vmatprep.mubr.msk.f32.mxu1 %vm225_vm1, %v13597_v19  ;;  %v13602_v19 = vld [vmem:[#allocation15_spill] sm:$0xff] }
 0x50b   : > { %9925 = vmatmul.mubr.msk.f32.vlgmr.msra.gmra.mrb[0].mxu1 %vm225_vm1, %v13598_v4  ;;  %v13604_v4 = vld [vmem:[#allocation17_spill] sm:$0xff] }
 0x50c   : > { %9973 = vmatpush3.msk.msra.mxu1 %vm772_vm0, %v8521_v30  ;;  %9927 = vmatprep.mubr.msk.f32.mxu1 %vm225_vm1, %v13599_v2  ;;  %v13605_v30 = vld [vmem:[#allocation18_spill] sm:$0xff]  ;;  %v13606_v2 = vld [vmem:[#allocation19_spill] sm:$0xff] }
 0x50d   : > { %10022 = vmatprep.subr.msk.mxu1 %vm772_vm0, %v8555_v42 }
 0x50f   : > { %9928 = vmatmul.mubr.msk.f32.gmra.mrb[2].mxu1 %vm225_vm1, %v13600_v6  ;;  %v13608_v6 = vld [vmem:[#allocation21_spill] sm:$0xff] }
 0x510   : > { %9930 = vmatprep.mubr.msk.f32.mxu1 %vm225_vm1, %v13601_v9  ;;  %v13609_v9 = vld [vmem:[#allocation22_spill] sm:$0xff] }
 0x513   : > { %9931 = vmatmul.mubr.msk.f32.gmra.mrb[4].mxu1 %vm225_vm1, %v13602_v19  ;;  %v13610_v19 = vld [vmem:[#allocation23_spill] sm:$0xff] }
 0x514   : > { %9933 = vmatprep.mubr.msk.f32.mxu1 %vm225_vm1, %v13603_v16  ;;  %v13611_v16 = vld [vmem:[#allocation24_spill] sm:$0xff] }
 0x517   : > { %9934 = vmatmul.mubr.msk.f32.gmra.mrb[6].mxu1 %vm225_vm1, %v13604_v4  ;;  %v13612_v4 = vld [vmem:[#allocation25_spill] sm:$0xff] }
 0x518   : > { %9936 = vmatprep.mubr.msk.f32.mxu1 %vm225_vm1, %v13605_v30  ;;  %v13613_v30 = vld [vmem:[#allocation26_spill] sm:$0xff] }
 0x51b   : > { %9937 = vmatmul.mubr.msk.f32.gmra.mrb[8].mxu1 %vm225_vm1, %v13606_v2  ;;  %v13614_v2 = vld [vmem:[#allocation27_spill] sm:$0xff] }
 0x51c   : > { %9939 = vmatprep.mubr.msk.f32.mxu1 %vm225_vm1, %v13607_v1  ;;  %v13615_v1 = vld [vmem:[#allocation28_spill] sm:$0xff] }
 0x51f   : > { %9940 = vmatmul.mubr.msk.f32.gmra.mrb[10].mxu1 %vm225_vm1, %v13608_v6  ;;  %v13616_v6 = vld [vmem:[#allocation30_spill] sm:$0xff] }
 0x520   : > { %9942 = vmatprep.mubr.msk.f32.mxu1 %vm225_vm1, %v13609_v9  ;;  %v13617_v9 = vld [vmem:[#allocation29_spill] sm:$0xff] }
 0x523   : > { %9943 = vmatmul.mubr.msk.f32.gmra.mrb[12].mxu1 %vm225_vm1, %v13610_v19  ;;  %v13618_v19 = vld [vmem:[#allocation31_spill] sm:$0xff] }
 0x524   : > { %9945 = vmatprep.mubr.msk.f32.mxu1 %vm225_vm1, %v13611_v16  ;;  %v13619_v16 = vld [vmem:[#allocation32_spill] sm:$0xff] }
 0x527   : > { %9946 = vmatmul.mubr.msk.f32.gmra.mrb[14].mxu1 %vm225_vm1, %v13612_v4  ;;  %v13620_v4 = vld [vmem:[#allocation33_spill] sm:$0xff] }
 0x528   : > { %9948 = vmatprep.mubr.msk.f32.mxu1 %vm225_vm1, %v13613_v30  ;;  %v13621_v30 = vld [vmem:[#allocation34_spill] sm:$0xff] }
 0x52b   : > { %9949 = vmatmul.mubr.msk.f32.gmra.mrb[16].mxu1 %vm225_vm1, %v13614_v2 }
 0x52c   : > { %9951 = vmatprep.mubr.msk.f32.mxu1 %vm225_vm1, %v13615_v1  ;;  %v13622_v1 = vld [vmem:[#allocation35_spill] sm:$0xff] }
 0x52f   : > { %9952 = vmatmul.mubr.msk.f32.gmra.mrb[18].mxu1 %vm225_vm1, %v13616_v6 }
 0x530   : > { %9954 = vmatprep.mubr.msk.f32.mxu1 %vm225_vm1, %v13617_v9 }
 0x533   : > { %9955 = vmatmul.mubr.msk.f32.gmra.mrb[20].mxu1 %vm225_vm1, %v13618_v19 }
 0x534   : > { %9957 = vmatprep.mubr.msk.f32.mxu1 %vm225_vm1, %v13619_v16  ;;  %v13035_v16 = vld [vmem:[#allocation2 + $0x182] sm:$0xff] }
 0x537   : > { %9958 = vmatmul.mubr.msk.f32.gmra.mrb[22].mxu1 %vm225_vm1, %v13620_v4 }
 0x538   : > { %9960 = vmatprep.mubr.msk.f32.mxu1 %vm225_vm1, %v13621_v30  ;;  %v13039_v30 = vld [vmem:[#allocation2 + $0x18a] sm:$0xff] }
 0x53b   : > { %9961 = vmatmul.mubr.msk.f32.gmra.mrb[24].mxu1 %vm225_vm1, %v12803_v12 }
 0x53c   : > { %9963 = vmatprep.mubr.msk.f32.mxu1 %vm225_vm1, %v13622_v1 }
 0x53f   : > { %9964 = vmatmul.mubr.msk.f32.gmra.mrb[26].mxu1 %vm225_vm1, %v12811_v47 }
 0x540   : > { %9966 = vmatprep.mubr.msk.f32.mxu1 %vm225_vm1, %v12815_v43  ;;  %v8589_v43 = vld [vmem:[%s13381_s3 + $0x20] sm:$0xf] }
 0x543   : > { %9967 = vmatmul.mubr.msk.f32.gmra.mrb[28].mxu1 %vm225_vm1, %v12819_v11 }
 0x544   : > { %9969 = vmatprep.mubr.msk.f32.mxu1 %vm225_vm1, %v13035_v16 }
 0x547   : > { %9970 = vmatmul.mubr.msk.f32.gmra.mrb[30].mxu1 %vm225_vm1, %v13039_v30 }
 0x548   : > { %9974 = vmatprep.mubr.msk.f32.mxu1 %vm225_vm1, %v12580_v53  ;;  %v6705_v53 = vld [vmem:[#allocation2 + $0x198] sm:$0xff] }
 0x54b   : > { %9975 = vmatmul.mubr.msk.f32.vlgmr.msra.gmra.mrb[0].mxu1 %vm225_vm1, %v12584_v56  ;;  %v6706_v56 = vld [vmem:[#allocation2 + $0x1a0] sm:$0xff] }
 0x54c   : > { %10023 = vmatpush3.msk.msra.mxu1 %vm772_vm0, %v8555_v42  ;;  %9977 = vmatprep.mubr.msk.f32.mxu1 %vm225_vm1, %v12588_v63  ;;  %v13642_v63 = vld [vmem:[#allocation22_spill] sm:$0xff] }
 0x54d   : > { %10072 = vmatprep.subr.msk.mxu1 %vm772_vm0, %v8589_v43 }
 0x54f   : > { %9978 = vmatmul.mubr.msk.f32.gmra.mrb[2].mxu1 %vm225_vm1, %v12592_v26  ;;  %v13643_v26 = vld [vmem:[#allocation23_spill] sm:$0xff] }
 0x550   : > { %9980 = vmatprep.mubr.msk.f32.mxu1 %vm225_vm1, %v12596_v39  ;;  %v13644_v39 = vld [vmem:[#allocation24_spill] sm:$0xff] }
 0x553   : > { %9981 = vmatmul.mubr.msk.f32.gmra.mrb[4].mxu1 %vm225_vm1, %v12600_v55  ;;  %v13645_v55 = vld [vmem:[#allocation25_spill] sm:$0xff] }
 0x554   : > { %9983 = vmatprep.mubr.msk.f32.mxu1 %vm225_vm1, %v12604_v3  ;;  %v13646_v3 = vld [vmem:[#allocation26_spill] sm:$0xff] }
 0x557   : > { %9984 = vmatmul.mubr.msk.f32.gmra.mrb[6].mxu1 %vm225_vm1, %v12608_v59  ;;  %v13647_v59 = vld [vmem:[#allocation28_spill] sm:$0xff] }
 0x558   : > { %9986 = vmatprep.mubr.msk.f32.mxu1 %vm225_vm1, %v12612_v38  ;;  %v13648_v38 = vld [vmem:[#allocation32_spill] sm:$0xff] }
 0x55b   : > { %9987 = vmatmul.mubr.msk.f32.gmra.mrb[8].mxu1 %vm225_vm1, %v12616_v36  ;;  %v13649_v36 = vld [vmem:[#allocation34_spill] sm:$0xff] }
 0x55c   : > { %9989 = vmatprep.mubr.msk.f32.mxu1 %vm225_vm1, %v12620_v49  ;;  %v7485_v49 = vld [vmem:[#allocation2 + $0x19a] sm:$0xff] }
 0x55f   : > { %9990 = vmatmul.mubr.msk.f32.gmra.mrb[10].mxu1 %vm225_vm1, %v12624_v0 }
 0x560   : > { %9992 = vmatprep.mubr.msk.f32.mxu1 %vm225_vm1, %v12628_v57 }
 0x563   : > { %9993 = vmatmul.mubr.msk.f32.gmra.mrb[12].mxu1 %vm225_vm1, %v12632_v32  ;;  %v10647_v32 = vld [vmem:[%s10753_s27 + $0x8] sm:$0xff] }
 0x564   : > { %9995 = vmatprep.mubr.msk.f32.mxu1 %vm225_vm1, %v12636_v5 }
 0x567   : > { %9996 = vmatmul.mubr.msk.f32.gmra.mrb[14].mxu1 %vm225_vm1, %v12640_v14  ;;  %v10648_v14 = vld [vmem:[%s10753_s27] sm:$0xff] }
 0x568   : > { %9998 = vmatprep.mubr.msk.f32.mxu1 %vm225_vm1, %v12644_v28 }
 0x56b   : > { %9999 = vmatmul.mubr.msk.f32.gmra.mrb[16].mxu1 %vm225_vm1, %v12648_v61 }
 0x56c   : > { %10001 = vmatprep.mubr.msk.f32.mxu1 %vm225_vm1, %v12652_v48 }
 0x56f   : > { %10002 = vmatmul.mubr.msk.f32.gmra.mrb[18].mxu1 %vm225_vm1, %v12656_v34 }
 0x570   : > { %10004 = vmatprep.mubr.msk.f32.mxu1 %vm225_vm1, %v12660_v27 }
 0x573   : > { %10005 = vmatmul.mubr.msk.f32.gmra.mrb[20].mxu1 %vm225_vm1, %v12664_v25  ;;  %v10649_v25 = vld [vmem:[%s10753_s27 + $0x18] sm:$0xff] }
 0x574   : > { %10007 = vmatprep.mubr.msk.f32.mxu1 %vm225_vm1, %v12668_v23 }
 0x577   : > { %10008 = vmatmul.mubr.msk.f32.gmra.mrb[22].mxu1 %vm225_vm1, %v12672_v52  ;;  %v10650_v52 = vld [vmem:[%s10753_s27 + $0x10] sm:$0xff] }
 0x578   : > { %10010 = vmatprep.mubr.msk.f32.mxu1 %vm225_vm1, %v12676_v10 }
 0x57b   : > { %10011 = vmatmul.mubr.msk.f32.gmra.mrb[24].mxu1 %vm225_vm1, %v12680_v50 }
 0x57c   : > { %10013 = vmatprep.mubr.msk.f32.mxu1 %vm225_vm1, %v12684_v44 }
 0x57f   : > { %10014 = vmatmul.mubr.msk.f32.gmra.mrb[26].mxu1 %vm225_vm1, %v12688_v58 }
 0x580   : > { %10016 = vmatprep.mubr.msk.f32.mxu1 %vm225_vm1, %v12889_v40 }
 0x583   : > { %10017 = vmatmul.mubr.msk.f32.gmra.mrb[28].mxu1 %vm225_vm1, %v12893_v62  ;;  %v10652_v62 = vld [vmem:[%s10753_s27 + $0x20] sm:$0xff] }
 0x584   : > { %10019 = vmatprep.mubr.msk.f32.mxu1 %vm225_vm1, %v6705_v53 }
 0x587   : > { %10020 = vmatmul.mubr.msk.f32.gmra.mrb[30].mxu1 %vm225_vm1, %v6706_v56  ;;  %v10654_v56 = vld [vmem:[%s10753_s27 + $0x30] sm:$0xff] }
 0x588   : > { %10024 = vmatprep.mubr.msk.f32.mxu1 %vm225_vm1, %v12449_v33  ;;  %v13623_v33 = vld [vmem:[#allocation3_spill] sm:$0xff] }
 0x58b   : > { %10025 = vmatmul.mubr.msk.f32.vlgmr.msra.gmra.mrb[0].mxu1 %vm225_vm1, %v12453_v7  ;;  %v13624_v7 = vld [vmem:[#allocation4_spill] sm:$0xff] }
 0x58c   : > { %10073 = vmatpush3.msk.msra.mxu1 %vm772_vm0, %v8589_v43  ;;  %10027 = vmatprep.mubr.msk.f32.mxu1 %vm225_vm1, %v12457_v13  ;;  %v13625_v13 = vld [vmem:[#allocation5_spill] sm:$0xff] }
 0x58f   : > { %10028 = vmatmul.mubr.msk.f32.gmra.mrb[2].mxu1 %vm225_vm1, %v12461_v29  ;;  %v13626_v29 = vld [vmem:[#allocation6_spill] sm:$0xff] }
 0x590   : > { %10030 = vmatprep.mubr.msk.f32.mxu1 %vm225_vm1, %v12465_v17  ;;  %v13627_v17 = vld [vmem:[#allocation7_spill] sm:$0xff] }
 0x593   : > { %10031 = vmatmul.mubr.msk.f32.gmra.mrb[4].mxu1 %vm225_vm1, %v12469_v37  ;;  %v13628_v37 = vld [vmem:[#allocation8_spill] sm:$0xff] }
 0x594   : > { %10033 = vmatprep.mubr.msk.f32.mxu1 %vm225_vm1, %v12473_v31  ;;  %v13629_v31 = vld [vmem:[#allocation9_spill] sm:$0xff] }
 0x597   : > { %10034 = vmatmul.mubr.msk.f32.gmra.mrb[6].mxu1 %vm225_vm1, %v12477_v60  ;;  %v13630_v60 = vld [vmem:[#allocation37_spill] sm:$0xff] }
 0x598   : > { %10036 = vmatprep.mubr.msk.f32.mxu1 %vm225_vm1, %v12481_v20  ;;  %v7095_v20 = vld [vmem:[#allocation2 + $0x199] sm:$0xff] }
 0x59b   : > { %10037 = vmatmul.mubr.msk.f32.gmra.mrb[8].mxu1 %vm225_vm1, %v12485_v18  ;;  %v13631_v18 = vld [vmem:[#allocation38_spill] sm:$0xff] }
 0x59c   : > { %10039 = vmatprep.mubr.msk.f32.mxu1 %vm225_vm1, %v12489_v35  ;;  %v7096_v35 = vld [vmem:[#allocation2 + $0x1a1] sm:$0xff] }
 0x59f   : > { %10040 = vmatmul.mubr.msk.f32.gmra.mrb[10].mxu1 %vm225_vm1, %v12493_v24  ;;  %v13632_v24 = vld [vmem:[#allocation12_spill] sm:$0xff] }
 0x5a0   : > { %10042 = vmatprep.mubr.msk.f32.mxu1 %vm225_vm1, %v12497_v15  ;;  %v13633_v15 = vld [vmem:[#allocation13_spill] sm:$0xff] }
 0x5a3   : > { %10043 = vmatmul.mubr.msk.f32.gmra.mrb[12].mxu1 %vm225_vm1, %v12501_v41  ;;  %v13634_v41 = vld [vmem:[#allocation14_spill] sm:$0xff] }
 0x5a4   : > { %10045 = vmatprep.mubr.msk.f32.mxu1 %vm225_vm1, %v12505_v46  ;;  %v13635_v46 = vld [vmem:[#allocation15_spill] sm:$0xff] }
 0x5a7   : > { %10046 = vmatmul.mubr.msk.f32.gmra.mrb[14].mxu1 %vm225_vm1, %v12509_v8  ;;  %v13636_v8 = vld [vmem:[#allocation16_spill] sm:$0xff] }
 0x5a8   : > { %10048 = vmatprep.mubr.msk.f32.mxu1 %vm225_vm1, %v12513_v21  ;;  %v13637_v21 = vld [vmem:[#allocation17_spill] sm:$0xff] }
 0x5ab   : > { %10049 = vmatmul.mubr.msk.f32.gmra.mrb[16].mxu1 %vm225_vm1, %v12517_v45  ;;  %v13638_v45 = vld [vmem:[#allocation18_spill] sm:$0xff] }
 0x5ac   : > { %10051 = vmatprep.mubr.msk.f32.mxu1 %vm225_vm1, %v12521_v22  ;;  %v13639_v22 = vld [vmem:[#allocation19_spill] sm:$0xff] }
 0x5af   : > { %10052 = vmatmul.mubr.msk.f32.gmra.mrb[18].mxu1 %vm225_vm1, %v12525_v51  ;;  %v13640_v51 = vld [vmem:[#allocation20_spill] sm:$0xff] }
 0x5b0   : > { %10054 = vmatprep.mubr.msk.f32.mxu1 %vm225_vm1, %v12529_v54  ;;  %v13641_v54 = vld [vmem:[#allocation21_spill] sm:$0xff] }
 0x5b3   : > { %10055 = vmatmul.mubr.msk.f32.gmra.mrb[20].mxu1 %vm225_vm1, %v13623_v33 }
 0x5b4   : > { %10057 = vmatprep.mubr.msk.f32.mxu1 %vm225_vm1, %v13624_v7 }
 0x5b7   : > { %10058 = vmatmul.mubr.msk.f32.gmra.mrb[22].mxu1 %vm225_vm1, %v13625_v13 }
 0x5b8   : > { %10060 = vmatprep.mubr.msk.f32.mxu1 %vm225_vm1, %v13626_v29 }
 0x5bb   : > { %10061 = vmatmul.mubr.msk.f32.gmra.mrb[24].mxu1 %vm225_vm1, %v13627_v17 }
 0x5bc   : > { %10063 = vmatprep.mubr.msk.f32.mxu1 %vm225_vm1, %v13628_v37  ;;  %v10655_v37 = vld [vmem:[%s10753_s27 + $0x48] sm:$0xff] }
 0x5bf   : > { %10064 = vmatmul.mubr.msk.f32.gmra.mrb[26].mxu1 %vm225_vm1, %v13629_v31 }
 0x5c0   : > { %10066 = vmatprep.mubr.msk.f32.mxu1 %vm225_vm1, %v13630_v60  ;;  %v10656_v60 = vld [vmem:[%s10753_s27 + $0x40] sm:$0xff] }
 0x5c3   : > { %10067 = vmatmul.mubr.msk.f32.gmra.mrb[28].mxu1 %vm225_vm1, %v13631_v18 }
 0x5c4   : > { %10069 = vmatprep.mubr.msk.f32.mxu1 %vm225_vm1, %v7095_v20 }
 0x5c7   : > { %10070 = vmatmul.mubr.msk.f32.gmra.mrb[30].mxu1 %vm225_vm1, %v7096_v35 }
 0x5c8   : > { %10074 = vmatprep.mubr.msk.f32.mxu1 %vm225_vm1, %v13632_v24 }
 0x5cb   : > { %10075 = vmatmul.mubr.msk.f32.vlgmr.msra.gmra.mrb[0].mxu1 %vm225_vm1, %v13633_v15 }
 0x5cc   : > { %10077 = vmatprep.mubr.msk.f32.mxu1 %vm225_vm1, %v13634_v41  ;;  %v10657_v41 = vld [vmem:[%s10753_s27 + $0x58] sm:$0xff] }
 0x5cf   : > { %10078 = vmatmul.mubr.msk.f32.gmra.mrb[2].mxu1 %vm225_vm1, %v13635_v46 }
 0x5d0   : > { %10080 = vmatprep.mubr.msk.f32.mxu1 %vm225_vm1, %v13636_v8  ;;  %v10658_v8 = vld [vmem:[%s10753_s27 + $0x50] sm:$0xff] }
 0x5d3   : > { %10081 = vmatmul.mubr.msk.f32.gmra.mrb[4].mxu1 %vm225_vm1, %v13637_v21 }
 0x5d4   : > { %10083 = vmatprep.mubr.msk.f32.mxu1 %vm225_vm1, %v13638_v45 }
 0x5d7   : > { %10084 = vmatmul.mubr.msk.f32.gmra.mrb[6].mxu1 %vm225_vm1, %v13639_v22 }
 0x5d8   : > { %10086 = vmatprep.mubr.msk.f32.mxu1 %vm225_vm1, %v13640_v51 }
 0x5db   : > { %10087 = vmatmul.mubr.msk.f32.gmra.mrb[8].mxu1 %vm225_vm1, %v13641_v54 }
 0x5dc   : > { %10089 = vmatprep.mubr.msk.f32.mxu1 %vm225_vm1, %v13642_v63  ;;  %v10659_v63 = vld [vmem:[%s10753_s27 + $0x68] sm:$0xff] }
 0x5df   : > { %10090 = vmatmul.mubr.msk.f32.gmra.mrb[10].mxu1 %vm225_vm1, %v13643_v26 }
 0x5e0   : > { %10092 = vmatprep.mubr.msk.f32.mxu1 %vm225_vm1, %v13644_v39  ;;  %v10660_v39 = vld [vmem:[%s10753_s27 + $0x60] sm:$0xff] }
 0x5e3   : > { %10093 = vmatmul.mubr.msk.f32.gmra.mrb[12].mxu1 %vm225_vm1, %v13645_v55 }
 0x5e4   : > { %10095 = vmatprep.mubr.msk.f32.mxu1 %vm225_vm1, %v13646_v3 }
 0x5e7   : > { %10096 = vmatmul.mubr.msk.f32.gmra.mrb[14].mxu1 %vm225_vm1, %v13614_v2 }
 0x5e8   : > { %10098 = vmatprep.mubr.msk.f32.mxu1 %vm225_vm1, %v13647_v59 }
 0x5eb   : > { %10099 = vmatmul.mubr.msk.f32.gmra.mrb[16].mxu1 %vm225_vm1, %v13616_v6 }
 0x5ec   : > { %10101 = vmatprep.mubr.msk.f32.mxu1 %vm225_vm1, %v13617_v9  ;;  %v13650_v9 = vld [vmem:[#allocation36_spill] sm:$0xff] }
 0x5ef   : > { %10102 = vmatmul.mubr.msk.f32.gmra.mrb[18].mxu1 %vm225_vm1, %v13618_v19 }
 0x5f0   : > { %10104 = vmatprep.mubr.msk.f32.mxu1 %vm225_vm1, %v13648_v38 }
 0x5f3   : > { %10105 = vmatmul.mubr.msk.f32.gmra.mrb[20].mxu1 %vm225_vm1, %v13620_v4 }
 0x5f4   : > { %10107 = vmatprep.mubr.msk.f32.mxu1 %vm225_vm1, %v13649_v36 }
 0x5f7   : > { %10108 = vmatmul.mubr.msk.f32.gmra.mrb[22].mxu1 %vm225_vm1, %v12803_v12 }
 0x5f8   : > { %10110 = vmatprep.mubr.msk.f32.mxu1 %vm225_vm1, %v13622_v1  ;;  %v7486_v1 = vld [vmem:[#allocation2 + $0x1a2] sm:$0xff] }
 0x5fb   : > { %10111 = vmatmul.mubr.msk.f32.gmra.mrb[24].mxu1 %vm225_vm1, %v12811_v47  ;;  %v13238_v47 = vld [vmem:[%s13382_s4] ss:$0 sm:$0xff] }
 0x5fc   : > { %10113 = vmatprep.mubr.msk.f32.mxu1 %vm225_vm1, %v13650_v9  ;;  %v10661_v9 = vld [vmem:[%s10753_s27 + $0x78] sm:$0xff] }
 0x5ff   : > { %10114 = vmatmul.mubr.msk.f32.gmra.mrb[26].mxu1 %vm225_vm1, %v12819_v11  ;;  %v10651_v11 = vld [vmem:[%s10753_s27 + $0x28] sm:$0xff] }
 0x600   : > { %10116 = vmatprep.mubr.msk.f32.mxu1 %vm225_vm1, %v13035_v16 }
 0x603   : > { %10117 = vmatmul.mubr.msk.f32.gmra.mrb[28].mxu1 %vm225_vm1, %v13039_v30  ;;  %v10653_v30 = vld [vmem:[%s10753_s27 + $0x38] sm:$0xff] }
 0x604   : > { %10119 = vmatprep.mubr.msk.f32.mxu1 %vm225_vm1, %v7485_v49 }
 0x607   : > { %10120 = vmatmul.mubr.msk.f32.gmra.mrb[30].mxu1 %vm225_vm1, %v7486_v1  ;;  %v10662_v1 = vld [vmem:[%s10753_s27 + $0x70] sm:$0xff] }
 0x69e   : > { %v10076_v12 = vpop.f32.mrb[0].mxu1 }
 0x69f   : > { %v7853_v0 = vadd.f32 %v10076_v12, %v13238_v47  ;;  %v7654_v16 = vpop.f32.mrb[1].mxu1 }
 0x6a0   : > { %v7852_v57 = vadd.f32 %v13238_v47, %v7654_v16 }
 0x6a1   : > { %v7885_v5 = vadd.f32 %v10647_v32, %v7853_v0 }
 0x6a2   : > { %v7884_v28 = vadd.f32 %v10648_v14, %v7852_v57  ;;  %v10079_v61 = vpop.f32.mrb[2].mxu1 }
 0x6a3   : > { %7917 = vst.msk [vmem:[%s13246_s22 + $0x8] sm:$0xff] %vm225_vm1, %v7885_v5  ;;  %v7855_v48 = vadd.f32 %v10079_v61, %v13238_v47  ;;  %v7664_v34 = vpop.f32.mrb[3].mxu1  ;;  %v10663_v5 = vld [vmem:[%s10753_s27 + $0x88] sm:$0xff] }
 0x6a4   : > { %7916 = vst.msk [vmem:[%s13246_s22] sm:$0xff] %vm225_vm1, %v7884_v28  ;;  %v7854_v27 = vadd.f32 %v13238_v47, %v7664_v34  ;;  %v10664_v28 = vld [vmem:[%s10753_s27 + $0x80] sm:$0xff] }
 0x6a5   : > { %v7887_v23 = vadd.f32 %v10649_v25, %v7855_v48 }
 0x6a6   : > { %v7886_v10 = vadd.f32 %v10650_v52, %v7854_v27  ;;  %v10082_v50 = vpop.f32.mrb[4].mxu1 }
 0x6a7   : > { %7919 = vst.msk [vmem:[%s13246_s22 + $0x18] sm:$0xff] %vm225_vm1, %v7887_v23  ;;  %v7857_v44 = vadd.f32 %v10082_v50, %v13238_v47  ;;  %v7674_v58 = vpop.f32.mrb[5].mxu1  ;;  %v10665_v23 = vld [vmem:[%s10753_s27 + $0x98] sm:$0xff] }
 0x6a8   : > { %7918 = vst.msk [vmem:[%s13246_s22 + $0x10] sm:$0xff] %vm225_vm1, %v7886_v10  ;;  %v7856_v43 = vadd.f32 %v13238_v47, %v7674_v58  ;;  %v10666_v10 = vld [vmem:[%s10753_s27 + $0x90] sm:$0xff] }
 0x6a9   : > { %v7889_v40 = vadd.f32 %v10651_v11, %v7857_v44 }
 0x6aa   : > { %v7888_v42 = vadd.f32 %v10652_v62, %v7856_v43  ;;  %v10085_v2 = vpop.f32.mrb[6].mxu1 }
 0x6ab   : > { %7921 = vst.msk [vmem:[%s13246_s22 + $0x28] sm:$0xff] %vm225_vm1, %v7889_v40  ;;  %v7859_v6 = vadd.f32 %v10085_v2, %v13238_v47  ;;  %v7684_v19 = vpop.f32.mrb[7].mxu1  ;;  %v10667_v40 = vld [vmem:[%s10753_s27 + $0xa8] sm:$0xff] }
 0x6ac   : > { %7920 = vst.msk [vmem:[%s13246_s22 + $0x20] sm:$0xff] %vm225_vm1, %v7888_v42  ;;  %v7858_v4 = vadd.f32 %v13238_v47, %v7684_v19  ;;  %v10668_v42 = vld [vmem:[%s10753_s27 + $0xa0] sm:$0xff] }
 0x6ad   : > { %v7891_v53 = vadd.f32 %v10653_v30, %v7859_v6 }
 0x6ae   : > { %v7890_v33 = vadd.f32 %v10654_v56, %v7858_v4  ;;  %v10088_v7 = vpop.f32.mrb[8].mxu1 }
 0x6af   : > { %7923 = vst.msk [vmem:[%s13246_s22 + $0x38] sm:$0xff] %vm225_vm1, %v7891_v53  ;;  %v7861_v13 = vadd.f32 %v10088_v7, %v13238_v47  ;;  %v7694_v29 = vpop.f32.mrb[9].mxu1  ;;  %v10669_v53 = vld [vmem:[%s10753_s27 + $0xb8] sm:$0xff] }
 0x6b0   : > { %7922 = vst.msk [vmem:[%s13246_s22 + $0x30] sm:$0xff] %vm225_vm1, %v7890_v33  ;;  %v7860_v17 = vadd.f32 %v13238_v47, %v7694_v29  ;;  %v10670_v33 = vld [vmem:[%s10753_s27 + $0xb0] sm:$0xff] }
 0x6b1   : > { %v7893_v31 = vadd.f32 %v10655_v37, %v7861_v13 }
 0x6b2   : > { %v7892_v20 = vadd.f32 %v10656_v60, %v7860_v17  ;;  %v10091_v18 = vpop.f32.mrb[10].mxu1 }
 0x6b3   : > { %7925 = vst.msk [vmem:[%s13246_s22 + $0x48] sm:$0xff] %vm225_vm1, %v7893_v31  ;;  %v7863_v35 = vadd.f32 %v10091_v18, %v13238_v47  ;;  %v7704_v24 = vpop.f32.mrb[11].mxu1  ;;  %v10671_v31 = vld [vmem:[%s10753_s27 + $0xc8] sm:$0xff] }
 0x6b4   : > { %7924 = vst.msk [vmem:[%s13246_s22 + $0x40] sm:$0xff] %vm225_vm1, %v7892_v20  ;;  %v7862_v15 = vadd.f32 %v13238_v47, %v7704_v24  ;;  %v10672_v20 = vld [vmem:[%s10753_s27 + $0xc0] sm:$0xff] }
 0x6b5   : > { %v7895_v46 = vadd.f32 %v10657_v41, %v7863_v35 }
 0x6b6   : > { %v7894_v21 = vadd.f32 %v10658_v8, %v7862_v15  ;;  %v10094_v45 = vpop.f32.mrb[12].mxu1 }
 0x6b7   : > { %7927 = vst.msk [vmem:[%s13246_s22 + $0x58] sm:$0xff] %vm225_vm1, %v7895_v46  ;;  %v7865_v22 = vadd.f32 %v10094_v45, %v13238_v47  ;;  %v7714_v51 = vpop.f32.mrb[13].mxu1  ;;  %v10673_v46 = vld [vmem:[%s10753_s27 + $0xd8] sm:$0xff] }
 0x6b8   : > { %7926 = vst.msk [vmem:[%s13246_s22 + $0x50] sm:$0xff] %vm225_vm1, %v7894_v21  ;;  %v7864_v54 = vadd.f32 %v13238_v47, %v7714_v51  ;;  %v10674_v21 = vld [vmem:[%s10753_s27 + $0xd0] sm:$0xff] }
 0x6b9   : > { %v7897_v26 = vadd.f32 %v10659_v63, %v7865_v22 }
 0x6ba   : > { %v7896_v55 = vadd.f32 %v10660_v39, %v7864_v54  ;;  %v10097_v3 = vpop.f32.mrb[14].mxu1 }
 0x6bb   : > { %7929 = vst.msk [vmem:[%s13246_s22 + $0x68] sm:$0xff] %vm225_vm1, %v7897_v26  ;;  %v7867_v59 = vadd.f32 %v10097_v3, %v13238_v47  ;;  %v7724_v38 = vpop.f32.mrb[15].mxu1  ;;  %v10675_v26 = vld [vmem:[%s10753_s27 + $0xe8] sm:$0xff] }
 0x6bc   : > { %7928 = vst.msk [vmem:[%s13246_s22 + $0x60] sm:$0xff] %vm225_vm1, %v7896_v55  ;;  %v7866_v36 = vadd.f32 %v13238_v47, %v7724_v38  ;;  %v10676_v55 = vld [vmem:[%s10753_s27 + $0xe0] sm:$0xff] }
 0x6bd   : > { %v7899_v49 = vadd.f32 %v10661_v9, %v7867_v59 }
 0x6be   : > { %v7898_v12 = vadd.f32 %v10662_v1, %v7866_v36  ;;  %v10100_v0 = vpop.f32.mrb[16].mxu1 }
 0x6bf   : > { %7931 = vst.msk [vmem:[%s13246_s22 + $0x78] sm:$0xff] %vm225_vm1, %v7899_v49  ;;  %v7869_v16 = vadd.f32 %v10100_v0, %v13238_v47  ;;  %v7734_v57 = vpop.f32.mrb[17].mxu1  ;;  %v10677_v49 = vld [vmem:[%s10753_s27 + $0xf8] sm:$0xff] }
 0x6c0   : > { %7930 = vst.msk [vmem:[%s13246_s22 + $0x70] sm:$0xff] %vm225_vm1, %v7898_v12  ;;  %v7868_v32 = vadd.f32 %v13238_v47, %v7734_v57  ;;  %v10678_v12 = vld [vmem:[%s10753_s27 + $0xf0] sm:$0xff] }
 0x6c1   : > { %v7901_v14 = vadd.f32 %v10663_v5, %v7869_v16 }
 0x6c2   : > { %v7900_v61 = vadd.f32 %v10664_v28, %v7868_v32  ;;  %v10103_v48 = vpop.f32.mrb[18].mxu1 }
 0x6c3   : > { %7933 = vst.msk [vmem:[%s13246_s22 + $0x88] sm:$0xff] %vm225_vm1, %v7901_v14  ;;  %v7871_v34 = vadd.f32 %v10103_v48, %v13238_v47  ;;  %v7744_v27 = vpop.f32.mrb[19].mxu1 }
 0x6c4   : > { %7932 = vst.msk [vmem:[%s13246_s22 + $0x80] sm:$0xff] %vm225_vm1, %v7900_v61  ;;  %v7870_v25 = vadd.f32 %v13238_v47, %v7744_v27 }
 0x6c5   : > { %v7903_v52 = vadd.f32 %v10665_v23, %v7871_v34 }
 0x6c6   : > { %v7902_v50 = vadd.f32 %v10666_v10, %v7870_v25  ;;  %v10106_v44 = vpop.f32.mrb[20].mxu1 }
 0x6c7   : > { %7935 = vst.msk [vmem:[%s13246_s22 + $0x98] sm:$0xff] %vm225_vm1, %v7903_v52  ;;  %v7873_v58 = vadd.f32 %v10106_v44, %v13238_v47  ;;  %v7754_v43 = vpop.f32.mrb[21].mxu1 }
 0x6c8   : > { %7934 = vst.msk [vmem:[%s13246_s22 + $0x90] sm:$0xff] %vm225_vm1, %v7902_v50  ;;  %v7872_v11 = vadd.f32 %v13238_v47, %v7754_v43 }
 0x6c9   : > { %v7905_v62 = vadd.f32 %v10667_v40, %v7873_v58 }
 0x6ca   : > { %v7904_v2 = vadd.f32 %v10668_v42, %v7872_v11  ;;  %v10109_v6 = vpop.f32.mrb[22].mxu1 }
 0x6cb   : > { %7937 = vst.msk [vmem:[%s13246_s22 + $0xa8] sm:$0xff] %vm225_vm1, %v7905_v62  ;;  %v7875_v19 = vadd.f32 %v10109_v6, %v13238_v47  ;;  %v7764_v4 = vpop.f32.mrb[23].mxu1 }
 0x6cc   : > { %7936 = vst.msk [vmem:[%s13246_s22 + $0xa0] sm:$0xff] %vm225_vm1, %v7904_v2  ;;  %v7874_v30 = vadd.f32 %v13238_v47, %v7764_v4 }
 0x6cd   : > { %v7907_v56 = vadd.f32 %v10669_v53, %v7875_v19 }
 0x6ce   : > { %v7906_v7 = vadd.f32 %v10670_v33, %v7874_v30  ;;  %v10112_v13 = vpop.f32.mrb[24].mxu1 }
 0x6cf   : > { %7939 = vst.msk [vmem:[%s13246_s22 + $0xb8] sm:$0xff] %vm225_vm1, %v7907_v56  ;;  %v7877_v29 = vadd.f32 %v10112_v13, %v13238_v47  ;;  %v7774_v17 = vpop.f32.mrb[25].mxu1 }
 0x6d0   : > { %7938 = vst.msk [vmem:[%s13246_s22 + $0xb0] sm:$0xff] %vm225_vm1, %v7906_v7  ;;  %v7876_v37 = vadd.f32 %v13238_v47, %v7774_v17 }
 0x6d1   : > { %v7909_v60 = vadd.f32 %v10671_v31, %v7877_v29 }
 0x6d2   : > { %v7908_v18 = vadd.f32 %v10672_v20, %v7876_v37  ;;  %v10115_v35 = vpop.f32.mrb[26].mxu1 }
 0x6d3   : > { %7941 = vst.msk [vmem:[%s13246_s22 + $0xc8] sm:$0xff] %vm225_vm1, %v7909_v60  ;;  %v7879_v24 = vadd.f32 %v10115_v35, %v13238_v47  ;;  %v7784_v15 = vpop.f32.mrb[27].mxu1 }
 0x6d4   : > { %7940 = vst.msk [vmem:[%s13246_s22 + $0xc0] sm:$0xff] %vm225_vm1, %v7908_v18  ;;  %v7878_v41 = vadd.f32 %v13238_v47, %v7784_v15 }
 0x6d5   : > { %v7911_v8 = vadd.f32 %v10673_v46, %v7879_v24 }
 0x6d6   : > { %v7910_v45 = vadd.f32 %v10674_v21, %v7878_v41  ;;  %v10118_v22 = vpop.f32.mrb[28].mxu1 }
 0x6d7   : > { %7943 = vst.msk [vmem:[%s13246_s22 + $0xd8] sm:$0xff] %vm225_vm1, %v7911_v8  ;;  %v7881_v51 = vadd.f32 %v10118_v22, %v13238_v47  ;;  %v7794_v54 = vpop.f32.mrb[29].mxu1 }
 0x6d8   : > { %7942 = vst.msk [vmem:[%s13246_s22 + $0xd0] sm:$0xff] %vm225_vm1, %v7910_v45  ;;  %v7880_v63 = vadd.f32 %v13238_v47, %v7794_v54 }
 0x6d9   : > { %v7913_v39 = vadd.f32 %v10675_v26, %v7881_v51 }
 0x6da   : > { %v7912_v3 = vadd.f32 %v10676_v55, %v7880_v63  ;;  %v10121_v59 = vpop.f32.mrb[30].mxu1 }
 0x6db   : > { %7945 = vst.msk [vmem:[%s13246_s22 + $0xe8] sm:$0xff] %vm225_vm1, %v7913_v39  ;;  %v7883_v38 = vadd.f32 %v10121_v59, %v13238_v47  ;;  %v7804_v36 = vpop.f32.mrb[31].mxu1 }
 0x6dc   : > { %7944 = vst.msk [vmem:[%s13246_s22 + $0xe0] sm:$0xff] %vm225_vm1, %v7912_v3  ;;  %v7882_v9 = vadd.f32 %v13238_v47, %v7804_v36 }
 0x6dd   : > { %v7915_v1 = vadd.f32 %v10677_v49, %v7883_v38 }
 0x6de   : > { %v7914_v0 = vadd.f32 %v10678_v12, %v7882_v9 }
 0x6df   : > { %7947 = vst.msk [vmem:[%s13246_s22 + $0xf8] sm:$0xff] %vm225_vm1, %v7915_v1 }
 0x6e0   : > { %7946 = vst.msk [vmem:[%s13246_s22 + $0xf0] sm:$0xff] %vm225_vm1, %v7914_v0 }
 0x6e1 PF: > { %s15_s18 = sadd.s32 1, %s10685_s18  }
 0x6e2   : > { %p12_p4 = scmp.ge.s32.totalorder %s15_s18, 4  }
 0x6e4   :  { %14 = sbr.rel (!%p12_p4) target bundleno = 1 (0x1), region = 89 }

</bundles_post_ra>
